<compile_context>
chip_gen: v5e
topology: v5e:2x2
jax: 0.10.0
libtpu: 0.0.40
codegen_flags: <defaults>
</compile_context>

<pallas_src>
import functools

import jax
import jax.numpy as jnp
from jax.experimental import pallas as pl
from jax.experimental.pallas import tpu as pltpu

# ----------------------------- model config ---------------------------------
INPUT_SIZE = 16
HIDDEN = 32
NUM_LAYERS = 2          # the fused kernel below is specialized for 2 layers
NUM_CLASSES = 3
BATCH = 2
SEQ = 8


# --------------------------- fused Pallas kernel -----------------------------
def _fused_birnn_kernel(xp_ref, wx0_ref, wh0_ref, b0_ref,
                        wx1_ref, wh1_ref, b1_ref, wfc_ref,
                        out_ref, l0p_sc, l1_sc, *, seq, batch):
    """Entire BiRNN_nopack forward in one kernel invocation (grid=()).

    xp_ref : (S*B, 2*Din0)       row t*B+b = [x_t | x_{S-1-t}] for sample b.
    wxL_ref: (2*DinL, 8H)        packed input weights; rows = [x_fwd | x_bwd],
                                 columns ordered (gate, direction, H), torch gate
                                 order (i, f, g, o).
    whL_ref: (2H, 8H)            packed hidden weights; rows = [h_fwd | h_bwd].
    bL_ref : (1, 8H)             combined b_ih + b_hh, same column order.
    wfc_ref: (2H, C)             fc weight, pre-transposed (bias-free).
    out_ref: (S*B, C)            sigmoid(fc(h_layer1)), row index = t*B + b.
    l0p_sc : (S*B, 4H)           layer-0 output in layer-1 "pair" layout,
                                 row t*B+b = [l0_out(t,b) | l0_out(S-1-t,b)].
    l1_sc  : (S*B, 2H)           layer-1 bidirectional output,
                                 row t*B+b = [h1_fwd(t,b) | h1_bwd(t,b)].
    """
    S, B = seq, batch
    H = wfc_ref.shape[0] // 2

    def run_layer(gates_x, wh_ref, store_h):
        # Carried state for BOTH directions: [fwd | bwd] halves along lanes.
        h = jnp.zeros((B, 2 * H), jnp.float32)
        c = jnp.zeros((B, 2 * H), jnp.float32)
        for t in range(S):                       # fully unrolled (S small & static)
            gates = gates_x[t * B:(t + 1) * B, :] + jnp.dot(
                h, wh_ref[...], preferred_element_type=jnp.float32)  # (B, 8H)
            sig = jax.nn.sigmoid(gates)          # full-width EUP pass
            tnh = jnp.tanh(gates)                # full-width EUP pass
            i_g = sig[:, 0 * H:2 * H]            # [i_fwd | i_bwd]
            f_g = sig[:, 2 * H:4 * H]
            g_g = tnh[:, 4 * H:6 * H]
            o_g = sig[:, 6 * H:8 * H]
            c = f_g * c + i_g * g_g
            h = o_g * jnp.tanh(c)
            store_h(t, h)

    # ---- Layer 0: bulk input projection (one MXU matmul for all steps/dirs) ----
    gx0 = jnp.dot(xp_ref[...], wx0_ref[...],
                  preferred_element_type=jnp.float32) + b0_ref[...]   # (S*B, 8H)

    def store_l0(t, h):
        # fwd hidden belongs to time t, bwd hidden to time S-1-t.
        r_fwd = t * B
        r_bwd = (S - 1 - t) * B
        # pair layout row r = [l0_out(r) | l0_out(S-1-r)], l0_out = [h_fwd | h_bwd].
        l0p_sc[r_fwd:r_fwd + B, 0:H] = h[:, 0:H]            # fwd(t)      -> row t,   left half
        l0p_sc[r_bwd:r_bwd + B, H:2 * H] = h[:, H:2 * H]    # bwd(S-1-t)  -> row S-1-t, left half
        l0p_sc[r_bwd:r_bwd + B, 2 * H:3 * H] = h[:, 0:H]    # fwd(t)      -> row S-1-t, right half
        l0p_sc[r_fwd:r_fwd + B, 3 * H:4 * H] = h[:, H:2 * H]  # bwd(S-1-t) -> row t,   right half

    run_layer(gx0, wh0_ref, store_l0)
    # TODO(synk): inter-layer dropout (p=0.05) is train-mode-only stochastic;
    # eval/inference semantics are implemented here (dropout disabled).

    # ---- Layer 1: bulk input projection on the VMEM-resident layer-0 output ----
    gx1 = jnp.dot(l0p_sc[...], wx1_ref[...],
                  preferred_element_type=jnp.float32) + b1_ref[...]   # (S*B, 8H)

    def store_l1(t, h):
        r_fwd = t * B
        r_bwd = (S - 1 - t) * B
        l1_sc[r_fwd:r_fwd + B, 0:H] = h[:, 0:H]
        l1_sc[r_bwd:r_bwd + B, H:2 * H] = h[:, H:2 * H]

    run_layer(gx1, wh1_ref, store_l1)

    # ---- Fused fc + sigmoid epilogue ----
    logits = jnp.dot(l1_sc[...], wfc_ref[...], preferred_element_type=jnp.float32)
    out_ref[...] = jax.nn.sigmoid(logits)


def _full_spec(shape):
    n = len(shape)
    return pl.BlockSpec(shape, lambda n=n: (0,) * n)


def fused_birnn_call(x_pair, wx0, wh0, b0, wx1, wh1, b1, wfc_t, *, seq, batch):
    """x_pair: (S*B, 2*Din0);  returns sigmoid(fc(h_top)) as (S*B, C)."""
    SB = x_pair.shape[0]
    H = wfc_t.shape[0] // 2
    C = wfc_t.shape[1]
    kernel = functools.partial(_fused_birnn_kernel, seq=seq, batch=batch)
    return pl.pallas_call(
        kernel,
        out_shape=jax.ShapeDtypeStruct((SB, C), jnp.float32),
        in_specs=[_full_spec(a.shape)
                  for a in (x_pair, wx0, wh0, b0, wx1, wh1, b1, wfc_t)],
        out_specs=_full_spec((SB, C)),
        scratch_shapes=[
            pltpu.VMEM((SB, 4 * H), jnp.float32),   # layer-0 output, layer-1 pair layout
            pltpu.VMEM((SB, 2 * H), jnp.float32),   # layer-1 output
        ],
    )(x_pair, wx0, wh0, b0, wx1, wh1, b1, wfc_t)


# ------------------------------ parameter init -------------------------------
def init_params(key, input_size, hidden, num_layers, num_classes):
    """Deterministic synthetic init matching the PyTorch module's distributions.

    LSTM weights/biases ~ U(-1/sqrt(H), 1/sqrt(H)) (PyTorch default); fc weight is
    Xavier-normal (gain=1), bias-free.  LSTM weights are packed for the fused kernel:
      Wx rows = [x_fwd | x_bwd],  Wh rows = [h_fwd | h_bwd]
      columns = (gate, direction, H), torch gate order (i, f, g, o).
    """
    H = hidden
    bound = 1.0 / (hidden ** 0.5)

    def expand_cols(w, d):
        # Place a (rows, 4H) single-direction weight into the (gate, dir, H) columns.
        r = w.shape[0]
        z = jnp.zeros((r, 4, 2, H), jnp.float32)
        z = z.at[:, :, d, :].set(w.reshape(r, 4, H))
        return z.reshape(r, 8 * H)

    params = {"lstm": []}
    for layer in range(num_layers):
        din = input_size if layer == 0 else 2 * hidden
        w_ih, w_hh, biases = [], [], []
        for _ in range(2):  # fwd, bwd
            key, k1, k2, k3, k4 = jax.random.split(key, 5)
            w_ih.append(jax.random.uniform(k1, (din, 4 * H), jnp.float32,
                                           -bound, bound))
            w_hh.append(jax.random.uniform(k2, (H, 4 * H), jnp.float32,
                                           -bound, bound))
            b_ih = jax.random.uniform(k3, (4 * H,), jnp.float32, -bound, bound)
            b_hh = jax.random.uniform(k4, (4 * H,), jnp.float32, -bound, bound)
            biases.append(b_ih + b_hh)
        wx_packed = jnp.concatenate(
            [expand_cols(w_ih[0], 0), expand_cols(w_ih[1], 1)], axis=0)   # (2*din, 8H)
        wh_packed = jnp.concatenate(
            [expand_cols(w_hh[0], 0), expand_cols(w_hh[1], 1)], axis=0)   # (2H, 8H)
        b_packed = jnp.stack([biases[0].reshape(4, H), biases[1].reshape(4, H)],
                             axis=1).reshape(1, 8 * H)
        params["lstm"].append((wx_packed, wh_packed, b_packed))

    key, kfc = jax.random.split(key)
    fan_in, fan_out = 2 * hidden, num_classes
    std = (2.0 / (fan_in + fan_out)) ** 0.5
    # torch fc.weight is (C, 2H); keep the transposed (2H, C) for the kernel.
    params["fc_w_t"] = std * jax.random.normal(kfc, (fan_in, fan_out), jnp.float32)
    return params


# ------------------------------- forward pass --------------------------------
@jax.jit
def birnn_nopack_forward(x, params):
    """x: (B, S, input_size)  ->  (S, num_classes, B), matching the torch module."""
    B, S, Din = x.shape
    x_tm = jnp.transpose(x, (1, 0, 2)).astype(jnp.float32)     # time-major (S, B, Din)
    x_pair = jnp.concatenate([x_tm, x_tm[::-1]], axis=-1)      # row t = [x_t | x_{S-1-t}]
    x_pair = x_pair.reshape(S * B, 2 * Din)
    (wx0, wh0, b0), (wx1, wh1, b1) = params["lstm"]
    y = fused_birnn_call(x_pair, wx0, wh0, b0, wx1, wh1, b1,
                         params["fc_w_t"], seq=S, batch=B)      # (S*B, C)
    y = y.reshape(S, B, -1)                                     # (S, B, C)
    # torch: stack per-sample (S, C) predictions over batch along dim=-1.
    return jnp.transpose(y, (0, 2, 1))                          # (S, C, B)


# ----------------------------------- main -------------------------------------
if __name__ == "__main__":
    key = jax.random.PRNGKey(0)
    k_x, k_p = jax.random.split(key)

    x = jax.random.normal(k_x, (BATCH, SEQ, INPUT_SIZE), jnp.float32)
    params = init_params(k_p, INPUT_SIZE, HIDDEN, NUM_LAYERS, NUM_CLASSES)

    out = birnn_nopack_forward(x, params)
    out = jax.block_until_ready(out)

    assert out.shape == (SEQ, NUM_CLASSES, BATCH), out.shape
    assert bool(jnp.all(jnp.isfinite(out)))
    assert bool(jnp.all((out >= 0.0) & (out <= 1.0)))  # sigmoid range sanity
    print("KERNEL_OK")
</pallas_src>

<mosaic_0001>
module attributes {stable_mosaic.version = 11 : i64} {
  func.func @_fused_birnn_kernel(%arg0: memref<16x32xf32, #tpu.memory_space<vmem>>, %arg1: memref<32x256xf32, #tpu.memory_space<vmem>>, %arg2: memref<64x256xf32, #tpu.memory_space<vmem>>, %arg3: memref<1x256xf32, #tpu.memory_space<vmem>>, %arg4: memref<128x256xf32, #tpu.memory_space<vmem>>, %arg5: memref<64x256xf32, #tpu.memory_space<vmem>>, %arg6: memref<1x256xf32, #tpu.memory_space<vmem>>, %arg7: memref<64x3xf32, #tpu.memory_space<vmem>>, %arg8: memref<16x3xf32, #tpu.memory_space<vmem>>, %arg9: memref<16x128xf32, #tpu.memory_space<vmem>>, %arg10: memref<16x64xf32, #tpu.memory_space<vmem>>) attributes {dimension_semantics = [], scalar_prefetch = 0 : i64, scratch_operands = 2 : i64, tpu.core_type = #tpu.core_type<tc>} {
    %c0 = arith.constant 0 : index
    %c0_0 = arith.constant 0 : index
    %0 = vector.load %arg0[%c0, %c0_0] : memref<16x32xf32, #tpu.memory_space<vmem>>, vector<16x32xf32>
    %c0_1 = arith.constant 0 : index
    %c0_2 = arith.constant 0 : index
    %1 = vector.load %arg1[%c0_1, %c0_2] : memref<32x256xf32, #tpu.memory_space<vmem>>, vector<32x256xf32>
    %cst = arith.constant dense<0.000000e+00> : vector<16x256xf32>
    %2 = tpu.matmul %0, %1, %cst {dimension_numbers = #tpu.dot_dimension_numbers<[1], [0], [0], [1], [0, 0, 1, 1], [], []>} : vector<16x32xf32>, vector<32x256xf32>, vector<16x256xf32> -> vector<16x256xf32>
    %c0_3 = arith.constant 0 : index
    %c0_4 = arith.constant 0 : index
    %3 = vector.load %arg3[%c0_3, %c0_4] : memref<1x256xf32, #tpu.memory_space<vmem>>, vector<1x256xf32>
    %4 = vector.broadcast %3 : vector<1x256xf32> to vector<16x256xf32>
    %5 = arith.addf %2, %4 : vector<16x256xf32>
    %cst_5 = arith.constant 0.000000e+00 : f32
    %6 = vector.broadcast %cst_5 : f32 to vector<2x64xf32>
    %cst_6 = arith.constant 0.000000e+00 : f32
    %7 = vector.broadcast %cst_6 : f32 to vector<2x64xf32>
    %8 = vector.extract_strided_slice %5 {offsets = [0, 0], sizes = [2, 256], strides = [1, 1]} : vector<16x256xf32> to vector<2x256xf32>
    %c0_7 = arith.constant 0 : index
    %c0_8 = arith.constant 0 : index
    %9 = vector.load %arg2[%c0_7, %c0_8] : memref<64x256xf32, #tpu.memory_space<vmem>>, vector<64x256xf32>
    %cst_9 = arith.constant dense<0.000000e+00> : vector<2x256xf32>
    %10 = tpu.matmul %6, %9, %cst_9 {dimension_numbers = #tpu.dot_dimension_numbers<[1], [0], [0], [1], [0, 0, 1, 1], [], []>} : vector<2x64xf32>, vector<64x256xf32>, vector<2x256xf32> -> vector<2x256xf32>
    %11 = arith.addf %8, %10 : vector<2x256xf32>
    %12 = arith.negf %11 : vector<2x256xf32>
    %13 = math.exp %12 : vector<2x256xf32>
    %cst_10 = arith.constant 1.000000e+00 : f32
    %14 = vector.broadcast %cst_10 : f32 to vector<2x256xf32>
    %15 = arith.addf %14, %13 : vector<2x256xf32>
    %16 = arith.divf %14, %15 : vector<2x256xf32>
    %17 = math.tanh %11 : vector<2x256xf32>
    %18 = vector.extract_strided_slice %16 {offsets = [0, 0], sizes = [2, 64], strides = [1, 1]} : vector<2x256xf32> to vector<2x64xf32>
    %19 = vector.extract_strided_slice %16 {offsets = [0, 64], sizes = [2, 64], strides = [1, 1]} : vector<2x256xf32> to vector<2x64xf32>
    %20 = vector.extract_strided_slice %17 {offsets = [0, 128], sizes = [2, 64], strides = [1, 1]} : vector<2x256xf32> to vector<2x64xf32>
    %21 = vector.extract_strided_slice %16 {offsets = [0, 192], sizes = [2, 64], strides = [1, 1]} : vector<2x256xf32> to vector<2x64xf32>
    %22 = arith.mulf %19, %7 : vector<2x64xf32>
    %23 = arith.mulf %18, %20 : vector<2x64xf32>
    %24 = arith.addf %22, %23 : vector<2x64xf32>
    %25 = math.tanh %24 : vector<2x64xf32>
    %26 = arith.mulf %21, %25 : vector<2x64xf32>
    %27 = vector.extract_strided_slice %26 {offsets = [0, 0], sizes = [2, 32], strides = [1, 1]} : vector<2x64xf32> to vector<2x32xf32>
    %c0_11 = arith.constant 0 : index
    %c0_12 = arith.constant 0 : index
    %28 = vector.load %arg9[%c0_11, %c0_12] : memref<16x128xf32, #tpu.memory_space<vmem>>, vector<2x32xf32>
    tpu.vector_store %arg9[%c0_11, %c0_12], %27 {strides = array<i32>} : memref<16x128xf32, #tpu.memory_space<vmem>>, vector<2x32xf32>,
    %29 = vector.extract_strided_slice %26 {offsets = [0, 32], sizes = [2, 32], strides = [1, 1]} : vector<2x64xf32> to vector<2x32xf32>
    %c14 = arith.constant 14 : index
    %c32 = arith.constant 32 : index
    %30 = vector.load %arg9[%c14, %c32] : memref<16x128xf32, #tpu.memory_space<vmem>>, vector<2x32xf32>
    tpu.vector_store %arg9[%c14, %c32], %29 {strides = array<i32>} : memref<16x128xf32, #tpu.memory_space<vmem>>, vector<2x32xf32>,
    %31 = vector.extract_strided_slice %26 {offsets = [0, 0], sizes = [2, 32], strides = [1, 1]} : vector<2x64xf32> to vector<2x32xf32>
    %c14_13 = arith.constant 14 : index
    %c64 = arith.constant 64 : index
    %32 = vector.load %arg9[%c14_13, %c64] : memref<16x128xf32, #tpu.memory_space<vmem>>, vector<2x32xf32>
    tpu.vector_store %arg9[%c14_13, %c64], %31 {strides = array<i32>} : memref<16x128xf32, #tpu.memory_space<vmem>>, vector<2x32xf32>,
    %33 = vector.extract_strided_slice %26 {offsets = [0, 32], sizes = [2, 32], strides = [1, 1]} : vector<2x64xf32> to vector<2x32xf32>
    %c0_14 = arith.constant 0 : index
    %c96 = arith.constant 96 : index
    %34 = vector.load %arg9[%c0_14, %c96] : memref<16x128xf32, #tpu.memory_space<vmem>>, vector<2x32xf32>
    tpu.vector_store %arg9[%c0_14, %c96], %33 {strides = array<i32>} : memref<16x128xf32, #tpu.memory_space<vmem>>, vector<2x32xf32>,
    %35 = vector.extract_strided_slice %5 {offsets = [2, 0], sizes = [2, 256], strides = [1, 1]} : vector<16x256xf32> to vector<2x256xf32>
    %c0_15 = arith.constant 0 : index
    %c0_16 = arith.constant 0 : index
    %36 = vector.load %arg2[%c0_15, %c0_16] : memref<64x256xf32, #tpu.memory_space<vmem>>, vector<64x256xf32>
    %cst_17 = arith.constant dense<0.000000e+00> : vector<2x256xf32>
    %37 = tpu.matmul %26, %36, %cst_17 {dimension_numbers = #tpu.dot_dimension_numbers<[1], [0], [0], [1], [0, 0, 1, 1], [], []>} : vector<2x64xf32>, vector<64x256xf32>, vector<2x256xf32> -> vector<2x256xf32>
    %38 = arith.addf %35, %37 : vector<2x256xf32>
    %39 = arith.negf %38 : vector<2x256xf32>
    %40 = math.exp %39 : vector<2x256xf32>
    %cst_18 = arith.constant 1.000000e+00 : f32
    %41 = vector.broadcast %cst_18 : f32 to vector<2x256xf32>
    %42 = arith.addf %41, %40 : vector<2x256xf32>
    %43 = arith.divf %41, %42 : vector<2x256xf32>
    %44 = math.tanh %38 : vector<2x256xf32>
    %45 = vector.extract_strided_slice %43 {offsets = [0, 0], sizes = [2, 64], strides = [1, 1]} : vector<2x256xf32> to vector<2x64xf32>
    %46 = vector.extract_strided_slice %43 {offsets = [0, 64], sizes = [2, 64], strides = [1, 1]} : vector<2x256xf32> to vector<2x64xf32>
    %47 = vector.extract_strided_slice %44 {offsets = [0, 128], sizes = [2, 64], strides = [1, 1]} : vector<2x256xf32> to vector<2x64xf32>
    %48 = vector.extract_strided_slice %43 {offsets = [0, 192], sizes = [2, 64], strides = [1, 1]} : vector<2x256xf32> to vector<2x64xf32>
    %49 = arith.mulf %46, %24 : vector<2x64xf32>
    %50 = arith.mulf %45, %47 : vector<2x64xf32>
    %51 = arith.addf %49, %50 : vector<2x64xf32>
    %52 = math.tanh %51 : vector<2x64xf32>
    %53 = arith.mulf %48, %52 : vector<2x64xf32>
    %54 = vector.extract_strided_slice %53 {offsets = [0, 0], sizes = [2, 32], strides = [1, 1]} : vector<2x64xf32> to vector<2x32xf32>
    %c2 = arith.constant 2 : index
    %c0_19 = arith.constant 0 : index
    %55 = vector.load %arg9[%c2, %c0_19] : memref<16x128xf32, #tpu.memory_space<vmem>>, vector<2x32xf32>
    tpu.vector_store %arg9[%c2, %c0_19], %54 {strides = array<i32>} : memref<16x128xf32, #tpu.memory_space<vmem>>, vector<2x32xf32>,
    %56 = vector.extract_strided_slice %53 {offsets = [0, 32], sizes = [2, 32], strides = [1, 1]} : vector<2x64xf32> to vector<2x32xf32>
    %c12 = arith.constant 12 : index
    %c32_20 = arith.constant 32 : index
    %57 = vector.load %arg9[%c12, %c32_20] : memref<16x128xf32, #tpu.memory_space<vmem>>, vector<2x32xf32>
    tpu.vector_store %arg9[%c12, %c32_20], %56 {strides = array<i32>} : memref<16x128xf32, #tpu.memory_space<vmem>>, vector<2x32xf32>,
    %58 = vector.extract_strided_slice %53 {offsets = [0, 0], sizes = [2, 32], strides = [1, 1]} : vector<2x64xf32> to vector<2x32xf32>
    %c12_21 = arith.constant 12 : index
    %c64_22 = arith.constant 64 : index
    %59 = vector.load %arg9[%c12_21, %c64_22] : memref<16x128xf32, #tpu.memory_space<vmem>>, vector<2x32xf32>
    tpu.vector_store %arg9[%c12_21, %c64_22], %58 {strides = array<i32>} : memref<16x128xf32, #tpu.memory_space<vmem>>, vector<2x32xf32>,
    %60 = vector.extract_strided_slice %53 {offsets = [0, 32], sizes = [2, 32], strides = [1, 1]} : vector<2x64xf32> to vector<2x32xf32>
    %c2_23 = arith.constant 2 : index
    %c96_24 = arith.constant 96 : index
    %61 = vector.load %arg9[%c2_23, %c96_24] : memref<16x128xf32, #tpu.memory_space<vmem>>, vector<2x32xf32>
    tpu.vector_store %arg9[%c2_23, %c96_24], %60 {strides = array<i32>} : memref<16x128xf32, #tpu.memory_space<vmem>>, vector<2x32xf32>,
    %62 = vector.extract_strided_slice %5 {offsets = [4, 0], sizes = [2, 256], strides = [1, 1]} : vector<16x256xf32> to vector<2x256xf32>
    %c0_25 = arith.constant 0 : index
    %c0_26 = arith.constant 0 : index
    %63 = vector.load %arg2[%c0_25, %c0_26] : memref<64x256xf32, #tpu.memory_space<vmem>>, vector<64x256xf32>
    %cst_27 = arith.constant dense<0.000000e+00> : vector<2x256xf32>
    %64 = tpu.matmul %53, %63, %cst_27 {dimension_numbers = #tpu.dot_dimension_numbers<[1], [0], [0], [1], [0, 0, 1, 1], [], []>} : vector<2x64xf32>, vector<64x256xf32>, vector<2x256xf32> -> vector<2x256xf32>
    %65 = arith.addf %62, %64 : vector<2x256xf32>
    %66 = arith.negf %65 : vector<2x256xf32>
    %67 = math.exp %66 : vector<2x256xf32>
    %cst_28 = arith.constant 1.000000e+00 : f32
    %68 = vector.broadcast %cst_28 : f32 to vector<2x256xf32>
    %69 = arith.addf %68, %67 : vector<2x256xf32>
    %70 = arith.divf %68, %69 : vector<2x256xf32>
    %71 = math.tanh %65 : vector<2x256xf32>
    %72 = vector.extract_strided_slice %70 {offsets = [0, 0], sizes = [2, 64], strides = [1, 1]} : vector<2x256xf32> to vector<2x64xf32>
    %73 = vector.extract_strided_slice %70 {offsets = [0, 64], sizes = [2, 64], strides = [1, 1]} : vector<2x256xf32> to vector<2x64xf32>
    %74 = vector.extract_strided_slice %71 {offsets = [0, 128], sizes = [2, 64], strides = [1, 1]} : vector<2x256xf32> to vector<2x64xf32>
    %75 = vector.extract_strided_slice %70 {offsets = [0, 192], sizes = [2, 64], strides = [1, 1]} : vector<2x256xf32> to vector<2x64xf32>
    %76 = arith.mulf %73, %51 : vector<2x64xf32>
    %77 = arith.mulf %72, %74 : vector<2x64xf32>
    %78 = arith.addf %76, %77 : vector<2x64xf32>
    %79 = math.tanh %78 : vector<2x64xf32>
    %80 = arith.mulf %75, %79 : vector<2x64xf32>
    %81 = vector.extract_strided_slice %80 {offsets = [0, 0], sizes = [2, 32], strides = [1, 1]} : vector<2x64xf32> to vector<2x32xf32>
    %c4 = arith.constant 4 : index
    %c0_29 = arith.constant 0 : index
    %82 = vector.load %arg9[%c4, %c0_29] : memref<16x128xf32, #tpu.memory_space<vmem>>, vector<2x32xf32>
    tpu.vector_store %arg9[%c4, %c0_29], %81 {strides = array<i32>} : memref<16x128xf32, #tpu.memory_space<vmem>>, vector<2x32xf32>,
    %83 = vector.extract_strided_slice %80 {offsets = [0, 32], sizes = [2, 32], strides = [1, 1]} : vector<2x64xf32> to vector<2x32xf32>
    %c10 = arith.constant 10 : index
    %c32_30 = arith.constant 32 : index
    %84 = vector.load %arg9[%c10, %c32_30] : memref<16x128xf32, #tpu.memory_space<vmem>>, vector<2x32xf32>
    tpu.vector_store %arg9[%c10, %c32_30], %83 {strides = array<i32>} : memref<16x128xf32, #tpu.memory_space<vmem>>, vector<2x32xf32>,
    %85 = vector.extract_strided_slice %80 {offsets = [0, 0], sizes = [2, 32], strides = [1, 1]} : vector<2x64xf32> to vector<2x32xf32>
    %c10_31 = arith.constant 10 : index
    %c64_32 = arith.constant 64 : index
    %86 = vector.load %arg9[%c10_31, %c64_32] : memref<16x128xf32, #tpu.memory_space<vmem>>, vector<2x32xf32>
    tpu.vector_store %arg9[%c10_31, %c64_32], %85 {strides = array<i32>} : memref<16x128xf32, #tpu.memory_space<vmem>>, vector<2x32xf32>,
    %87 = vector.extract_strided_slice %80 {offsets = [0, 32], sizes = [2, 32], strides = [1, 1]} : vector<2x64xf32> to vector<2x32xf32>
    %c4_33 = arith.constant 4 : index
    %c96_34 = arith.constant 96 : index
    %88 = vector.load %arg9[%c4_33, %c96_34] : memref<16x128xf32, #tpu.memory_space<vmem>>, vector<2x32xf32>
    tpu.vector_store %arg9[%c4_33, %c96_34], %87 {strides = array<i32>} : memref<16x128xf32, #tpu.memory_space<vmem>>, vector<2x32xf32>,
    %89 = vector.extract_strided_slice %5 {offsets = [6, 0], sizes = [2, 256], strides = [1, 1]} : vector<16x256xf32> to vector<2x256xf32>
    %c0_35 = arith.constant 0 : index
    %c0_36 = arith.constant 0 : index
    %90 = vector.load %arg2[%c0_35, %c0_36] : memref<64x256xf32, #tpu.memory_space<vmem>>, vector<64x256xf32>
    %cst_37 = arith.constant dense<0.000000e+00> : vector<2x256xf32>
    %91 = tpu.matmul %80, %90, %cst_37 {dimension_numbers = #tpu.dot_dimension_numbers<[1], [0], [0], [1], [0, 0, 1, 1], [], []>} : vector<2x64xf32>, vector<64x256xf32>, vector<2x256xf32> -> vector<2x256xf32>
    %92 = arith.addf %89, %91 : vector<2x256xf32>
    %93 = arith.negf %92 : vector<2x256xf32>
    %94 = math.exp %93 : vector<2x256xf32>
    %cst_38 = arith.constant 1.000000e+00 : f32
    %95 = vector.broadcast %cst_38 : f32 to vector<2x256xf32>
    %96 = arith.addf %95, %94 : vector<2x256xf32>
    %97 = arith.divf %95, %96 : vector<2x256xf32>
    %98 = math.tanh %92 : vector<2x256xf32>
    %99 = vector.extract_strided_slice %97 {offsets = [0, 0], sizes = [2, 64], strides = [1, 1]} : vector<2x256xf32> to vector<2x64xf32>
    %100 = vector.extract_strided_slice %97 {offsets = [0, 64], sizes = [2, 64], strides = [1, 1]} : vector<2x256xf32> to vector<2x64xf32>
    %101 = vector.extract_strided_slice %98 {offsets = [0, 128], sizes = [2, 64], strides = [1, 1]} : vector<2x256xf32> to vector<2x64xf32>
    %102 = vector.extract_strided_slice %97 {offsets = [0, 192], sizes = [2, 64], strides = [1, 1]} : vector<2x256xf32> to vector<2x64xf32>
    %103 = arith.mulf %100, %78 : vector<2x64xf32>
    %104 = arith.mulf %99, %101 : vector<2x64xf32>
    %105 = arith.addf %103, %104 : vector<2x64xf32>
    %106 = math.tanh %105 : vector<2x64xf32>
    %107 = arith.mulf %102, %106 : vector<2x64xf32>
    %108 = vector.extract_strided_slice %107 {offsets = [0, 0], sizes = [2, 32], strides = [1, 1]} : vector<2x64xf32> to vector<2x32xf32>
    %c6 = arith.constant 6 : index
    %c0_39 = arith.constant 0 : index
    %109 = vector.load %arg9[%c6, %c0_39] : memref<16x128xf32, #tpu.memory_space<vmem>>, vector<2x32xf32>
    tpu.vector_store %arg9[%c6, %c0_39], %108 {strides = array<i32>} : memref<16x128xf32, #tpu.memory_space<vmem>>, vector<2x32xf32>,
    %110 = vector.extract_strided_slice %107 {offsets = [0, 32], sizes = [2, 32], strides = [1, 1]} : vector<2x64xf32> to vector<2x32xf32>
    %c8 = arith.constant 8 : index
    %c32_40 = arith.constant 32 : index
    %111 = vector.load %arg9[%c8, %c32_40] : memref<16x128xf32, #tpu.memory_space<vmem>>, vector<2x32xf32>
    tpu.vector_store %arg9[%c8, %c32_40], %110 {strides = array<i32>} : memref<16x128xf32, #tpu.memory_space<vmem>>, vector<2x32xf32>,
    %112 = vector.extract_strided_slice %107 {offsets = [0, 0], sizes = [2, 32], strides = [1, 1]} : vector<2x64xf32> to vector<2x32xf32>
    %c8_41 = arith.constant 8 : index
    %c64_42 = arith.constant 64 : index
    %113 = vector.load %arg9[%c8_41, %c64_42] : memref<16x128xf32, #tpu.memory_space<vmem>>, vector<2x32xf32>
    tpu.vector_store %arg9[%c8_41, %c64_42], %112 {strides = array<i32>} : memref<16x128xf32, #tpu.memory_space<vmem>>, vector<2x32xf32>,
    %114 = vector.extract_strided_slice %107 {offsets = [0, 32], sizes = [2, 32], strides = [1, 1]} : vector<2x64xf32> to vector<2x32xf32>
    %c6_43 = arith.constant 6 : index
    %c96_44 = arith.constant 96 : index
    %115 = vector.load %arg9[%c6_43, %c96_44] : memref<16x128xf32, #tpu.memory_space<vmem>>, vector<2x32xf32>
    tpu.vector_store %arg9[%c6_43, %c96_44], %114 {strides = array<i32>} : memref<16x128xf32, #tpu.memory_space<vmem>>, vector<2x32xf32>,
    %116 = vector.extract_strided_slice %5 {offsets = [8, 0], sizes = [2, 256], strides = [1, 1]} : vector<16x256xf32> to vector<2x256xf32>
    %c0_45 = arith.constant 0 : index
    %c0_46 = arith.constant 0 : index
    %117 = vector.load %arg2[%c0_45, %c0_46] : memref<64x256xf32, #tpu.memory_space<vmem>>, vector<64x256xf32>
    %cst_47 = arith.constant dense<0.000000e+00> : vector<2x256xf32>
    %118 = tpu.matmul %107, %117, %cst_47 {dimension_numbers = #tpu.dot_dimension_numbers<[1], [0], [0], [1], [0, 0, 1, 1], [], []>} : vector<2x64xf32>, vector<64x256xf32>, vector<2x256xf32> -> vector<2x256xf32>
    %119 = arith.addf %116, %118 : vector<2x256xf32>
    %120 = arith.negf %119 : vector<2x256xf32>
    %121 = math.exp %120 : vector<2x256xf32>
    %cst_48 = arith.constant 1.000000e+00 : f32
    %122 = vector.broadcast %cst_48 : f32 to vector<2x256xf32>
    %123 = arith.addf %122, %121 : vector<2x256xf32>
    %124 = arith.divf %122, %123 : vector<2x256xf32>
    %125 = math.tanh %119 : vector<2x256xf32>
    %126 = vector.extract_strided_slice %124 {offsets = [0, 0], sizes = [2, 64], strides = [1, 1]} : vector<2x256xf32> to vector<2x64xf32>
    %127 = vector.extract_strided_slice %124 {offsets = [0, 64], sizes = [2, 64], strides = [1, 1]} : vector<2x256xf32> to vector<2x64xf32>
    %128 = vector.extract_strided_slice %125 {offsets = [0, 128], sizes = [2, 64], strides = [1, 1]} : vector<2x256xf32> to vector<2x64xf32>
    %129 = vector.extract_strided_slice %124 {offsets = [0, 192], sizes = [2, 64], strides = [1, 1]} : vector<2x256xf32> to vector<2x64xf32>
    %130 = arith.mulf %127, %105 : vector<2x64xf32>
    %131 = arith.mulf %126, %128 : vector<2x64xf32>
    %132 = arith.addf %130, %131 : vector<2x64xf32>
    %133 = math.tanh %132 : vector<2x64xf32>
    %134 = arith.mulf %129, %133 : vector<2x64xf32>
    %135 = vector.extract_strided_slice %134 {offsets = [0, 0], sizes = [2, 32], strides = [1, 1]} : vector<2x64xf32> to vector<2x32xf32>
    %c8_49 = arith.constant 8 : index
    %c0_50 = arith.constant 0 : index
    %136 = vector.load %arg9[%c8_49, %c0_50] : memref<16x128xf32, #tpu.memory_space<vmem>>, vector<2x32xf32>
    tpu.vector_store %arg9[%c8_49, %c0_50], %135 {strides = array<i32>} : memref<16x128xf32, #tpu.memory_space<vmem>>, vector<2x32xf32>,
    %137 = vector.extract_strided_slice %134 {offsets = [0, 32], sizes = [2, 32], strides = [1, 1]} : vector<2x64xf32> to vector<2x32xf32>
    %c6_51 = arith.constant 6 : index
    %c32_52 = arith.constant 32 : index
    %138 = vector.load %arg9[%c6_51, %c32_52] : memref<16x128xf32, #tpu.memory_space<vmem>>, vector<2x32xf32>
    tpu.vector_store %arg9[%c6_51, %c32_52], %137 {strides = array<i32>} : memref<16x128xf32, #tpu.memory_space<vmem>>, vector<2x32xf32>,
    %139 = vector.extract_strided_slice %134 {offsets = [0, 0], sizes = [2, 32], strides = [1, 1]} : vector<2x64xf32> to vector<2x32xf32>
    %c6_53 = arith.constant 6 : index
    %c64_54 = arith.constant 64 : index
    %140 = vector.load %arg9[%c6_53, %c64_54] : memref<16x128xf32, #tpu.memory_space<vmem>>, vector<2x32xf32>
    tpu.vector_store %arg9[%c6_53, %c64_54], %139 {strides = array<i32>} : memref<16x128xf32, #tpu.memory_space<vmem>>, vector<2x32xf32>,
    %141 = vector.extract_strided_slice %134 {offsets = [0, 32], sizes = [2, 32], strides = [1, 1]} : vector<2x64xf32> to vector<2x32xf32>
    %c8_55 = arith.constant 8 : index
    %c96_56 = arith.constant 96 : index
    %142 = vector.load %arg9[%c8_55, %c96_56] : memref<16x128xf32, #tpu.memory_space<vmem>>, vector<2x32xf32>
    tpu.vector_store %arg9[%c8_55, %c96_56], %141 {strides = array<i32>} : memref<16x128xf32, #tpu.memory_space<vmem>>, vector<2x32xf32>,
    %143 = vector.extract_strided_slice %5 {offsets = [10, 0], sizes = [2, 256], strides = [1, 1]} : vector<16x256xf32> to vector<2x256xf32>
    %c0_57 = arith.constant 0 : index
    %c0_58 = arith.constant 0 : index
    %144 = vector.load %arg2[%c0_57, %c0_58] : memref<64x256xf32, #tpu.memory_space<vmem>>, vector<64x256xf32>
    %cst_59 = arith.constant dense<0.000000e+00> : vector<2x256xf32>
    %145 = tpu.matmul %134, %144, %cst_59 {dimension_numbers = #tpu.dot_dimension_numbers<[1], [0], [0], [1], [0, 0, 1, 1], [], []>} : vector<2x64xf32>, vector<64x256xf32>, vector<2x256xf32> -> vector<2x256xf32>
    %146 = arith.addf %143, %145 : vector<2x256xf32>
    %147 = arith.negf %146 : vector<2x256xf32>
    %148 = math.exp %147 : vector<2x256xf32>
    %cst_60 = arith.constant 1.000000e+00 : f32
    %149 = vector.broadcast %cst_60 : f32 to vector<2x256xf32>
    %150 = arith.addf %149, %148 : vector<2x256xf32>
    %151 = arith.divf %149, %150 : vector<2x256xf32>
    %152 = math.tanh %146 : vector<2x256xf32>
    %153 = vector.extract_strided_slice %151 {offsets = [0, 0], sizes = [2, 64], strides = [1, 1]} : vector<2x256xf32> to vector<2x64xf32>
    %154 = vector.extract_strided_slice %151 {offsets = [0, 64], sizes = [2, 64], strides = [1, 1]} : vector<2x256xf32> to vector<2x64xf32>
    %155 = vector.extract_strided_slice %152 {offsets = [0, 128], sizes = [2, 64], strides = [1, 1]} : vector<2x256xf32> to vector<2x64xf32>
    %156 = vector.extract_strided_slice %151 {offsets = [0, 192], sizes = [2, 64], strides = [1, 1]} : vector<2x256xf32> to vector<2x64xf32>
    %157 = arith.mulf %154, %132 : vector<2x64xf32>
    %158 = arith.mulf %153, %155 : vector<2x64xf32>
    %159 = arith.addf %157, %158 : vector<2x64xf32>
    %160 = math.tanh %159 : vector<2x64xf32>
    %161 = arith.mulf %156, %160 : vector<2x64xf32>
    %162 = vector.extract_strided_slice %161 {offsets = [0, 0], sizes = [2, 32], strides = [1, 1]} : vector<2x64xf32> to vector<2x32xf32>
    %c10_61 = arith.constant 10 : index
    %c0_62 = arith.constant 0 : index
    %163 = vector.load %arg9[%c10_61, %c0_62] : memref<16x128xf32, #tpu.memory_space<vmem>>, vector<2x32xf32>
    tpu.vector_store %arg9[%c10_61, %c0_62], %162 {strides = array<i32>} : memref<16x128xf32, #tpu.memory_space<vmem>>, vector<2x32xf32>,
    %164 = vector.extract_strided_slice %161 {offsets = [0, 32], sizes = [2, 32], strides = [1, 1]} : vector<2x64xf32> to vector<2x32xf32>
    %c4_63 = arith.constant 4 : index
    %c32_64 = arith.constant 32 : index
    %165 = vector.load %arg9[%c4_63, %c32_64] : memref<16x128xf32, #tpu.memory_space<vmem>>, vector<2x32xf32>
    tpu.vector_store %arg9[%c4_63, %c32_64], %164 {strides = array<i32>} : memref<16x128xf32, #tpu.memory_space<vmem>>, vector<2x32xf32>,
    %166 = vector.extract_strided_slice %161 {offsets = [0, 0], sizes = [2, 32], strides = [1, 1]} : vector<2x64xf32> to vector<2x32xf32>
    %c4_65 = arith.constant 4 : index
    %c64_66 = arith.constant 64 : index
    %167 = vector.load %arg9[%c4_65, %c64_66] : memref<16x128xf32, #tpu.memory_space<vmem>>, vector<2x32xf32>
    tpu.vector_store %arg9[%c4_65, %c64_66], %166 {strides = array<i32>} : memref<16x128xf32, #tpu.memory_space<vmem>>, vector<2x32xf32>,
    %168 = vector.extract_strided_slice %161 {offsets = [0, 32], sizes = [2, 32], strides = [1, 1]} : vector<2x64xf32> to vector<2x32xf32>
    %c10_67 = arith.constant 10 : index
    %c96_68 = arith.constant 96 : index
    %169 = vector.load %arg9[%c10_67, %c96_68] : memref<16x128xf32, #tpu.memory_space<vmem>>, vector<2x32xf32>
    tpu.vector_store %arg9[%c10_67, %c96_68], %168 {strides = array<i32>} : memref<16x128xf32, #tpu.memory_space<vmem>>, vector<2x32xf32>,
    %170 = vector.extract_strided_slice %5 {offsets = [12, 0], sizes = [2, 256], strides = [1, 1]} : vector<16x256xf32> to vector<2x256xf32>
    %c0_69 = arith.constant 0 : index
    %c0_70 = arith.constant 0 : index
    %171 = vector.load %arg2[%c0_69, %c0_70] : memref<64x256xf32, #tpu.memory_space<vmem>>, vector<64x256xf32>
    %cst_71 = arith.constant dense<0.000000e+00> : vector<2x256xf32>
    %172 = tpu.matmul %161, %171, %cst_71 {dimension_numbers = #tpu.dot_dimension_numbers<[1], [0], [0], [1], [0, 0, 1, 1], [], []>} : vector<2x64xf32>, vector<64x256xf32>, vector<2x256xf32> -> vector<2x256xf32>
    %173 = arith.addf %170, %172 : vector<2x256xf32>
    %174 = arith.negf %173 : vector<2x256xf32>
    %175 = math.exp %174 : vector<2x256xf32>
    %cst_72 = arith.constant 1.000000e+00 : f32
    %176 = vector.broadcast %cst_72 : f32 to vector<2x256xf32>
    %177 = arith.addf %176, %175 : vector<2x256xf32>
    %178 = arith.divf %176, %177 : vector<2x256xf32>
    %179 = math.tanh %173 : vector<2x256xf32>
    %180 = vector.extract_strided_slice %178 {offsets = [0, 0], sizes = [2, 64], strides = [1, 1]} : vector<2x256xf32> to vector<2x64xf32>
    %181 = vector.extract_strided_slice %178 {offsets = [0, 64], sizes = [2, 64], strides = [1, 1]} : vector<2x256xf32> to vector<2x64xf32>
    %182 = vector.extract_strided_slice %179 {offsets = [0, 128], sizes = [2, 64], strides = [1, 1]} : vector<2x256xf32> to vector<2x64xf32>
    %183 = vector.extract_strided_slice %178 {offsets = [0, 192], sizes = [2, 64], strides = [1, 1]} : vector<2x256xf32> to vector<2x64xf32>
    %184 = arith.mulf %181, %159 : vector<2x64xf32>
    %185 = arith.mulf %180, %182 : vector<2x64xf32>
    %186 = arith.addf %184, %185 : vector<2x64xf32>
    %187 = math.tanh %186 : vector<2x64xf32>
    %188 = arith.mulf %183, %187 : vector<2x64xf32>
    %189 = vector.extract_strided_slice %188 {offsets = [0, 0], sizes = [2, 32], strides = [1, 1]} : vector<2x64xf32> to vector<2x32xf32>
    %c12_73 = arith.constant 12 : index
    %c0_74 = arith.constant 0 : index
    %190 = vector.load %arg9[%c12_73, %c0_74] : memref<16x128xf32, #tpu.memory_space<vmem>>, vector<2x32xf32>
    tpu.vector_store %arg9[%c12_73, %c0_74], %189 {strides = array<i32>} : memref<16x128xf32, #tpu.memory_space<vmem>>, vector<2x32xf32>,
    %191 = vector.extract_strided_slice %188 {offsets = [0, 32], sizes = [2, 32], strides = [1, 1]} : vector<2x64xf32> to vector<2x32xf32>
    %c2_75 = arith.constant 2 : index
    %c32_76 = arith.constant 32 : index
    %192 = vector.load %arg9[%c2_75, %c32_76] : memref<16x128xf32, #tpu.memory_space<vmem>>, vector<2x32xf32>
    tpu.vector_store %arg9[%c2_75, %c32_76], %191 {strides = array<i32>} : memref<16x128xf32, #tpu.memory_space<vmem>>, vector<2x32xf32>,
    %193 = vector.extract_strided_slice %188 {offsets = [0, 0], sizes = [2, 32], strides = [1, 1]} : vector<2x64xf32> to vector<2x32xf32>
    %c2_77 = arith.constant 2 : index
    %c64_78 = arith.constant 64 : index
    %194 = vector.load %arg9[%c2_77, %c64_78] : memref<16x128xf32, #tpu.memory_space<vmem>>, vector<2x32xf32>
    tpu.vector_store %arg9[%c2_77, %c64_78], %193 {strides = array<i32>} : memref<16x128xf32, #tpu.memory_space<vmem>>, vector<2x32xf32>,
    %195 = vector.extract_strided_slice %188 {offsets = [0, 32], sizes = [2, 32], strides = [1, 1]} : vector<2x64xf32> to vector<2x32xf32>
    %c12_79 = arith.constant 12 : index
    %c96_80 = arith.constant 96 : index
    %196 = vector.load %arg9[%c12_79, %c96_80] : memref<16x128xf32, #tpu.memory_space<vmem>>, vector<2x32xf32>
    tpu.vector_store %arg9[%c12_79, %c96_80], %195 {strides = array<i32>} : memref<16x128xf32, #tpu.memory_space<vmem>>, vector<2x32xf32>,
    %197 = vector.extract_strided_slice %5 {offsets = [14, 0], sizes = [2, 256], strides = [1, 1]} : vector<16x256xf32> to vector<2x256xf32>
    %c0_81 = arith.constant 0 : index
    %c0_82 = arith.constant 0 : index
    %198 = vector.load %arg2[%c0_81, %c0_82] : memref<64x256xf32, #tpu.memory_space<vmem>>, vector<64x256xf32>
    %cst_83 = arith.constant dense<0.000000e+00> : vector<2x256xf32>
    %199 = tpu.matmul %188, %198, %cst_83 {dimension_numbers = #tpu.dot_dimension_numbers<[1], [0], [0], [1], [0, 0, 1, 1], [], []>} : vector<2x64xf32>, vector<64x256xf32>, vector<2x256xf32> -> vector<2x256xf32>
    %200 = arith.addf %197, %199 : vector<2x256xf32>
    %201 = arith.negf %200 : vector<2x256xf32>
    %202 = math.exp %201 : vector<2x256xf32>
    %cst_84 = arith.constant 1.000000e+00 : f32
    %203 = vector.broadcast %cst_84 : f32 to vector<2x256xf32>
    %204 = arith.addf %203, %202 : vector<2x256xf32>
    %205 = arith.divf %203, %204 : vector<2x256xf32>
    %206 = math.tanh %200 : vector<2x256xf32>
    %207 = vector.extract_strided_slice %205 {offsets = [0, 0], sizes = [2, 64], strides = [1, 1]} : vector<2x256xf32> to vector<2x64xf32>
    %208 = vector.extract_strided_slice %205 {offsets = [0, 64], sizes = [2, 64], strides = [1, 1]} : vector<2x256xf32> to vector<2x64xf32>
    %209 = vector.extract_strided_slice %206 {offsets = [0, 128], sizes = [2, 64], strides = [1, 1]} : vector<2x256xf32> to vector<2x64xf32>
    %210 = vector.extract_strided_slice %205 {offsets = [0, 192], sizes = [2, 64], strides = [1, 1]} : vector<2x256xf32> to vector<2x64xf32>
    %211 = arith.mulf %208, %186 : vector<2x64xf32>
    %212 = arith.mulf %207, %209 : vector<2x64xf32>
    %213 = arith.addf %211, %212 : vector<2x64xf32>
    %214 = math.tanh %213 : vector<2x64xf32>
    %215 = arith.mulf %210, %214 : vector<2x64xf32>
    %216 = vector.extract_strided_slice %215 {offsets = [0, 0], sizes = [2, 32], strides = [1, 1]} : vector<2x64xf32> to vector<2x32xf32>
    %c14_85 = arith.constant 14 : index
    %c0_86 = arith.constant 0 : index
    %217 = vector.load %arg9[%c14_85, %c0_86] : memref<16x128xf32, #tpu.memory_space<vmem>>, vector<2x32xf32>
    tpu.vector_store %arg9[%c14_85, %c0_86], %216 {strides = array<i32>} : memref<16x128xf32, #tpu.memory_space<vmem>>, vector<2x32xf32>,
    %218 = vector.extract_strided_slice %215 {offsets = [0, 32], sizes = [2, 32], strides = [1, 1]} : vector<2x64xf32> to vector<2x32xf32>
    %c0_87 = arith.constant 0 : index
    %c32_88 = arith.constant 32 : index
    %219 = vector.load %arg9[%c0_87, %c32_88] : memref<16x128xf32, #tpu.memory_space<vmem>>, vector<2x32xf32>
    tpu.vector_store %arg9[%c0_87, %c32_88], %218 {strides = array<i32>} : memref<16x128xf32, #tpu.memory_space<vmem>>, vector<2x32xf32>,
    %220 = vector.extract_strided_slice %215 {offsets = [0, 0], sizes = [2, 32], strides = [1, 1]} : vector<2x64xf32> to vector<2x32xf32>
    %c0_89 = arith.constant 0 : index
    %c64_90 = arith.constant 64 : index
    %221 = vector.load %arg9[%c0_89, %c64_90] : memref<16x128xf32, #tpu.memory_space<vmem>>, vector<2x32xf32>
    tpu.vector_store %arg9[%c0_89, %c64_90], %220 {strides = array<i32>} : memref<16x128xf32, #tpu.memory_space<vmem>>, vector<2x32xf32>,
    %222 = vector.extract_strided_slice %215 {offsets = [0, 32], sizes = [2, 32], strides = [1, 1]} : vector<2x64xf32> to vector<2x32xf32>
    %c14_91 = arith.constant 14 : index
    %c96_92 = arith.constant 96 : index
    %223 = vector.load %arg9[%c14_91, %c96_92] : memref<16x128xf32, #tpu.memory_space<vmem>>, vector<2x32xf32>
    tpu.vector_store %arg9[%c14_91, %c96_92], %222 {strides = array<i32>} : memref<16x128xf32, #tpu.memory_space<vmem>>, vector<2x32xf32>,
    %c0_93 = arith.constant 0 : index
    %c0_94 = arith.constant 0 : index
    %224 = vector.load %arg9[%c0_93, %c0_94] : memref<16x128xf32, #tpu.memory_space<vmem>>, vector<16x128xf32>
    %c0_95 = arith.constant 0 : index
    %c0_96 = arith.constant 0 : index
    %225 = vector.load %arg4[%c0_95, %c0_96] : memref<128x256xf32, #tpu.memory_space<vmem>>, vector<128x256xf32>
    %cst_97 = arith.constant dense<0.000000e+00> : vector<16x256xf32>
    %226 = tpu.matmul %224, %225, %cst_97 {dimension_numbers = #tpu.dot_dimension_numbers<[1], [0], [0], [1], [0, 0, 1, 1], [], []>} : vector<16x128xf32>, vector<128x256xf32>, vector<16x256xf32> -> vector<16x256xf32>
    %c0_98 = arith.constant 0 : index
    %c0_99 = arith.constant 0 : index
    %227 = vector.load %arg6[%c0_98, %c0_99] : memref<1x256xf32, #tpu.memory_space<vmem>>, vector<1x256xf32>
    %228 = vector.broadcast %227 : vector<1x256xf32> to vector<16x256xf32>
    %229 = arith.addf %226, %228 : vector<16x256xf32>
    %cst_100 = arith.constant 0.000000e+00 : f32
    %230 = vector.broadcast %cst_100 : f32 to vector<2x64xf32>
    %cst_101 = arith.constant 0.000000e+00 : f32
    %231 = vector.broadcast %cst_101 : f32 to vector<2x64xf32>
    %232 = vector.extract_strided_slice %229 {offsets = [0, 0], sizes = [2, 256], strides = [1, 1]} : vector<16x256xf32> to vector<2x256xf32>
    %c0_102 = arith.constant 0 : index
    %c0_103 = arith.constant 0 : index
    %233 = vector.load %arg5[%c0_102, %c0_103] : memref<64x256xf32, #tpu.memory_space<vmem>>, vector<64x256xf32>
    %cst_104 = arith.constant dense<0.000000e+00> : vector<2x256xf32>
    %234 = tpu.matmul %230, %233, %cst_104 {dimension_numbers = #tpu.dot_dimension_numbers<[1], [0], [0], [1], [0, 0, 1, 1], [], []>} : vector<2x64xf32>, vector<64x256xf32>, vector<2x256xf32> -> vector<2x256xf32>
    %235 = arith.addf %232, %234 : vector<2x256xf32>
    %236 = arith.negf %235 : vector<2x256xf32>
    %237 = math.exp %236 : vector<2x256xf32>
    %cst_105 = arith.constant 1.000000e+00 : f32
    %238 = vector.broadcast %cst_105 : f32 to vector<2x256xf32>
    %239 = arith.addf %238, %237 : vector<2x256xf32>
    %240 = arith.divf %238, %239 : vector<2x256xf32>
    %241 = math.tanh %235 : vector<2x256xf32>
    %242 = vector.extract_strided_slice %240 {offsets = [0, 0], sizes = [2, 64], strides = [1, 1]} : vector<2x256xf32> to vector<2x64xf32>
    %243 = vector.extract_strided_slice %240 {offsets = [0, 64], sizes = [2, 64], strides = [1, 1]} : vector<2x256xf32> to vector<2x64xf32>
    %244 = vector.extract_strided_slice %241 {offsets = [0, 128], sizes = [2, 64], strides = [1, 1]} : vector<2x256xf32> to vector<2x64xf32>
    %245 = vector.extract_strided_slice %240 {offsets = [0, 192], sizes = [2, 64], strides = [1, 1]} : vector<2x256xf32> to vector<2x64xf32>
    %246 = arith.mulf %243, %231 : vector<2x64xf32>
    %247 = arith.mulf %242, %244 : vector<2x64xf32>
    %248 = arith.addf %246, %247 : vector<2x64xf32>
    %249 = math.tanh %248 : vector<2x64xf32>
    %250 = arith.mulf %245, %249 : vector<2x64xf32>
    %251 = vector.extract_strided_slice %250 {offsets = [0, 0], sizes = [2, 32], strides = [1, 1]} : vector<2x64xf32> to vector<2x32xf32>
    %c0_106 = arith.constant 0 : index
    %c0_107 = arith.constant 0 : index
    %252 = vector.load %arg10[%c0_106, %c0_107] : memref<16x64xf32, #tpu.memory_space<vmem>>, vector<2x32xf32>
    tpu.vector_store %arg10[%c0_106, %c0_107], %251 {strides = array<i32>} : memref<16x64xf32, #tpu.memory_space<vmem>>, vector<2x32xf32>,
    %253 = vector.extract_strided_slice %250 {offsets = [0, 32], sizes = [2, 32], strides = [1, 1]} : vector<2x64xf32> to vector<2x32xf32>
    %c14_108 = arith.constant 14 : index
    %c32_109 = arith.constant 32 : index
    %254 = vector.load %arg10[%c14_108, %c32_109] : memref<16x64xf32, #tpu.memory_space<vmem>>, vector<2x32xf32>
    tpu.vector_store %arg10[%c14_108, %c32_109], %253 {strides = array<i32>} : memref<16x64xf32, #tpu.memory_space<vmem>>, vector<2x32xf32>,
    %255 = vector.extract_strided_slice %229 {offsets = [2, 0], sizes = [2, 256], strides = [1, 1]} : vector<16x256xf32> to vector<2x256xf32>
    %c0_110 = arith.constant 0 : index
    %c0_111 = arith.constant 0 : index
    %256 = vector.load %arg5[%c0_110, %c0_111] : memref<64x256xf32, #tpu.memory_space<vmem>>, vector<64x256xf32>
    %cst_112 = arith.constant dense<0.000000e+00> : vector<2x256xf32>
    %257 = tpu.matmul %250, %256, %cst_112 {dimension_numbers = #tpu.dot_dimension_numbers<[1], [0], [0], [1], [0, 0, 1, 1], [], []>} : vector<2x64xf32>, vector<64x256xf32>, vector<2x256xf32> -> vector<2x256xf32>
    %258 = arith.addf %255, %257 : vector<2x256xf32>
    %259 = arith.negf %258 : vector<2x256xf32>
    %260 = math.exp %259 : vector<2x256xf32>
    %cst_113 = arith.constant 1.000000e+00 : f32
    %261 = vector.broadcast %cst_113 : f32 to vector<2x256xf32>
    %262 = arith.addf %261, %260 : vector<2x256xf32>
    %263 = arith.divf %261, %262 : vector<2x256xf32>
    %264 = math.tanh %258 : vector<2x256xf32>
    %265 = vector.extract_strided_slice %263 {offsets = [0, 0], sizes = [2, 64], strides = [1, 1]} : vector<2x256xf32> to vector<2x64xf32>
    %266 = vector.extract_strided_slice %263 {offsets = [0, 64], sizes = [2, 64], strides = [1, 1]} : vector<2x256xf32> to vector<2x64xf32>
    %267 = vector.extract_strided_slice %264 {offsets = [0, 128], sizes = [2, 64], strides = [1, 1]} : vector<2x256xf32> to vector<2x64xf32>
    %268 = vector.extract_strided_slice %263 {offsets = [0, 192], sizes = [2, 64], strides = [1, 1]} : vector<2x256xf32> to vector<2x64xf32>
    %269 = arith.mulf %266, %248 : vector<2x64xf32>
    %270 = arith.mulf %265, %267 : vector<2x64xf32>
    %271 = arith.addf %269, %270 : vector<2x64xf32>
    %272 = math.tanh %271 : vector<2x64xf32>
    %273 = arith.mulf %268, %272 : vector<2x64xf32>
    %274 = vector.extract_strided_slice %273 {offsets = [0, 0], sizes = [2, 32], strides = [1, 1]} : vector<2x64xf32> to vector<2x32xf32>
    %c2_114 = arith.constant 2 : index
    %c0_115 = arith.constant 0 : index
    %275 = vector.load %arg10[%c2_114, %c0_115] : memref<16x64xf32, #tpu.memory_space<vmem>>, vector<2x32xf32>
    tpu.vector_store %arg10[%c2_114, %c0_115], %274 {strides = array<i32>} : memref<16x64xf32, #tpu.memory_space<vmem>>, vector<2x32xf32>,
    %276 = vector.extract_strided_slice %273 {offsets = [0, 32], sizes = [2, 32], strides = [1, 1]} : vector<2x64xf32> to vector<2x32xf32>
    %c12_116 = arith.constant 12 : index
    %c32_117 = arith.constant 32 : index
    %277 = vector.load %arg10[%c12_116, %c32_117] : memref<16x64xf32, #tpu.memory_space<vmem>>, vector<2x32xf32>
    tpu.vector_store %arg10[%c12_116, %c32_117], %276 {strides = array<i32>} : memref<16x64xf32, #tpu.memory_space<vmem>>, vector<2x32xf32>,
    %278 = vector.extract_strided_slice %229 {offsets = [4, 0], sizes = [2, 256], strides = [1, 1]} : vector<16x256xf32> to vector<2x256xf32>
    %c0_118 = arith.constant 0 : index
    %c0_119 = arith.constant 0 : index
    %279 = vector.load %arg5[%c0_118, %c0_119] : memref<64x256xf32, #tpu.memory_space<vmem>>, vector<64x256xf32>
    %cst_120 = arith.constant dense<0.000000e+00> : vector<2x256xf32>
    %280 = tpu.matmul %273, %279, %cst_120 {dimension_numbers = #tpu.dot_dimension_numbers<[1], [0], [0], [1], [0, 0, 1, 1], [], []>} : vector<2x64xf32>, vector<64x256xf32>, vector<2x256xf32> -> vector<2x256xf32>
    %281 = arith.addf %278, %280 : vector<2x256xf32>
    %282 = arith.negf %281 : vector<2x256xf32>
    %283 = math.exp %282 : vector<2x256xf32>
    %cst_121 = arith.constant 1.000000e+00 : f32
    %284 = vector.broadcast %cst_121 : f32 to vector<2x256xf32>
    %285 = arith.addf %284, %283 : vector<2x256xf32>
    %286 = arith.divf %284, %285 : vector<2x256xf32>
    %287 = math.tanh %281 : vector<2x256xf32>
    %288 = vector.extract_strided_slice %286 {offsets = [0, 0], sizes = [2, 64], strides = [1, 1]} : vector<2x256xf32> to vector<2x64xf32>
    %289 = vector.extract_strided_slice %286 {offsets = [0, 64], sizes = [2, 64], strides = [1, 1]} : vector<2x256xf32> to vector<2x64xf32>
    %290 = vector.extract_strided_slice %287 {offsets = [0, 128], sizes = [2, 64], strides = [1, 1]} : vector<2x256xf32> to vector<2x64xf32>
    %291 = vector.extract_strided_slice %286 {offsets = [0, 192], sizes = [2, 64], strides = [1, 1]} : vector<2x256xf32> to vector<2x64xf32>
    %292 = arith.mulf %289, %271 : vector<2x64xf32>
    %293 = arith.mulf %288, %290 : vector<2x64xf32>
    %294 = arith.addf %292, %293 : vector<2x64xf32>
    %295 = math.tanh %294 : vector<2x64xf32>
    %296 = arith.mulf %291, %295 : vector<2x64xf32>
    %297 = vector.extract_strided_slice %296 {offsets = [0, 0], sizes = [2, 32], strides = [1, 1]} : vector<2x64xf32> to vector<2x32xf32>
    %c4_122 = arith.constant 4 : index
    %c0_123 = arith.constant 0 : index
    %298 = vector.load %arg10[%c4_122, %c0_123] : memref<16x64xf32, #tpu.memory_space<vmem>>, vector<2x32xf32>
    tpu.vector_store %arg10[%c4_122, %c0_123], %297 {strides = array<i32>} : memref<16x64xf32, #tpu.memory_space<vmem>>, vector<2x32xf32>,
    %299 = vector.extract_strided_slice %296 {offsets = [0, 32], sizes = [2, 32], strides = [1, 1]} : vector<2x64xf32> to vector<2x32xf32>
    %c10_124 = arith.constant 10 : index
    %c32_125 = arith.constant 32 : index
    %300 = vector.load %arg10[%c10_124, %c32_125] : memref<16x64xf32, #tpu.memory_space<vmem>>, vector<2x32xf32>
    tpu.vector_store %arg10[%c10_124, %c32_125], %299 {strides = array<i32>} : memref<16x64xf32, #tpu.memory_space<vmem>>, vector<2x32xf32>,
    %301 = vector.extract_strided_slice %229 {offsets = [6, 0], sizes = [2, 256], strides = [1, 1]} : vector<16x256xf32> to vector<2x256xf32>
    %c0_126 = arith.constant 0 : index
    %c0_127 = arith.constant 0 : index
    %302 = vector.load %arg5[%c0_126, %c0_127] : memref<64x256xf32, #tpu.memory_space<vmem>>, vector<64x256xf32>
    %cst_128 = arith.constant dense<0.000000e+00> : vector<2x256xf32>
    %303 = tpu.matmul %296, %302, %cst_128 {dimension_numbers = #tpu.dot_dimension_numbers<[1], [0], [0], [1], [0, 0, 1, 1], [], []>} : vector<2x64xf32>, vector<64x256xf32>, vector<2x256xf32> -> vector<2x256xf32>
    %304 = arith.addf %301, %303 : vector<2x256xf32>
    %305 = arith.negf %304 : vector<2x256xf32>
    %306 = math.exp %305 : vector<2x256xf32>
    %cst_129 = arith.constant 1.000000e+00 : f32
    %307 = vector.broadcast %cst_129 : f32 to vector<2x256xf32>
    %308 = arith.addf %307, %306 : vector<2x256xf32>
    %309 = arith.divf %307, %308 : vector<2x256xf32>
    %310 = math.tanh %304 : vector<2x256xf32>
    %311 = vector.extract_strided_slice %309 {offsets = [0, 0], sizes = [2, 64], strides = [1, 1]} : vector<2x256xf32> to vector<2x64xf32>
    %312 = vector.extract_strided_slice %309 {offsets = [0, 64], sizes = [2, 64], strides = [1, 1]} : vector<2x256xf32> to vector<2x64xf32>
    %313 = vector.extract_strided_slice %310 {offsets = [0, 128], sizes = [2, 64], strides = [1, 1]} : vector<2x256xf32> to vector<2x64xf32>
    %314 = vector.extract_strided_slice %309 {offsets = [0, 192], sizes = [2, 64], strides = [1, 1]} : vector<2x256xf32> to vector<2x64xf32>
    %315 = arith.mulf %312, %294 : vector<2x64xf32>
    %316 = arith.mulf %311, %313 : vector<2x64xf32>
    %317 = arith.addf %315, %316 : vector<2x64xf32>
    %318 = math.tanh %317 : vector<2x64xf32>
    %319 = arith.mulf %314, %318 : vector<2x64xf32>
    %320 = vector.extract_strided_slice %319 {offsets = [0, 0], sizes = [2, 32], strides = [1, 1]} : vector<2x64xf32> to vector<2x32xf32>
    %c6_130 = arith.constant 6 : index
    %c0_131 = arith.constant 0 : index
    %321 = vector.load %arg10[%c6_130, %c0_131] : memref<16x64xf32, #tpu.memory_space<vmem>>, vector<2x32xf32>
    tpu.vector_store %arg10[%c6_130, %c0_131], %320 {strides = array<i32>} : memref<16x64xf32, #tpu.memory_space<vmem>>, vector<2x32xf32>,
    %322 = vector.extract_strided_slice %319 {offsets = [0, 32], sizes = [2, 32], strides = [1, 1]} : vector<2x64xf32> to vector<2x32xf32>
    %c8_132 = arith.constant 8 : index
    %c32_133 = arith.constant 32 : index
    %323 = vector.load %arg10[%c8_132, %c32_133] : memref<16x64xf32, #tpu.memory_space<vmem>>, vector<2x32xf32>
    tpu.vector_store %arg10[%c8_132, %c32_133], %322 {strides = array<i32>} : memref<16x64xf32, #tpu.memory_space<vmem>>, vector<2x32xf32>,
    %324 = vector.extract_strided_slice %229 {offsets = [8, 0], sizes = [2, 256], strides = [1, 1]} : vector<16x256xf32> to vector<2x256xf32>
    %c0_134 = arith.constant 0 : index
    %c0_135 = arith.constant 0 : index
    %325 = vector.load %arg5[%c0_134, %c0_135] : memref<64x256xf32, #tpu.memory_space<vmem>>, vector<64x256xf32>
    %cst_136 = arith.constant dense<0.000000e+00> : vector<2x256xf32>
    %326 = tpu.matmul %319, %325, %cst_136 {dimension_numbers = #tpu.dot_dimension_numbers<[1], [0], [0], [1], [0, 0, 1, 1], [], []>} : vector<2x64xf32>, vector<64x256xf32>, vector<2x256xf32> -> vector<2x256xf32>
    %327 = arith.addf %324, %326 : vector<2x256xf32>
    %328 = arith.negf %327 : vector<2x256xf32>
    %329 = math.exp %328 : vector<2x256xf32>
    %cst_137 = arith.constant 1.000000e+00 : f32
    %330 = vector.broadcast %cst_137 : f32 to vector<2x256xf32>
    %331 = arith.addf %330, %329 : vector<2x256xf32>
    %332 = arith.divf %330, %331 : vector<2x256xf32>
    %333 = math.tanh %327 : vector<2x256xf32>
    %334 = vector.extract_strided_slice %332 {offsets = [0, 0], sizes = [2, 64], strides = [1, 1]} : vector<2x256xf32> to vector<2x64xf32>
    %335 = vector.extract_strided_slice %332 {offsets = [0, 64], sizes = [2, 64], strides = [1, 1]} : vector<2x256xf32> to vector<2x64xf32>
    %336 = vector.extract_strided_slice %333 {offsets = [0, 128], sizes = [2, 64], strides = [1, 1]} : vector<2x256xf32> to vector<2x64xf32>
    %337 = vector.extract_strided_slice %332 {offsets = [0, 192], sizes = [2, 64], strides = [1, 1]} : vector<2x256xf32> to vector<2x64xf32>
    %338 = arith.mulf %335, %317 : vector<2x64xf32>
    %339 = arith.mulf %334, %336 : vector<2x64xf32>
    %340 = arith.addf %338, %339 : vector<2x64xf32>
    %341 = math.tanh %340 : vector<2x64xf32>
    %342 = arith.mulf %337, %341 : vector<2x64xf32>
    %343 = vector.extract_strided_slice %342 {offsets = [0, 0], sizes = [2, 32], strides = [1, 1]} : vector<2x64xf32> to vector<2x32xf32>
    %c8_138 = arith.constant 8 : index
    %c0_139 = arith.constant 0 : index
    %344 = vector.load %arg10[%c8_138, %c0_139] : memref<16x64xf32, #tpu.memory_space<vmem>>, vector<2x32xf32>
    tpu.vector_store %arg10[%c8_138, %c0_139], %343 {strides = array<i32>} : memref<16x64xf32, #tpu.memory_space<vmem>>, vector<2x32xf32>,
    %345 = vector.extract_strided_slice %342 {offsets = [0, 32], sizes = [2, 32], strides = [1, 1]} : vector<2x64xf32> to vector<2x32xf32>
    %c6_140 = arith.constant 6 : index
    %c32_141 = arith.constant 32 : index
    %346 = vector.load %arg10[%c6_140, %c32_141] : memref<16x64xf32, #tpu.memory_space<vmem>>, vector<2x32xf32>
    tpu.vector_store %arg10[%c6_140, %c32_141], %345 {strides = array<i32>} : memref<16x64xf32, #tpu.memory_space<vmem>>, vector<2x32xf32>,
    %347 = vector.extract_strided_slice %229 {offsets = [10, 0], sizes = [2, 256], strides = [1, 1]} : vector<16x256xf32> to vector<2x256xf32>
    %c0_142 = arith.constant 0 : index
    %c0_143 = arith.constant 0 : index
    %348 = vector.load %arg5[%c0_142, %c0_143] : memref<64x256xf32, #tpu.memory_space<vmem>>, vector<64x256xf32>
    %cst_144 = arith.constant dense<0.000000e+00> : vector<2x256xf32>
    %349 = tpu.matmul %342, %348, %cst_144 {dimension_numbers = #tpu.dot_dimension_numbers<[1], [0], [0], [1], [0, 0, 1, 1], [], []>} : vector<2x64xf32>, vector<64x256xf32>, vector<2x256xf32> -> vector<2x256xf32>
    %350 = arith.addf %347, %349 : vector<2x256xf32>
    %351 = arith.negf %350 : vector<2x256xf32>
    %352 = math.exp %351 : vector<2x256xf32>
    %cst_145 = arith.constant 1.000000e+00 : f32
    %353 = vector.broadcast %cst_145 : f32 to vector<2x256xf32>
    %354 = arith.addf %353, %352 : vector<2x256xf32>
    %355 = arith.divf %353, %354 : vector<2x256xf32>
    %356 = math.tanh %350 : vector<2x256xf32>
    %357 = vector.extract_strided_slice %355 {offsets = [0, 0], sizes = [2, 64], strides = [1, 1]} : vector<2x256xf32> to vector<2x64xf32>
    %358 = vector.extract_strided_slice %355 {offsets = [0, 64], sizes = [2, 64], strides = [1, 1]} : vector<2x256xf32> to vector<2x64xf32>
    %359 = vector.extract_strided_slice %356 {offsets = [0, 128], sizes = [2, 64], strides = [1, 1]} : vector<2x256xf32> to vector<2x64xf32>
    %360 = vector.extract_strided_slice %355 {offsets = [0, 192], sizes = [2, 64], strides = [1, 1]} : vector<2x256xf32> to vector<2x64xf32>
    %361 = arith.mulf %358, %340 : vector<2x64xf32>
    %362 = arith.mulf %357, %359 : vector<2x64xf32>
    %363 = arith.addf %361, %362 : vector<2x64xf32>
    %364 = math.tanh %363 : vector<2x64xf32>
    %365 = arith.mulf %360, %364 : vector<2x64xf32>
    %366 = vector.extract_strided_slice %365 {offsets = [0, 0], sizes = [2, 32], strides = [1, 1]} : vector<2x64xf32> to vector<2x32xf32>
    %c10_146 = arith.constant 10 : index
    %c0_147 = arith.constant 0 : index
    %367 = vector.load %arg10[%c10_146, %c0_147] : memref<16x64xf32, #tpu.memory_space<vmem>>, vector<2x32xf32>
    tpu.vector_store %arg10[%c10_146, %c0_147], %366 {strides = array<i32>} : memref<16x64xf32, #tpu.memory_space<vmem>>, vector<2x32xf32>,
    %368 = vector.extract_strided_slice %365 {offsets = [0, 32], sizes = [2, 32], strides = [1, 1]} : vector<2x64xf32> to vector<2x32xf32>
    %c4_148 = arith.constant 4 : index
    %c32_149 = arith.constant 32 : index
    %369 = vector.load %arg10[%c4_148, %c32_149] : memref<16x64xf32, #tpu.memory_space<vmem>>, vector<2x32xf32>
    tpu.vector_store %arg10[%c4_148, %c32_149], %368 {strides = array<i32>} : memref<16x64xf32, #tpu.memory_space<vmem>>, vector<2x32xf32>,
    %370 = vector.extract_strided_slice %229 {offsets = [12, 0], sizes = [2, 256], strides = [1, 1]} : vector<16x256xf32> to vector<2x256xf32>
    %c0_150 = arith.constant 0 : index
    %c0_151 = arith.constant 0 : index
    %371 = vector.load %arg5[%c0_150, %c0_151] : memref<64x256xf32, #tpu.memory_space<vmem>>, vector<64x256xf32>
    %cst_152 = arith.constant dense<0.000000e+00> : vector<2x256xf32>
    %372 = tpu.matmul %365, %371, %cst_152 {dimension_numbers = #tpu.dot_dimension_numbers<[1], [0], [0], [1], [0, 0, 1, 1], [], []>} : vector<2x64xf32>, vector<64x256xf32>, vector<2x256xf32> -> vector<2x256xf32>
    %373 = arith.addf %370, %372 : vector<2x256xf32>
    %374 = arith.negf %373 : vector<2x256xf32>
    %375 = math.exp %374 : vector<2x256xf32>
    %cst_153 = arith.constant 1.000000e+00 : f32
    %376 = vector.broadcast %cst_153 : f32 to vector<2x256xf32>
    %377 = arith.addf %376, %375 : vector<2x256xf32>
    %378 = arith.divf %376, %377 : vector<2x256xf32>
    %379 = math.tanh %373 : vector<2x256xf32>
    %380 = vector.extract_strided_slice %378 {offsets = [0, 0], sizes = [2, 64], strides = [1, 1]} : vector<2x256xf32> to vector<2x64xf32>
    %381 = vector.extract_strided_slice %378 {offsets = [0, 64], sizes = [2, 64], strides = [1, 1]} : vector<2x256xf32> to vector<2x64xf32>
    %382 = vector.extract_strided_slice %379 {offsets = [0, 128], sizes = [2, 64], strides = [1, 1]} : vector<2x256xf32> to vector<2x64xf32>
    %383 = vector.extract_strided_slice %378 {offsets = [0, 192], sizes = [2, 64], strides = [1, 1]} : vector<2x256xf32> to vector<2x64xf32>
    %384 = arith.mulf %381, %363 : vector<2x64xf32>
    %385 = arith.mulf %380, %382 : vector<2x64xf32>
    %386 = arith.addf %384, %385 : vector<2x64xf32>
    %387 = math.tanh %386 : vector<2x64xf32>
    %388 = arith.mulf %383, %387 : vector<2x64xf32>
    %389 = vector.extract_strided_slice %388 {offsets = [0, 0], sizes = [2, 32], strides = [1, 1]} : vector<2x64xf32> to vector<2x32xf32>
    %c12_154 = arith.constant 12 : index
    %c0_155 = arith.constant 0 : index
    %390 = vector.load %arg10[%c12_154, %c0_155] : memref<16x64xf32, #tpu.memory_space<vmem>>, vector<2x32xf32>
    tpu.vector_store %arg10[%c12_154, %c0_155], %389 {strides = array<i32>} : memref<16x64xf32, #tpu.memory_space<vmem>>, vector<2x32xf32>,
    %391 = vector.extract_strided_slice %388 {offsets = [0, 32], sizes = [2, 32], strides = [1, 1]} : vector<2x64xf32> to vector<2x32xf32>
    %c2_156 = arith.constant 2 : index
    %c32_157 = arith.constant 32 : index
    %392 = vector.load %arg10[%c2_156, %c32_157] : memref<16x64xf32, #tpu.memory_space<vmem>>, vector<2x32xf32>
    tpu.vector_store %arg10[%c2_156, %c32_157], %391 {strides = array<i32>} : memref<16x64xf32, #tpu.memory_space<vmem>>, vector<2x32xf32>,
    %393 = vector.extract_strided_slice %229 {offsets = [14, 0], sizes = [2, 256], strides = [1, 1]} : vector<16x256xf32> to vector<2x256xf32>
    %c0_158 = arith.constant 0 : index
    %c0_159 = arith.constant 0 : index
    %394 = vector.load %arg5[%c0_158, %c0_159] : memref<64x256xf32, #tpu.memory_space<vmem>>, vector<64x256xf32>
    %cst_160 = arith.constant dense<0.000000e+00> : vector<2x256xf32>
    %395 = tpu.matmul %388, %394, %cst_160 {dimension_numbers = #tpu.dot_dimension_numbers<[1], [0], [0], [1], [0, 0, 1, 1], [], []>} : vector<2x64xf32>, vector<64x256xf32>, vector<2x256xf32> -> vector<2x256xf32>
    %396 = arith.addf %393, %395 : vector<2x256xf32>
    %397 = arith.negf %396 : vector<2x256xf32>
    %398 = math.exp %397 : vector<2x256xf32>
    %cst_161 = arith.constant 1.000000e+00 : f32
    %399 = vector.broadcast %cst_161 : f32 to vector<2x256xf32>
    %400 = arith.addf %399, %398 : vector<2x256xf32>
    %401 = arith.divf %399, %400 : vector<2x256xf32>
    %402 = math.tanh %396 : vector<2x256xf32>
    %403 = vector.extract_strided_slice %401 {offsets = [0, 0], sizes = [2, 64], strides = [1, 1]} : vector<2x256xf32> to vector<2x64xf32>
    %404 = vector.extract_strided_slice %401 {offsets = [0, 64], sizes = [2, 64], strides = [1, 1]} : vector<2x256xf32> to vector<2x64xf32>
    %405 = vector.extract_strided_slice %402 {offsets = [0, 128], sizes = [2, 64], strides = [1, 1]} : vector<2x256xf32> to vector<2x64xf32>
    %406 = vector.extract_strided_slice %401 {offsets = [0, 192], sizes = [2, 64], strides = [1, 1]} : vector<2x256xf32> to vector<2x64xf32>
    %407 = arith.mulf %404, %386 : vector<2x64xf32>
    %408 = arith.mulf %403, %405 : vector<2x64xf32>
    %409 = arith.addf %407, %408 : vector<2x64xf32>
    %410 = math.tanh %409 : vector<2x64xf32>
    %411 = arith.mulf %406, %410 : vector<2x64xf32>
    %412 = vector.extract_strided_slice %411 {offsets = [0, 0], sizes = [2, 32], strides = [1, 1]} : vector<2x64xf32> to vector<2x32xf32>
    %c14_162 = arith.constant 14 : index
    %c0_163 = arith.constant 0 : index
    %413 = vector.load %arg10[%c14_162, %c0_163] : memref<16x64xf32, #tpu.memory_space<vmem>>, vector<2x32xf32>
    tpu.vector_store %arg10[%c14_162, %c0_163], %412 {strides = array<i32>} : memref<16x64xf32, #tpu.memory_space<vmem>>, vector<2x32xf32>,
    %414 = vector.extract_strided_slice %411 {offsets = [0, 32], sizes = [2, 32], strides = [1, 1]} : vector<2x64xf32> to vector<2x32xf32>
    %c0_164 = arith.constant 0 : index
    %c32_165 = arith.constant 32 : index
    %415 = vector.load %arg10[%c0_164, %c32_165] : memref<16x64xf32, #tpu.memory_space<vmem>>, vector<2x32xf32>
    tpu.vector_store %arg10[%c0_164, %c32_165], %414 {strides = array<i32>} : memref<16x64xf32, #tpu.memory_space<vmem>>, vector<2x32xf32>,
    %c0_166 = arith.constant 0 : index
    %c0_167 = arith.constant 0 : index
    %416 = vector.load %arg10[%c0_166, %c0_167] : memref<16x64xf32, #tpu.memory_space<vmem>>, vector<16x64xf32>
    %c0_168 = arith.constant 0 : index
    %c0_169 = arith.constant 0 : index
    %417 = vector.load %arg7[%c0_168, %c0_169] : memref<64x3xf32, #tpu.memory_space<vmem>>, vector<64x3xf32>
    %cst_170 = arith.constant dense<0.000000e+00> : vector<16x3xf32>
    %418 = tpu.matmul %416, %417, %cst_170 {dimension_numbers = #tpu.dot_dimension_numbers<[1], [0], [0], [1], [0, 0, 1, 1], [], []>} : vector<16x64xf32>, vector<64x3xf32>, vector<16x3xf32> -> vector<16x3xf32>
    %419 = arith.negf %418 : vector<16x3xf32>
    %420 = math.exp %419 : vector<16x3xf32>
    %cst_171 = arith.constant 1.000000e+00 : f32
    %421 = vector.broadcast %cst_171 : f32 to vector<16x3xf32>
    %422 = arith.addf %421, %420 : vector<16x3xf32>
    %423 = arith.divf %421, %422 : vector<16x3xf32>
    %c0_172 = arith.constant 0 : index
    %c0_173 = arith.constant 0 : index
    %424 = vector.load %arg8[%c0_172, %c0_173] : memref<16x3xf32, #tpu.memory_space<vmem>>, vector<16x3xf32>
    tpu.vector_store %arg8[%c0_172, %c0_173], %423 {strides = array<i32>} : memref<16x3xf32, #tpu.memory_space<vmem>>, vector<16x3xf32>,
    return
  }
}

</mosaic_0001>

<bundles_post_ra>
// kernel: birnn_nopack_forward.1
= control target key start
LH: loop header
LB: loop body
LE: loop exit
PB: predicated region body
PF: predicated region fallthrough
CT: control target
= control target key end

     0   :  { %13 = vsyncpa [#allocation5], 0  ;;  %s3356_s0 = inlined_call_operand.vmem [shape: f32[16,32], index: 0, kind: input, shape index: {}]   ;;  %s3357_s1 = inlined_call_operand.vmem [shape: f32[32,256], index: 1, kind: input, shape index: {}]   ;;  %s3358_s2 = inlined_call_operand.hbm [shape: f32[64,256], index: 2, kind: input, shape index: {}]   ;;  %s3359_s3 = inlined_call_operand.vmem [shape: f32[1,256], index: 3, kind: input, shape index: {}]   ;;  %s3360_s4 = inlined_call_operand.hbm [shape: f32[128,256], index: 4, kind: input, shape index: {}]   ;;  %s3361_s5 = inlined_call_operand.hbm [shape: f32[64,256], index: 5, kind: input, shape index: {}]   ;;  %s3362_s6 = inlined_call_operand.vmem [shape: f32[1,256], index: 6, kind: input, shape index: {}]   ;;  %s3363_s7 = inlined_call_operand.vmem [shape: f32[64,3], index: 7, kind: input, shape index: {}]   ;;  %s3364_s8 = inlined_call_operand.vmem [shape: f32[16,3], index: 8, kind: output, shape index: {}]  }
   0x1   :  { %14 = vsyncpa [#allocation7], 0  ;;  %s38_s29 = sshll.u32 %s3360_s4, 4  ;;  %s2668_s30 = smov [#allocation6]   ;;  %s39_s29 = int_to_ptr.hbm [resolvable:$true] %s38_s29 }
   0x2   :  { %s40_s9 = sshll.u32 %s2668_s30, 4  ;;  %s23_s12 = sshll.u32 %s3358_s2, 4  ;;  %s41_s9 = int_to_ptr.vmem [resolvable:$true] %s40_s9  ;;  %s24_s12 = int_to_ptr.hbm [resolvable:$true] %s23_s12 }
   0x3   :  { %s2669_s13 = smov 256   ;;  %s2670_s14 = smov 16  }
   0x4   :  { %46 = dma.hbm_to_vmem [thread:$0]  %s39_s29, 4096, %s41_s9, [#allocation7], %s2669_s13, %s2669_s13, %s2670_s14  }
   0x5   :  { %s2671_s15 = smov [#allocation4]   ;;  %s51_s19 = sshll.u32 %s3361_s5, 4  ;;  %s52_s19 = int_to_ptr.hbm [resolvable:$true] %s51_s19 }
   0x6   :  { %s25_s16 = sshll.u32 %s2671_s15, 4  ;;  %s2672_s4 = smov [#allocation8]   ;;  %s26_s16 = int_to_ptr.vmem [resolvable:$true] %s25_s16 }
   0x7   :  { %31 = dma.hbm_to_vmem [thread:$0]  %s24_s12, 2048, %s26_s16, [#allocation5], %s2669_s13, %s2669_s13, %s2670_s14  }
   0x8   :  { %s53_s20 = sshll.u32 %s2672_s4, 4  ;;  %s54_s20 = int_to_ptr.vmem [resolvable:$true] %s53_s20 }
   0x9   :  { %59 = dma.hbm_to_vmem [thread:$0]  %s52_s19, 2048, %s54_s20, [#allocation7], %s2669_s13, %s2669_s13, %s2670_s14  }
   0xa   :  { %2664 = dma.done.wait [#allocation5], 2048  }
   0xb   :  { %2665 = vsyncadd [#allocation5], 4294965248 }
   0xc   :  { %2666 = dma.done.wait [#allocation7], 6144  }
   0xd   :  { %2667 = vsyncadd [#allocation7], 4294961152  ;;  %v2729_v0 = vld [vmem:[#allocation4 + $0x70] sm:$0xff]  ;;  %v2731_v1 = vld [vmem:[#allocation4 + $0x60] sm:$0xff]  ;;  %vm92_vm0 = vcmask 261120   ;;  %v2673_v18 = vmov 0.0  }
   0xe   :  { %173 = vmatpush.msra.mxu3 %v2729_v0  ;;  %425 = vmatpush.msra.mxu2 %v2729_v0  ;;  %v2735_v2 = vld [vmem:[#allocation4 + $0x50] sm:$0xff]  ;;  %v82_v4 = vld [vmem:[%s3357_s1 + $0x20] sm:$0xff]  ;;  %v85_v9 = vld [vmem:[%s3357_s1 + $0x38] sm:$0xff]  ;;  %vm259_vm9 = vcmask 254976   ;;  %vm161_vm10 = vcmask 523264   ;;  %vm261_vm11 = vcmask 517376  }
   0xf   :  { %v84_v3 = vld [vmem:[%s3357_s1 + $0x30] sm:$0xff]  ;;  %v2744_v5 = vld [vmem:[#allocation4 + $0x40] sm:$0xff]  ;;  %v83_v11 = vld [vmem:[%s3357_s1 + $0x28] sm:$0xff]  ;;  %134 = vmatpush.msra.mxu1 %v85_v9  ;;  %vm263_vm12 = vcmask 779776   ;;  %vm265_vm13 = vcmask 1042176  }
  0x10   :  { %174 = vmatpush.msra.mxu3 %v2731_v1  ;;  %111 = vmatpush.msra.mxu0 %v84_v3  ;;  %v80_v6 = vld [vmem:[%s3357_s1 + $0x10] sm:$0xff]  ;;  %v78_v8 = vld [vmem:[%s3357_s1] sm:$0xff]  ;;  %v81_v13 = vld [vmem:[%s3357_s1 + $0x18] sm:$0xff] }
  0x11   :  { %426 = vmatpush.msra.mxu2 %v2731_v1  ;;  %v2751_v7 = vld [vmem:[#allocation4 + $0x30] sm:$0xff]  ;;  %v76_v10 = vld [vmem:[%s3356_s0] sm:$0xff]  ;;  %135 = vmatpush.msra.mxu1 %v83_v11  ;;  %v79_v15 = vld [vmem:[%s3357_s1 + $0x8] sm:$0xff] }
  0x12   :  { %175 = vmatpush.msra.mxu3 %v2735_v2  ;;  %112 = vmatpush.msra.mxu0 %v82_v4  ;;  %v2767_v12 = vld [vmem:[#allocation4 + $0x20] sm:$0xff]  ;;  %v2774_v14 = vld [vmem:[#allocation4 + $0x10] sm:$0xff]  ;;  %v2787_v17 = vld [vmem:[#allocation4 + $0x78] sm:$0xff] }
  0x13   :  { %427 = vmatpush.msra.mxu2 %v2735_v2  ;;  %v2782_v16 = vld [vmem:[#allocation4] sm:$0xff]  ;;  %136 = vmatpush.msra.mxu1 %v81_v13  ;;  %v2793_v19 = vld [vmem:[#allocation4 + $0x68] sm:$0xff]  ;;  %v2798_v20 = vld [vmem:[#allocation4 + $0x58] sm:$0xff] }
  0x14   :  { %176 = vmatpush.msra.mxu3 %v2744_v5  ;;  %113 = vmatpush.msra.mxu0 %v80_v6  ;;  %v2804_v21 = vld [vmem:[#allocation4 + $0x48] sm:$0xff]  ;;  %v2810_v22 = vld [vmem:[#allocation4 + $0x38] sm:$0xff]  ;;  %v2875_v26 = vld [vmem:[%s3359_s3] sm:$0x3]  ;;  %s2674_s3 = smov 64  }
  0x15   :  { %428 = vmatpush.msra.mxu2 %v2744_v5  ;;  %137 = vmatpush.msra.mxu1 %v79_v15  ;;  %v2816_v23 = vld [vmem:[#allocation4 + $0x28] sm:$0xff]  ;;  %v2822_v24 = vld [vmem:[#allocation4 + $0x18] sm:$0xff]  ;;  %v88_v27 = vperm.slane %v2875_v26, 0  ;;  %v89_v35 = vperm.slane %v2875_v26, 1 }
  0x16   :  { %177 = vmatpush.msra.mxu3 %v2751_v7  ;;  %114 = vmatpush.msra.mxu0 %v78_v8  ;;  %v2828_v25 = vld [vmem:[#allocation4 + $0x8] sm:$0xff] }
  0x17   :  { %2317 = vmatmul.msk.f32.vlgmr.msra.gmra.mxu0 %vm92_vm0, %v76_v10  ;;  %429 = vmatpush.msra.mxu2 %v2751_v7  ;;  %v77_v55 = vld [vmem:[%s3356_s0 + $0x8] sm:$0xff] }
  0x18   :  { %178 = vmatpush.msra.mxu3 %v2767_v12  ;;  %293 = vmatpush.msrb.mxu0 %v2729_v0 }
  0x19   :  { %430 = vmatpush.msra.mxu2 %v2767_v12  ;;  %2319 = vmatmul.msk.f32.vlgmr.msra.gmra.mxu1 %vm92_vm0, %v76_v10 }
  0x1a   :  { %179 = vmatpush.msra.mxu3 %v2774_v14  ;;  %294 = vmatpush.msrb.mxu0 %v2731_v1 }
  0x1b   :  { %313 = vmatpush.msrb.mxu1 %v2787_v17  ;;  %431 = vmatpush.msra.mxu2 %v2774_v14 }
  0x1c   :  { %180 = vmatpush.msra.mxu3 %v2782_v16  ;;  %295 = vmatpush.msrb.mxu0 %v2735_v2 }
  0x1d   :  { %181 = vmatmul.f32.vlgmr.msra.gmra.mxu3 %v2673_v18  ;;  %314 = vmatpush.msrb.mxu1 %v2793_v19 }
  0x1e   :  { %193 = vmatpush.msrb.mxu3 %v2787_v17  ;;  %296 = vmatpush.msrb.mxu0 %v2744_v5 }
  0x1f   :  { %315 = vmatpush.msrb.mxu1 %v2798_v20  ;;  %432 = vmatpush.msra.mxu2 %v2782_v16 }
  0x20   :  { %194 = vmatpush.msrb.mxu3 %v2793_v19  ;;  %297 = vmatpush.msrb.mxu0 %v2751_v7 }
  0x21   :  { %316 = vmatpush.msrb.mxu1 %v2804_v21  ;;  %689 = vmatpush.msrb.mxu2 %v2729_v0 }
  0x22   :  { %195 = vmatpush.msrb.mxu3 %v2798_v20  ;;  %298 = vmatpush.msrb.mxu0 %v2767_v12 }
  0x23   :  { %317 = vmatpush.msrb.mxu1 %v2810_v22  ;;  %690 = vmatpush.msrb.mxu2 %v2731_v1 }
  0x24   :  { %196 = vmatpush.msrb.mxu3 %v2804_v21  ;;  %299 = vmatpush.msrb.mxu0 %v2774_v14 }
  0x25   :  { %318 = vmatpush.msrb.mxu1 %v2816_v23  ;;  %691 = vmatpush.msrb.mxu2 %v2735_v2 }
  0x26   :  { %197 = vmatpush.msrb.mxu3 %v2810_v22  ;;  %300 = vmatpush.msrb.mxu0 %v2782_v16 }
  0x27   :  { %319 = vmatpush.msrb.mxu1 %v2822_v24  ;;  %692 = vmatpush.msrb.mxu2 %v2744_v5 }
  0x28   :  { %198 = vmatpush.msrb.mxu3 %v2816_v23  ;;  %557 = vmatpush.msra.mxu0 %v2729_v0 }
  0x29   :  { %320 = vmatpush.msrb.mxu1 %v2828_v25  ;;  %693 = vmatpush.msrb.mxu2 %v2751_v7 }
  0x2a   :  { %199 = vmatpush.msrb.mxu3 %v2822_v24  ;;  %558 = vmatpush.msra.mxu0 %v2731_v1 }
  0x2b   :  { %577 = vmatpush.msra.mxu1 %v2787_v17  ;;  %694 = vmatpush.msrb.mxu2 %v2767_v12 }
  0x2c   :  { %200 = vmatpush.msrb.mxu3 %v2828_v25  ;;  %559 = vmatpush.msra.mxu0 %v2735_v2 }
  0x2d   :  { %201 = vmatmul.f32.vlgmr.msrb.gmra.mxu3 %v2673_v18  ;;  %578 = vmatpush.msra.mxu1 %v2793_v19 }
  0x2e   :  { %445 = vmatpush.msra.mxu3 %v2787_v17  ;;  %560 = vmatpush.msra.mxu0 %v2744_v5 }
  0x2f   :  { %579 = vmatpush.msra.mxu1 %v2798_v20  ;;  %695 = vmatpush.msrb.mxu2 %v2774_v14 }
  0x30   :  { %446 = vmatpush.msra.mxu3 %v2793_v19  ;;  %561 = vmatpush.msra.mxu0 %v2751_v7 }
  0x31   :  { %580 = vmatpush.msra.mxu1 %v2804_v21  ;;  %696 = vmatpush.msrb.mxu2 %v2782_v16 }
  0x32   :  { %447 = vmatpush.msra.mxu3 %v2798_v20  ;;  %562 = vmatpush.msra.mxu0 %v2767_v12 }
  0x33   :  { %581 = vmatpush.msra.mxu1 %v2810_v22  ;;  %2318 = vmatmul.msk.f32.gmra.mxu0 %vm92_vm0, %v77_v55 }
  0x34   :  { %448 = vmatpush.msra.mxu3 %v2804_v21  ;;  %563 = vmatpush.msra.mxu0 %v2774_v14 }
  0x35   :  { %582 = vmatpush.msra.mxu1 %v2816_v23 }
  0x36   :  { %449 = vmatpush.msra.mxu3 %v2810_v22  ;;  %564 = vmatpush.msra.mxu0 %v2782_v16 }
  0x37   :  { %583 = vmatpush.msra.mxu1 %v2822_v24 }
  0x38   :  { %450 = vmatpush.msra.mxu3 %v2816_v23  ;;  %2320 = vmatmul.msk.f32.gmra.mxu1 %vm92_vm0, %v77_v55 }
  0x39   :  { %584 = vmatpush.msra.mxu1 %v2828_v25 }
  0x3a   :  { %451 = vmatpush.msra.mxu3 %v2822_v24 }
  0x3c   :  { %452 = vmatpush.msra.mxu3 %v2828_v25 }
  0x3e   :  { %709 = vmatpush.msrb.mxu3 %v2787_v17 }
  0x40   :  { %710 = vmatpush.msrb.mxu3 %v2793_v19 }
  0x42   :  { %711 = vmatpush.msrb.mxu3 %v2798_v20 }
  0x44   :  { %712 = vmatpush.msrb.mxu3 %v2804_v21 }
  0x46   :  { %713 = vmatpush.msrb.mxu3 %v2810_v22 }
  0x48   :  { %714 = vmatpush.msrb.mxu3 %v2816_v23 }
  0x4a   :  { %715 = vmatpush.msrb.mxu3 %v2822_v24 }
  0x4c   :  { %716 = vmatpush.msrb.mxu3 %v2828_v25 }
  0x94   :  { %v116_v28 = vpop.f32.mrf.mxu0 }
  0x95   :  { %v2880_v29 = vadd.f32 %v116_v28, %v88_v27 }
  0x96   :  { %v139_v36 = vpop.f32.mrf.mxu1 }
  0x97   :  { %v2886_v37 = vadd.f32 %v139_v36, %v89_v35 }
  0xa0   :  { %v182_v30 = vpop.f32.mrf.mxu3 }
  0xa1   :  { %v205_v31 = vadd.f32 %v182_v30, %v2880_v29 }
  0xa3   :  { %v2321_v32 = vmul.f32 -1.442695, %v205_v31 }
  0xa5   :  { %2392 = vpow2.f32 %v2321_v32 }
  0xab   :  { %v2393_v33 = vpop.eup %2392 }
  0xac   :  { %v213_v34 = vadd.f32 1.0, %v2393_v33 }
  0xae   :  { %2394 = vrcp.f32 %v213_v34  ;;  %v226_v43 = vand.u32 2147483648, %v213_v34  ;;  %v224_v45 = vand.u32 2147483647, %v213_v34  ;;  %vm220_vm2 = vweird.f32 %v213_v34 }
  0xb0   :  { %v202_v38 = vpop.f32.mrf.mxu3  ;;  %v227_v48 = vor.u32 1.1754944e-38, %v226_v43  ;;  %vm225_vm4 = vcmp.eq.f32.partialorder %v224_v45, 8.507059e+37 }
  0xb1   :  { %v206_v40 = vadd.f32 %v202_v38, %v2886_v37 }
  0xb3   :  { %2396 = vtanh.f32 %v206_v40  ;;  %v2322_v52 = vmul.f32 -1.442695, %v206_v40 }
  0xb4   :  { %v2395_v39 = vpop.eup %2394 }
  0xb5   :  { %v216_v41 = vmul.f32 %v2395_v39, %v213_v34  ;;  %vm221_vm1 = vweird.f32 %v2395_v39  ;;  %2398 = vpow2.f32 %v2322_v52 }
  0xb6   :  { %vm222_vm3 = vmor %vm220_vm2, %vm221_vm1 }
  0xb7   :  { %v217_v42 = vsub.f32 1.0, %v216_v41 }
  0xb9   :  { %v218_v44 = vmul.f32 %v2395_v39, %v217_v42  ;;  %v2397_v47 = vpop.eup %2396 }
  0xbb   :  { %v219_v46 = vadd.f32 %v2395_v39, %v218_v44  ;;  %v2399_v53 = vpop.eup %2398 }
  0xbc   :  { %v214_v54 = vadd.f32 1.0, %v2399_v53 }
  0xbd   :  { %v223_v49 = vsel %vm222_vm3, %v2395_v39, %v219_v46 }
  0xbe   :  { %v228_v50 = vsel %vm225_vm4, %v227_v48, %v223_v49  ;;  %2400 = vrcp.f32 %v214_v54  ;;  %vm235_vm5 = vweird.f32 %v214_v54  ;;  %v241_v3 = vand.u32 2147483648, %v214_v54 }
  0xbf   :  { %v247_v51 = vmul.f32 %v2397_v47, %v228_v50  ;;  %v246_v60 = vmul.f32 0.0, %v228_v50  ;;  %v239_v4 = vand.u32 2147483647, %v214_v54 }
  0xc0   :  { %v242_v8 = vor.u32 1.1754944e-38, %v241_v3 }
  0xc1   :  { %249 = vrot.lane.b32.xlu0 %v247_v51, %s2674_s3  ;;  %vm240_vm8 = vcmp.eq.f32.partialorder %v239_v4, 8.507059e+37 }
  0xc4   :  { %v2401_v56 = vpop.eup %2400 }
  0xc5   :  { %v231_v57 = vmul.f32 %v2401_v56, %v214_v54  ;;  %vm236_vm6 = vweird.f32 %v2401_v56 }
  0xc6   :  { %vm237_vm7 = vmor %vm235_vm5, %vm236_vm6 }
  0xc7   :  { %v232_v58 = vsub.f32 1.0, %v231_v57 }
  0xc9   :  { %v233_v59 = vmul.f32 %v2401_v56, %v232_v58 }
  0xcb   :  { %v234_v63 = vadd.f32 %v2401_v56, %v233_v59 }
  0xcd   :  { %v238_v6 = vsel %vm237_vm7, %v2401_v56, %v234_v63 }
  0xce   :  { %v243_v10 = vsel %vm240_vm8, %v242_v8, %v238_v6 }
 0x133   :  { %v250_v61 = vpop.permute.xlu0 %249 }
 0x134   :  { %v2895_v62 = vadd.f32 %v250_v61, %v246_v60 }
 0x136   :  { %2402 = vtanh.f32 %v2895_v62  ;;  %v373_v31 = vrot.slane %v2895_v62, 6 }
 0x13c   :  { %v2403_v9 = vpop.eup %2402 }
 0x13d   :  { %v254_v11 = vmul.f32 %v2403_v9, %v243_v10 }
 0x13f   :  { %256 = vrot.lane.b32.xlu0 %v254_v11, %s2674_s3 }
 0x1b1   :  { %v257_v13 = vpop.permute.xlu0 %256 }
 0x1b2   :  { %260 = vst.msk [vmem:[#allocation2] sm:$0x3] %vm259_vm9, %v257_v13  ;;  %2323 = vmatmul.msk.f32.vlgmr.msrb.gmra.mxu0 %vm161_vm10, %v257_v13  ;;  %2324 = vmatmul.msk.f32.vlgmr.msrb.gmra.mxu1 %vm161_vm10, %v257_v13 }
 0x1b3   :  { %262 = vst.msk [vmem:[#allocation2 + $0xe] sm:$0x3] %vm261_vm11, %v257_v13  ;;  %808 = vmatpush.msrb.mxu0 %v2729_v0  ;;  %828 = vmatpush.msrb.mxu1 %v2787_v17  ;;  %v2921_v0 = vpop.f32.mrf.mxu0 }
 0x1b4   :  { %264 = vst.msk [vmem:[#allocation2 + $0xe] sm:$0x3] %vm263_vm12, %v254_v11 }
 0x1b5   :  { %809 = vmatpush.msrb.mxu0 %v2731_v1  ;;  %829 = vmatpush.msrb.mxu1 %v2793_v19  ;;  %266 = vst.msk [vmem:[#allocation2] sm:$0x3] %vm265_vm13, %v254_v11 }
 0x1b7   :  { %810 = vmatpush.msrb.mxu0 %v2735_v2  ;;  %830 = vmatpush.msrb.mxu1 %v2798_v20 }
 0x1b9   :  { %811 = vmatpush.msrb.mxu0 %v2744_v5  ;;  %831 = vmatpush.msrb.mxu1 %v2804_v21 }
 0x1bb   :  { %812 = vmatpush.msrb.mxu0 %v2751_v7  ;;  %832 = vmatpush.msrb.mxu1 %v2810_v22  ;;  %v2924_v7 = vpop.f32.mrf.mxu1 }
 0x1bd   :  { %813 = vmatpush.msrb.mxu0 %v2767_v12  ;;  %833 = vmatpush.msrb.mxu1 %v2816_v23 }
 0x1bf   :  { %814 = vmatpush.msrb.mxu0 %v2774_v14  ;;  %834 = vmatpush.msrb.mxu1 %v2822_v24 }
 0x1c1   :  { %815 = vmatpush.msrb.mxu0 %v2782_v16  ;;  %835 = vmatpush.msrb.mxu1 %v2828_v25 }
 0x22f   :  { %v302_v1 = vpop.f32.mrf.mxu0  ;;  %v322_v19 = vpop.f32.mrf.mxu1 }
 0x230   :  { %v327_v2 = vrot.slane %v302_v1, 6  ;;  %v328_v14 = vrot.slane %v322_v19, 6 }
 0x232   :  { %v331_v5 = vadd.f32 %v327_v2, %v2880_v29  ;;  %v332_v16 = vadd.f32 %v328_v14, %v2886_v37 }
 0x234   :  { %v2325_v15 = vmul.f32 -1.442695, %v331_v5  ;;  %v2326_v39 = vmul.f32 -1.442695, %v332_v16 }
 0x236   :  { %2404 = vpow2.f32 %v2325_v15 }
 0x23c   :  { %v2405_v12 = vpop.eup %2404 }
 0x23d   :  { %v339_v17 = vadd.f32 1.0, %v2405_v12 }
 0x23f   :  { %2406 = vrcp.f32 %v339_v17  ;;  %v352_v23 = vand.u32 2147483648, %v339_v17  ;;  %v350_v25 = vand.u32 2147483647, %v339_v17  ;;  %vm346_vm15 = vweird.f32 %v339_v17 }
 0x240   :  { %2408 = vtanh.f32 %v332_v16 }
 0x241   :  { %v353_v30 = vor.u32 1.1754944e-38, %v352_v23  ;;  %vm351_vm1 = vcmp.eq.f32.partialorder %v350_v25, 8.507059e+37  ;;  %2410 = vpow2.f32 %v2326_v39 }
 0x245   :  { %v2407_v20 = vpop.eup %2406 }
 0x246   :  { %v342_v21 = vmul.f32 %v2407_v20, %v339_v17  ;;  %vm347_vm14 = vweird.f32 %v2407_v20  ;;  %v2409_v33 = vpop.eup %2408 }
 0x247   :  { %vm348_vm0 = vmor %vm346_vm15, %vm347_vm14  ;;  %v2411_v40 = vpop.eup %2410 }
 0x248   :  { %v343_v22 = vsub.f32 1.0, %v342_v21  ;;  %v340_v41 = vadd.f32 1.0, %v2411_v40 }
 0x24a   :  { %v344_v24 = vmul.f32 %v2407_v20, %v343_v22  ;;  %2412 = vrcp.f32 %v340_v41  ;;  %v367_v49 = vand.u32 2147483648, %v340_v41  ;;  %vm361_vm3 = vweird.f32 %v340_v41 }
 0x24b   :  { %v365_v50 = vand.u32 2147483647, %v340_v41 }
 0x24c   :  { %v345_v28 = vadd.f32 %v2407_v20, %v344_v24  ;;  %v368_v52 = vor.u32 1.1754944e-38, %v367_v49 }
 0x24d   :  { %vm366_vm5 = vcmp.eq.f32.partialorder %v365_v50, 8.507059e+37 }
 0x24e   :  { %v349_v32 = vsel %vm348_vm0, %v2407_v20, %v345_v28 }
 0x24f   :  { %v354_v34 = vsel %vm351_vm1, %v353_v30, %v349_v32 }
 0x250   :  { %v376_v36 = vmul.f32 %v2409_v33, %v354_v34  ;;  %v375_v38 = vmul.f32 %v373_v31, %v354_v34  ;;  %v2413_v42 = vpop.eup %2412 }
 0x251   :  { %v357_v43 = vmul.f32 %v2413_v42, %v340_v41  ;;  %vm362_vm2 = vweird.f32 %v2413_v42 }
 0x252   :  { %378 = vrot.lane.b32.xlu1 %v376_v36, %s2674_s3  ;;  %vm363_vm4 = vmor %vm361_vm3, %vm362_vm2 }
 0x253   :  { %v358_v44 = vsub.f32 1.0, %v357_v43 }
 0x255   :  { %v359_v45 = vmul.f32 %v2413_v42, %v358_v44 }
 0x257   :  { %v360_v48 = vadd.f32 %v2413_v42, %v359_v45 }
 0x259   :  { %v364_v51 = vsel %vm363_vm4, %v2413_v42, %v360_v48 }
 0x25a   :  { %v369_v54 = vsel %vm366_vm5, %v368_v52, %v364_v51 }
 0x2c4   :  { %v379_v46 = vpop.permute.xlu1 %378 }
 0x2c5   :  { %v381_v47 = vadd.f32 %v379_v46, %v375_v38 }
 0x2c7   :  { %2414 = vtanh.f32 %v381_v47  ;;  %v505_v15 = vrot.slane %v381_v47, 6 }
 0x2cd   :  { %v2415_v53 = vpop.eup %2414 }
 0x2ce   :  { %v2929_v55 = vmul.f32 %v2415_v53, %v369_v54 }
 0x2d0   :  { %v412_v56 = vrot.slane %v2929_v55, 2 }
 0x2d2   :  { %413 = vrot.lane.b32.xlu1 %v412_v56, %s2674_s3 }
 0x344   :  { %v414_v57 = vpop.permute.xlu1 %413 }
 0x345   :  { %2327 = vmatmul.msk.f32.vlgmr.msra.gmra.mxu2 %vm161_vm10, %v414_v57  ;;  %2328 = vmatmul.msk.f32.vlgmr.msra.gmra.mxu3 %vm161_vm10, %v414_v57 }
 0x3c8   :  { %v434_v58 = vpop.f32.mrf.mxu2  ;;  %v454_v3 = vpop.f32.mrf.mxu3 }
 0x3c9   :  { %v459_v59 = vrot.slane %v434_v58, 4  ;;  %v460_v4 = vrot.slane %v454_v3, 4 }
 0x3cb   :  { %v463_v60 = vadd.f32 %v459_v59, %v2880_v29  ;;  %v464_v8 = vadd.f32 %v460_v4, %v2886_v37 }
 0x3cd   :  { %v2329_v61 = vmul.f32 -1.442695, %v463_v60  ;;  %v2330_v16 = vmul.f32 -1.442695, %v464_v8 }
 0x3cf   :  { %2416 = vpow2.f32 %v2329_v61 }
 0x3d5   :  { %v2417_v62 = vpop.eup %2416 }
 0x3d6   :  { %v471_v63 = vadd.f32 1.0, %v2417_v62 }
 0x3d8   :  { %2418 = vrcp.f32 %v471_v63  ;;  %v484_v11 = vand.u32 2147483648, %v471_v63  ;;  %v482_v1 = vand.u32 2147483647, %v471_v63  ;;  %vm478_vm7 = vweird.f32 %v471_v63 }
 0x3d9   :  { %2420 = vtanh.f32 %v464_v8 }
 0x3da   :  { %v485_v5 = vor.u32 1.1754944e-38, %v484_v11  ;;  %vm483_vm14 = vcmp.eq.f32.partialorder %v482_v1, 8.507059e+37  ;;  %2422 = vpow2.f32 %v2330_v16 }
 0x3de   :  { %v2419_v6 = vpop.eup %2418 }
 0x3df   :  { %v474_v9 = vmul.f32 %v2419_v6, %v471_v63  ;;  %vm479_vm6 = vweird.f32 %v2419_v6  ;;  %v2421_v17 = vpop.eup %2420 }
 0x3e0   :  { %vm480_vm8 = vmor %vm478_vm7, %vm479_vm6  ;;  %v2423_v21 = vpop.eup %2422 }
 0x3e1   :  { %v475_v10 = vsub.f32 1.0, %v474_v9  ;;  %v472_v22 = vadd.f32 1.0, %v2423_v21 }
 0x3e3   :  { %v476_v13 = vmul.f32 %v2419_v6, %v475_v10  ;;  %2424 = vrcp.f32 %v472_v22  ;;  %v499_v33 = vand.u32 2147483648, %v472_v22  ;;  %vm493_vm0 = vweird.f32 %v472_v22 }
 0x3e4   :  { %v497_v34 = vand.u32 2147483647, %v472_v22 }
 0x3e5   :  { %v477_v2 = vadd.f32 %v2419_v6, %v476_v13  ;;  %v500_v38 = vor.u32 1.1754944e-38, %v499_v33 }
 0x3e6   :  { %vm498_vm2 = vcmp.eq.f32.partialorder %v497_v34, 8.507059e+37  ;;  %v2962_v34 = vadd.f32 %v2924_v7, %v89_v35 }
 0x3e7   :  { %v481_v12 = vsel %vm480_vm8, %v2419_v6, %v477_v2 }
 0x3e8   :  { %v486_v19 = vsel %vm483_vm14, %v485_v5, %v481_v12 }
 0x3e9   :  { %v508_v14 = vmul.f32 %v2421_v17, %v486_v19  ;;  %v507_v20 = vmul.f32 %v505_v15, %v486_v19  ;;  %v2425_v23 = vpop.eup %2424 }
 0x3ea   :  { %v489_v24 = vmul.f32 %v2425_v23, %v472_v22  ;;  %vm494_vm15 = vweird.f32 %v2425_v23 }
 0x3eb   :  { %510 = vrot.lane.b32.xlu2 %v508_v14, %s2674_s3  ;;  %vm495_vm1 = vmor %vm493_vm0, %vm494_vm15 }
 0x3ec   :  { %v490_v25 = vsub.f32 1.0, %v489_v24  ;;  %v2956_v24 = vadd.f32 %v2921_v0, %v88_v27 }
 0x3ee   :  { %v491_v28 = vmul.f32 %v2425_v23, %v490_v25 }
 0x3f0   :  { %v492_v32 = vadd.f32 %v2425_v23, %v491_v28 }
 0x3f2   :  { %v496_v36 = vsel %vm495_vm1, %v2425_v23, %v492_v32 }
 0x3f3   :  { %v501_v40 = vsel %vm498_vm2, %v500_v38, %v496_v36 }
 0x445   :  { %v511_v30 = vpop.permute.xlu2 %510 }
 0x446   :  { %v513_v31 = vadd.f32 %v511_v30, %v507_v20 }
 0x448   :  { %2426 = vtanh.f32 %v513_v31  ;;  %v637_v61 = vrot.slane %v513_v31, 6 }
 0x44e   :  { %v2427_v39 = vpop.eup %2426 }
 0x44f   :  { %v2938_v41 = vmul.f32 %v2427_v39, %v501_v40 }
 0x451   :  { %v544_v42 = vrot.slane %v2938_v41, 4 }
 0x453   :  { %545 = vrot.lane.b32.xlu2 %v544_v42, %s2674_s3 }
 0x4ad   :  { %v546_v43 = vpop.permute.xlu2 %545 }
 0x4ae   :  { %2331 = vmatmul.msk.f32.vlgmr.msra.gmra.mxu0 %vm161_vm10, %v546_v43  ;;  %2332 = vmatmul.msk.f32.vlgmr.msra.gmra.mxu1 %vm161_vm10, %v546_v43 }
 0x52b   :  { %v566_v44 = vpop.f32.mrf.mxu0  ;;  %v586_v50 = vpop.f32.mrf.mxu1 }
 0x52c   :  { %v591_v45 = vrot.slane %v566_v44, 2  ;;  %v592_v51 = vrot.slane %v586_v50, 2 }
 0x52e   :  { %v595_v46 = vadd.f32 %v591_v45, %v2880_v29  ;;  %v596_v53 = vadd.f32 %v592_v51, %v2886_v37 }
 0x530   :  { %v2333_v47 = vmul.f32 -1.442695, %v595_v46  ;;  %v2334_v37 = vmul.f32 -1.442695, %v596_v53 }
 0x532   :  { %2428 = vpow2.f32 %v2333_v47 }
 0x538   :  { %v2429_v48 = vpop.eup %2428 }
 0x539   :  { %v603_v49 = vadd.f32 1.0, %v2429_v48 }
 0x53b   :  { %2430 = vrcp.f32 %v603_v49  ;;  %v616_v57 = vand.u32 2147483648, %v603_v49  ;;  %v614_v59 = vand.u32 2147483647, %v603_v49  ;;  %vm610_vm4 = vweird.f32 %v603_v49 }
 0x53c   :  { %2432 = vtanh.f32 %v596_v53 }
 0x53d   :  { %v617_v29 = vor.u32 1.1754944e-38, %v616_v57  ;;  %vm615_vm6 = vcmp.eq.f32.partialorder %v614_v59, 8.507059e+37  ;;  %2434 = vpow2.f32 %v2334_v37 }
 0x541   :  { %v2431_v52 = vpop.eup %2430 }
 0x542   :  { %v606_v54 = vmul.f32 %v2431_v52, %v603_v49  ;;  %vm611_vm3 = vweird.f32 %v2431_v52  ;;  %v2433_v63 = vpop.eup %2432 }
 0x543   :  { %vm612_vm5 = vmor %vm610_vm4, %vm611_vm3  ;;  %v2435_v8 = vpop.eup %2434 }
 0x544   :  { %v607_v56 = vsub.f32 1.0, %v606_v54  ;;  %v604_v9 = vadd.f32 1.0, %v2435_v8 }
 0x546   :  { %v608_v58 = vmul.f32 %v2431_v52, %v607_v56  ;;  %2436 = vrcp.f32 %v604_v9  ;;  %v631_v12 = vand.u32 2147483648, %v604_v9  ;;  %vm625_vm8 = vweird.f32 %v604_v9 }
 0x547   :  { %v629_v17 = vand.u32 2147483647, %v604_v9 }
 0x548   :  { %v609_v60 = vadd.f32 %v2431_v52, %v608_v58  ;;  %v632_v14 = vor.u32 1.1754944e-38, %v631_v12 }
 0x549   :  { %vm630_vm15 = vcmp.eq.f32.partialorder %v629_v17, 8.507059e+37 }
 0x54a   :  { %v613_v62 = vsel %vm612_vm5, %v2431_v52, %v609_v60 }
 0x54b   :  { %v618_v3 = vsel %vm615_vm6, %v617_v29, %v613_v62 }
 0x54c   :  { %v640_v4 = vmul.f32 %v2433_v63, %v618_v3  ;;  %v639_v6 = vmul.f32 %v637_v61, %v618_v3  ;;  %v2437_v10 = vpop.eup %2436 }
 0x54d   :  { %v621_v11 = vmul.f32 %v2437_v10, %v604_v9  ;;  %vm626_vm7 = vweird.f32 %v2437_v10 }
 0x54e   :  { %642 = vrot.lane.b32.xlu0 %v640_v4, %s2674_s3  ;;  %vm627_vm14 = vmor %vm625_vm8, %vm626_vm7 }
 0x54f   :  { %v622_v13 = vsub.f32 1.0, %v621_v11 }
 0x551   :  { %v623_v1 = vmul.f32 %v2437_v10, %v622_v13 }
 0x553   :  { %v624_v15 = vadd.f32 %v2437_v10, %v623_v1 }
 0x555   :  { %v628_v19 = vsel %vm627_vm14, %v2437_v10, %v624_v15 }
 0x556   :  { %v633_v16 = vsel %vm630_vm15, %v632_v14, %v628_v19 }
 0x5c0   :  { %v643_v2 = vpop.permute.xlu0 %642 }
 0x5c1   :  { %v645_v5 = vadd.f32 %v643_v2, %v639_v6 }
 0x5c3   :  { %2438 = vtanh.f32 %v645_v5  ;;  %v763_v45 = vrot.slane %v645_v5, 6 }
 0x5c9   :  { %v2439_v20 = vpop.eup %2438 }
 0x5ca   :  { %v2947_v21 = vmul.f32 %v2439_v20, %v633_v16 }
 0x5cc   :  { %v676_v22 = vrot.slane %v2947_v21, 6 }
 0x5ce   :  { %677 = vrot.lane.b32.xlu1 %v676_v22, %s2674_s3 }
 0x640   :  { %v678_v23 = vpop.permute.xlu1 %677 }
 0x641   :  { %2335 = vmatmul.msk.f32.vlgmr.msrb.gmra.mxu2 %vm161_vm10, %v678_v23  ;;  %2336 = vmatmul.msk.f32.vlgmr.msrb.gmra.mxu3 %vm161_vm10, %v678_v23 }
 0x6c4   :  { %v698_v25 = vpop.f32.mrf.mxu2  ;;  %v718_v33 = vpop.f32.mrf.mxu3 }
 0x6c5   :  { %v721_v28 = vadd.f32 %v698_v25, %v2956_v24  ;;  %v722_v38 = vadd.f32 %v718_v33, %v2962_v34 }
 0x6c7   :  { %v2337_v30 = vmul.f32 -1.442695, %v721_v28  ;;  %v2338_v48 = vmul.f32 -1.442695, %v722_v38 }
 0x6c9   :  { %2440 = vpow2.f32 %v2337_v30 }
 0x6cf   :  { %v2441_v31 = vpop.eup %2440 }
 0x6d0   :  { %v729_v32 = vadd.f32 1.0, %v2441_v31 }
 0x6d2   :  { %2442 = vrcp.f32 %v729_v32  ;;  %v742_v0 = vand.u32 2147483648, %v729_v32  ;;  %v740_v42 = vand.u32 2147483647, %v729_v32  ;;  %vm736_vm1 = vweird.f32 %v729_v32 }
 0x6d3   :  { %2444 = vtanh.f32 %v722_v38  ;;  %v921_v38 = vld [vmem:[#allocation4 + $0x70] sm:$0xff] }
 0x6d4   :  { %v743_v44 = vor.u32 1.1754944e-38, %v742_v0  ;;  %vm741_vm3 = vcmp.eq.f32.partialorder %v740_v42, 8.507059e+37  ;;  %2446 = vpow2.f32 %v2338_v48  ;;  %936 = vmatpush.msra.mxu2 %v921_v38  ;;  %v920_v0 = vld [vmem:[#allocation4 + $0x68] sm:$0xff]  ;;  %v918_v42 = vld [vmem:[#allocation4 + $0x58] sm:$0xff]  ;;  %1064 = vmatpush.msra.mxu0 %v921_v38  ;;  %v909_v48 = vld [vmem:[#allocation4 + $0x10] sm:$0xff] }
 0x6d8   :  { %v2443_v36 = vpop.eup %2442 }
 0x6d9   :  { %v732_v39 = vmul.f32 %v2443_v36, %v729_v32  ;;  %vm737_vm0 = vweird.f32 %v2443_v36  ;;  %v2445_v26 = vpop.eup %2444 }
 0x6da   :  { %vm738_vm2 = vmor %vm736_vm1, %vm737_vm0  ;;  %v2447_v49 = vpop.eup %2446 }
 0x6db   :  { %v733_v27 = vsub.f32 1.0, %v732_v39  ;;  %v730_v50 = vadd.f32 1.0, %v2447_v49  ;;  %v922_v39 = vld [vmem:[#allocation4 + $0x78] sm:$0xff] }
 0x6dc   :  { %956 = vmatpush.msra.mxu3 %v922_v39  ;;  %1084 = vmatpush.msra.mxu1 %v922_v39  ;;  %v910_v49 = vld [vmem:[#allocation4 + $0x18] sm:$0xff] }
 0x6dd   :  { %v734_v40 = vmul.f32 %v2443_v36, %v733_v27  ;;  %2448 = vrcp.f32 %v730_v50  ;;  %v757_v59 = vand.u32 2147483648, %v730_v50  ;;  %vm751_vm5 = vweird.f32 %v730_v50  ;;  %v919_v27 = vld [vmem:[#allocation4 + $0x60] sm:$0xff] }
 0x6de   :  { %v755_v60 = vand.u32 2147483647, %v730_v50  ;;  %937 = vmatpush.msra.mxu2 %v919_v27  ;;  %957 = vmatpush.msra.mxu3 %v920_v0 }
 0x6df   :  { %v735_v43 = vadd.f32 %v2443_v36, %v734_v40  ;;  %v758_v61 = vor.u32 1.1754944e-38, %v757_v59  ;;  %v917_v40 = vld [vmem:[#allocation4 + $0x50] sm:$0xff]  ;;  %1065 = vmatpush.msra.mxu0 %v919_v27  ;;  %1085 = vmatpush.msra.mxu1 %v920_v0 }
 0x6e0   :  { %vm756_vm7 = vcmp.eq.f32.partialorder %v755_v60, 8.507059e+37  ;;  %938 = vmatpush.msra.mxu2 %v917_v40  ;;  %958 = vmatpush.msra.mxu3 %v918_v42 }
 0x6e1   :  { %v739_v46 = vsel %vm738_vm2, %v2443_v36, %v735_v43  ;;  %v915_v43 = vld [vmem:[#allocation4 + $0x40] sm:$0xff]  ;;  %1066 = vmatpush.msra.mxu0 %v917_v40  ;;  %1086 = vmatpush.msra.mxu1 %v918_v42 }
 0x6e2   :  { %v744_v35 = vsel %vm741_vm3, %v743_v44, %v739_v46  ;;  %v916_v44 = vld [vmem:[#allocation4 + $0x48] sm:$0xff]  ;;  %v913_v46 = vld [vmem:[#allocation4 + $0x30] sm:$0xff]  ;;  %939 = vmatpush.msra.mxu2 %v915_v43 }
 0x6e3   :  { %v766_v7 = vmul.f32 %v2445_v26, %v744_v35  ;;  %v765_v47 = vmul.f32 %v763_v45, %v744_v35  ;;  %v2449_v51 = vpop.eup %2448  ;;  %v914_v26 = vld [vmem:[#allocation4 + $0x38] sm:$0xff]  ;;  %959 = vmatpush.msra.mxu3 %v916_v44  ;;  %1067 = vmatpush.msra.mxu0 %v915_v43 }
 0x6e4   :  { %v747_v52 = vmul.f32 %v2449_v51, %v730_v50  ;;  %vm752_vm4 = vweird.f32 %v2449_v51  ;;  %1087 = vmatpush.msra.mxu1 %v916_v44  ;;  %940 = vmatpush.msra.mxu2 %v913_v46 }
 0x6e5   :  { %768 = vrot.lane.b32.xlu2 %v766_v7, %s2674_s3  ;;  %vm753_vm6 = vmor %vm751_vm5, %vm752_vm4  ;;  %v911_v7 = vld [vmem:[#allocation4 + $0x20] sm:$0xff]  ;;  %960 = vmatpush.msra.mxu3 %v914_v26 }
 0x6e6   :  { %v748_v53 = vsub.f32 1.0, %v747_v52  ;;  %1068 = vmatpush.msra.mxu0 %v913_v46  ;;  %1088 = vmatpush.msra.mxu1 %v914_v26  ;;  %v908_v52 = vld [vmem:[#allocation4 + $0x8] sm:$0xff] }
 0x6e7   :  { %941 = vmatpush.msra.mxu2 %v911_v7 }
 0x6e8   :  { %v749_v54 = vmul.f32 %v2449_v51, %v748_v53  ;;  %1069 = vmatpush.msra.mxu0 %v911_v7 }
 0x6e9   :  { %942 = vmatpush.msra.mxu2 %v909_v48 }
 0x6ea   :  { %v750_v58 = vadd.f32 %v2449_v51, %v749_v54  ;;  %1070 = vmatpush.msra.mxu0 %v909_v48 }
 0x6ec   :  { %v754_v29 = vsel %vm753_vm6, %v2449_v51, %v750_v58  ;;  %v907_v51 = vld [vmem:[#allocation4] sm:$0xff] }
 0x6ed   :  { %v759_v63 = vsel %vm756_vm7, %v758_v61, %v754_v29  ;;  %943 = vmatpush.msra.mxu2 %v907_v51  ;;  %1071 = vmatpush.msra.mxu0 %v907_v51 }
 0x73f   :  { %v769_v56 = vpop.permute.xlu2 %768 }
 0x740   :  { %v771_v57 = vadd.f32 %v769_v56, %v765_v47  ;;  %v912_v47 = vld [vmem:[#allocation4 + $0x28] sm:$0xff] }
 0x741   :  { %961 = vmatpush.msra.mxu3 %v912_v47  ;;  %1089 = vmatpush.msra.mxu1 %v912_v47 }
 0x742   :  { %2450 = vtanh.f32 %v771_v57  ;;  %v888_v22 = vrot.slane %v771_v57, 6 }
 0x743   :  { %962 = vmatpush.msra.mxu3 %v910_v49  ;;  %1090 = vmatpush.msra.mxu1 %v910_v49 }
 0x745   :  { %963 = vmatpush.msra.mxu3 %v908_v52  ;;  %1091 = vmatpush.msra.mxu1 %v908_v52 }
 0x748   :  { %v2451_v62 = vpop.eup %2450 }
 0x749   :  { %v2966_v3 = vmul.f32 %v2451_v62, %v759_v63 }
 0x74b   :  { %775 = vrot.lane.b32.xlu0 %v2966_v3, %s2674_s3 }
 0x7bd   :  { %v2970_v4 = vpop.permute.xlu0 %775 }
 0x7be   :  { %2339 = vmatmul.msk.f32.vlgmr.msrb.gmra.mxu0 %vm161_vm10, %v2970_v4  ;;  %2340 = vmatmul.msk.f32.vlgmr.msrb.gmra.mxu1 %vm161_vm10, %v2970_v4 }
 0x83b   :  { %v817_v6 = vpop.f32.mrf.mxu0  ;;  %v837_v13 = vpop.f32.mrf.mxu1 }
 0x83c   :  { %v842_v37 = vrot.slane %v817_v6, 6  ;;  %v843_v1 = vrot.slane %v837_v13, 6 }
 0x83e   :  { %v846_v8 = vadd.f32 %v842_v37, %v2956_v24  ;;  %v847_v5 = vadd.f32 %v843_v1, %v2962_v34 }
 0x840   :  { %v2341_v9 = vmul.f32 -1.442695, %v846_v8  ;;  %v2342_v32 = vmul.f32 -1.442695, %v847_v5 }
 0x842   :  { %2452 = vpow2.f32 %v2341_v9 }
 0x848   :  { %v2453_v10 = vpop.eup %2452 }
 0x849   :  { %v854_v11 = vadd.f32 1.0, %v2453_v10 }
 0x84b   :  { %2454 = vrcp.f32 %v854_v11  ;;  %v867_v17 = vand.u32 2147483648, %v854_v11  ;;  %v865_v14 = vand.u32 2147483647, %v854_v11  ;;  %vm861_vm14 = vweird.f32 %v854_v11 }
 0x84c   :  { %2456 = vtanh.f32 %v847_v5 }
 0x84d   :  { %v868_v16 = vor.u32 1.1754944e-38, %v867_v17  ;;  %vm866_vm0 = vcmp.eq.f32.partialorder %v865_v14, 8.507059e+37  ;;  %2458 = vpow2.f32 %v2342_v32 }
 0x851   :  { %v2455_v2 = vpop.eup %2454 }
 0x852   :  { %v857_v15 = vmul.f32 %v2455_v2, %v854_v11  ;;  %vm862_vm8 = vweird.f32 %v2455_v2  ;;  %v2457_v25 = vpop.eup %2456 }
 0x853   :  { %vm863_vm15 = vmor %vm861_vm14, %vm862_vm8  ;;  %v2459_v33 = vpop.eup %2458 }
 0x854   :  { %v858_v12 = vsub.f32 1.0, %v857_v15  ;;  %v2979_v36 = vadd.f32 1.0, %v2459_v33 }
 0x856   :  { %v859_v19 = vmul.f32 %v2455_v2, %v858_v12  ;;  %2460 = vrcp.f32 %v2979_v36  ;;  %v882_v58 = vand.u32 2147483648, %v2979_v36  ;;  %vm876_vm2 = vweird.f32 %v2979_v36 }
 0x857   :  { %v880_v59 = vand.u32 2147483647, %v2979_v36 }
 0x858   :  { %v860_v20 = vadd.f32 %v2455_v2, %v859_v19  ;;  %v883_v29 = vor.u32 1.1754944e-38, %v882_v58 }
 0x859   :  { %vm881_vm4 = vcmp.eq.f32.partialorder %v880_v59, 8.507059e+37 }
 0x85a   :  { %v864_v23 = vsel %vm863_vm15, %v2455_v2, %v860_v20 }
 0x85b   :  { %v869_v28 = vsel %vm866_vm0, %v868_v16, %v864_v23 }
 0x85c   :  { %v891_v30 = vmul.f32 %v2457_v25, %v869_v28  ;;  %v890_v31 = vmul.f32 %v888_v22, %v869_v28  ;;  %v2461_v45 = vpop.eup %2460 }
 0x85d   :  { %v872_v35 = vmul.f32 %v2461_v45, %v2979_v36  ;;  %vm877_vm1 = vweird.f32 %v2461_v45 }
 0x85e   :  { %893 = vrot.lane.b32.xlu1 %v891_v30, %s2674_s3  ;;  %vm878_vm3 = vmor %vm876_vm2, %vm877_vm1  ;;  %vm388_vm1 = vcmask 257026   ;;  %vm390_vm2 = vcmask 519426  }
 0x85f   :  { %v873_v50 = vsub.f32 1.0, %v872_v35 }
 0x861   :  { %v874_v53 = vmul.f32 %v2461_v45, %v873_v50 }
 0x863   :  { %v875_v57 = vadd.f32 %v2461_v45, %v874_v53 }
 0x865   :  { %v879_v60 = vsel %vm878_vm3, %v2461_v45, %v875_v57 }
 0x866   :  { %v884_v62 = vsel %vm881_vm4, %v883_v29, %v879_v60  ;;  %vm392_vm4 = vcmask 781826  }
 0x8d0   :  { %v894_v54 = vpop.permute.xlu1 %893 }
 0x8d1   :  { %v896_v56 = vadd.f32 %v894_v54, %v890_v31 }
 0x8d3   :  { %2462 = vtanh.f32 %v896_v56  ;;  %v1016_v25 = vrot.slane %v896_v56, 6 }
 0x8d9   :  { %v2463_v61 = vpop.eup %2462 }
 0x8da   :  { %v2986_v63 = vmul.f32 %v2463_v61, %v884_v62 }
 0x8dc   :  { %v923_v6 = vrot.slane %v2986_v63, 2 }
 0x8de   :  { %924 = vrot.lane.b32.xlu2 %v923_v6, %s2674_s3 }
 0x938   :  { %v925_v37 = vpop.permute.xlu2 %924 }
 0x939   :  { %2343 = vmatmul.msk.f32.vlgmr.msra.gmra.mxu2 %vm161_vm10, %v925_v37  ;;  %2344 = vmatmul.msk.f32.vlgmr.msra.gmra.mxu3 %vm161_vm10, %v925_v37 }
 0x9bc   :  { %v945_v8 = vpop.f32.mrf.mxu2  ;;  %v965_v2 = vpop.f32.mrf.mxu3 }
 0x9bd   :  { %v970_v9 = vrot.slane %v945_v8, 4  ;;  %v971_v5 = vrot.slane %v965_v2, 4 }
 0x9bf   :  { %v974_v10 = vadd.f32 %v970_v9, %v2956_v24  ;;  %v975_v12 = vadd.f32 %v971_v5, %v2962_v34 }
 0x9c1   :  { %v2345_v11 = vmul.f32 -1.442695, %v974_v10  ;;  %v2346_v36 = vmul.f32 -1.442695, %v975_v12 }
 0x9c3   :  { %2464 = vpow2.f32 %v2345_v11 }
 0x9c9   :  { %v2465_v13 = vpop.eup %2464 }
 0x9ca   :  { %v982_v1 = vadd.f32 1.0, %v2465_v13 }
 0x9cc   :  { %2466 = vrcp.f32 %v982_v1  ;;  %v995_v14 = vand.u32 2147483648, %v982_v1  ;;  %v993_v16 = vand.u32 2147483647, %v982_v1  ;;  %vm989_vm6 = vweird.f32 %v982_v1 }
 0x9cd   :  { %2468 = vtanh.f32 %v975_v12 }
 0x9ce   :  { %v996_v23 = vor.u32 1.1754944e-38, %v995_v14  ;;  %vm994_vm8 = vcmp.eq.f32.partialorder %v993_v16, 8.507059e+37  ;;  %2470 = vpow2.f32 %v2346_v36  ;;  %v1195_v14 = vld [vmem:[#allocation6 + $0xf0] sm:$0xff]  ;;  %v1193_v16 = vld [vmem:[#allocation6 + $0xe0] sm:$0xff] }
 0x9cf   :  { %1203 = vmatpush.msrb.mxu2 %v1195_v14 }
 0x9d1   :  { %1204 = vmatpush.msrb.mxu2 %v1193_v16  ;;  %v3180_v16 = vld [vmem:[%s3362_s6] sm:$0x3] }
 0x9d2   :  { %v2467_v15 = vpop.eup %2466 }
 0x9d3   :  { %v985_v17 = vmul.f32 %v2467_v15, %v982_v1  ;;  %vm990_vm5 = vweird.f32 %v2467_v15  ;;  %v2469_v30 = vpop.eup %2468 }
 0x9d4   :  { %vm991_vm7 = vmor %vm989_vm6, %vm990_vm5  ;;  %v2471_v38 = vpop.eup %2470  ;;  %vm394_vm5 = vcmask 1044226   ;;  %vm520_vm6 = vcmask 259076  }
 0x9d5   :  { %v986_v19 = vsub.f32 1.0, %v985_v17  ;;  %v983_v39 = vadd.f32 1.0, %v2471_v38  ;;  %v1185_v38 = vld [vmem:[#allocation6 + $0xa0] sm:$0xff] }
 0x9d7   :  { %v987_v20 = vmul.f32 %v2467_v15, %v986_v19  ;;  %2472 = vrcp.f32 %v983_v39  ;;  %v1010_v46 = vand.u32 2147483648, %v983_v39  ;;  %vm1004_vm15 = vweird.f32 %v983_v39 }
 0x9d8   :  { %v1008_v26 = vand.u32 2147483647, %v983_v39 }
 0x9d9   :  { %v988_v22 = vadd.f32 %v2467_v15, %v987_v20  ;;  %v1011_v7 = vor.u32 1.1754944e-38, %v1010_v46  ;;  %v1196_v20 = vld [vmem:[#allocation6 + $0xf8] sm:$0xff] }
 0x9da   :  { %vm1009_vm3 = vcmp.eq.f32.partialorder %v1008_v26, 8.507059e+37  ;;  %1226 = vmatpush.msrb.mxu3 %v1196_v20  ;;  %v1177_v26 = vld [vmem:[#allocation6 + $0x60] sm:$0xff] }
 0x9db   :  { %v992_v28 = vsel %vm991_vm7, %v2467_v15, %v988_v22  ;;  %vm3365_vm7 = vcmask 521476   ;;  %v1194_v22 = vld [vmem:[#allocation6 + $0xe8] sm:$0xff] }
 0x9dc   :  { %v997_v31 = vsel %vm994_vm8, %v996_v23, %v992_v28  ;;  %vm524_vm8 = vcmask 783876   ;;  %v1191_v23 = vld [vmem:[#allocation6 + $0xd0] sm:$0xff]  ;;  %1227 = vmatpush.msrb.mxu3 %v1194_v22  ;;  %v1189_v28 = vld [vmem:[#allocation6 + $0xc0] sm:$0xff]  ;;  %v1199_v22 = vperm.slane %v3180_v16, 0 }
 0x9dd   :  { %v1019_v32 = vmul.f32 %v2469_v30, %v997_v31  ;;  %v1018_v33 = vmul.f32 %v1016_v25, %v997_v31  ;;  %v2473_v27 = vpop.eup %2472  ;;  %v1192_v25 = vld [vmem:[#allocation6 + $0xd8] sm:$0xff]  ;;  %v1190_v30 = vld [vmem:[#allocation6 + $0xc8] sm:$0xff]  ;;  %1205 = vmatpush.msrb.mxu2 %v1191_v23 }
 0x9de   :  { %v1000_v0 = vmul.f32 %v2473_v27, %v983_v39  ;;  %vm1005_vm14 = vweird.f32 %v2473_v27  ;;  %1228 = vmatpush.msrb.mxu3 %v1192_v25  ;;  %v1186_v39 = vld [vmem:[#allocation6 + $0xa8] sm:$0xff] }
 0x9df   :  { %1021 = vrot.lane.b32.xlu0 %v1019_v32, %s2674_s3  ;;  %vm1006_vm0 = vmor %vm1004_vm15, %vm1005_vm14  ;;  %vm526_vm14 = vcmask 1046276   ;;  %v1187_v32 = vld [vmem:[#allocation6 + $0xb0] sm:$0xff]  ;;  %1206 = vmatpush.msrb.mxu2 %v1189_v28 }
 0x9e0   :  { %v1001_v40 = vsub.f32 1.0, %v1000_v0  ;;  %1229 = vmatpush.msrb.mxu3 %v1190_v30  ;;  %v1184_v0 = vld [vmem:[#allocation6 + $0x98] sm:$0xff] }
 0x9e1   :  { %1207 = vmatpush.msrb.mxu2 %v1187_v32 }
 0x9e2   :  { %v1002_v42 = vmul.f32 %v2473_v27, %v1001_v40 }
 0x9e3   :  { %1208 = vmatpush.msrb.mxu2 %v1185_v38 }
 0x9e4   :  { %v1003_v45 = vadd.f32 %v2473_v27, %v1002_v42  ;;  %v1181_v42 = vld [vmem:[#allocation6 + $0x80] sm:$0xff] }
 0x9e6   :  { %v1007_v35 = vsel %vm1006_vm0, %v2473_v27, %v1003_v45  ;;  %v1183_v27 = vld [vmem:[#allocation6 + $0x90] sm:$0xff]  ;;  %v1180_v45 = vld [vmem:[#allocation6 + $0x78] sm:$0xff] }
 0x9e7   :  { %385 = vrot.lane.b32.xlu0 %v2929_v55, %s2674_s3  ;;  %v1012_v49 = vsel %vm1009_vm3, %v1011_v7, %v1007_v35  ;;  %1209 = vmatpush.msrb.mxu2 %v1183_v27  ;;  %v1178_v35 = vld [vmem:[#allocation6 + $0x68] sm:$0xff] }
 0x9e9   :  { %1210 = vmatpush.msrb.mxu2 %v1181_v42 }
 0x9ef   :  { %900 = vrot.lane.b32.xlu0 %v2986_v63, %s2674_s3 }
 0xa51   :  { %v1022_v43 = vpop.permute.xlu0 %1021 }
 0xa52   :  { %v2999_v44 = vadd.f32 %v1022_v43, %v1018_v33  ;;  %v1188_v33 = vld [vmem:[#allocation6 + $0xb8] sm:$0xff]  ;;  %v1182_v43 = vld [vmem:[#allocation6 + $0x88] sm:$0xff] }
 0xa53   :  { %1230 = vmatpush.msrb.mxu3 %v1188_v33  ;;  %v1200_v33 = vperm.slane %v3180_v16, 1 }
 0xa54   :  { %2474 = vtanh.f32 %v2999_v44  ;;  %v1144_v13 = vrot.slane %v2999_v44, 6  ;;  %v1179_v44 = vld [vmem:[#allocation6 + $0x70] sm:$0xff] }
 0xa55   :  { %1231 = vmatpush.msrb.mxu3 %v1186_v39  ;;  %1211 = vmatpush.msrb.mxu2 %v1179_v44 }
 0xa57   :  { %1232 = vmatpush.msrb.mxu3 %v1184_v0  ;;  %1212 = vmatpush.msrb.mxu2 %v1177_v26 }
 0xa59   :  { %v386_v47 = vpop.permute.xlu0 %385  ;;  %1233 = vmatpush.msrb.mxu3 %v1182_v43 }
 0xa5a   :  { %v2475_v48 = vpop.eup %2474  ;;  %389 = vst.msk [vmem:[#allocation2] sm:$0xc] %vm388_vm1, %v386_v47 }
 0xa5b   :  { %v1026_v50 = vmul.f32 %v2475_v48, %v1012_v49  ;;  %391 = vst.msk [vmem:[#allocation2 + $0xa] sm:$0xc] %vm390_vm2, %v386_v47  ;;  %1234 = vmatpush.msrb.mxu3 %v1180_v45  ;;  %v1175_v47 = vld [vmem:[#allocation6 + $0x50] sm:$0xff]  ;;  %v1176_v48 = vld [vmem:[#allocation6 + $0x58] sm:$0xff] }
 0xa5c   :  { %393 = vst.msk [vmem:[#allocation2 + $0xa] sm:$0xc] %vm392_vm4, %v2929_v55  ;;  %1213 = vmatpush.msrb.mxu2 %v1175_v47 }
 0xa5d   :  { %395 = vst.msk [vmem:[#allocation2] sm:$0xc] %vm394_vm5, %v2929_v55  ;;  %v1051_v51 = vrot.slane %v1026_v50, 4  ;;  %1235 = vmatpush.msrb.mxu3 %v1178_v35 }
 0xa5f   :  { %1052 = vrot.lane.b32.xlu1 %v1051_v51, %s2674_s3  ;;  %1236 = vmatpush.msrb.mxu3 %v1176_v48 }
 0xa61   :  { %v901_v55 = vpop.permute.xlu0 %900 }
 0xa67   :  { %517 = vrot.lane.b32.xlu1 %v2938_v41, %s2674_s3 }
 0xa6f   :  { %1028 = vrot.lane.b32.xlu1 %v1026_v50, %s2674_s3 }
 0xad1   :  { %v1053_v52 = vpop.permute.xlu1 %1052 }
 0xad2   :  { %2347 = vmatmul.msk.f32.vlgmr.msra.gmra.mxu0 %vm161_vm10, %v1053_v52  ;;  %2348 = vmatmul.msk.f32.vlgmr.msra.gmra.mxu1 %vm161_vm10, %v1053_v52 }
 0xad9   :  { %v518_v53 = vpop.permute.xlu1 %517 }
 0xada   :  { %521 = vst.msk [vmem:[#allocation2] sm:$0x30] %vm520_vm6, %v518_v53 }
 0xadb   :  { %523 = vst.msk [vmem:[#allocation2 + $0x6] sm:$0x30] %vm3365_vm7, %v518_v53 }
 0xadc   :  { %525 = vst.msk [vmem:[#allocation2 + $0x6] sm:$0x30] %vm524_vm8, %v2938_v41 }
 0xadd   :  { %527 = vst.msk [vmem:[#allocation2] sm:$0x30] %vm526_vm14, %v2938_v41 }
 0xade   :  { %903 = vst.msk [vmem:[#allocation2 + $0x8] sm:$0xc] %vm388_vm1, %v901_v55 }
 0xadf   :  { %904 = vst.msk [vmem:[#allocation2 + $0x2] sm:$0xc] %vm390_vm2, %v901_v55 }
 0xae0   :  { %905 = vst.msk [vmem:[#allocation2 + $0x2] sm:$0xc] %vm392_vm4, %v2986_v63 }
 0xae1   :  { %906 = vst.msk [vmem:[#allocation2 + $0x8] sm:$0xc] %vm394_vm5, %v2986_v63  ;;  %v1029_v54 = vpop.permute.xlu1 %1028 }
 0xae2   :  { %1031 = vst.msk [vmem:[#allocation2 + $0x8] sm:$0x30] %vm520_vm6, %v1029_v54 }
 0xae3   :  { %1032 = vst.msk [vmem:[#allocation2 - $0x2] sm:$0x30] %vm3365_vm7, %v1029_v54  ;;  %vm658_vm7 = vcmask 1048326  }
 0xae4   :  { %1033 = vst.msk [vmem:[#allocation2 - $0x2] sm:$0x30] %vm524_vm8, %v1026_v50 }
 0xae5   :  { %1034 = vst.msk [vmem:[#allocation2 + $0x8] sm:$0x30] %vm526_vm14, %v1026_v50 }
 0xb4f   :  { %v1073_v56 = vpop.f32.mrf.mxu0  ;;  %v1093_v29 = vpop.f32.mrf.mxu1 }
 0xb50   :  { %v1098_v57 = vrot.slane %v1073_v56, 2  ;;  %v1099_v61 = vrot.slane %v1093_v29, 2  ;;  %v3057_v29 = vld [vmem:[#allocation8 + $0x70] sm:$0xff] }
 0xb51   :  { %1273 = vmatpush.msrb.mxu0 %v3057_v29 }
 0xb52   :  { %v1102_v41 = vadd.f32 %v1098_v57, %v2956_v24  ;;  %v1103_v63 = vadd.f32 %v1099_v61, %v2962_v34  ;;  %v3059_v61 = vld [vmem:[#allocation8 + $0x78] sm:$0xff] }
 0xb53   :  { %1293 = vmatpush.msrb.mxu1 %v3059_v61 }
 0xb54   :  { %v2349_v58 = vmul.f32 -1.442695, %v1102_v41  ;;  %v2350_v34 = vmul.f32 -1.442695, %v1103_v63 }
 0xb56   :  { %2476 = vpow2.f32 %v2349_v58  ;;  %v1173_v58 = vld [vmem:[#allocation6 + $0x40] sm:$0xff] }
 0xb57   :  { %1214 = vmatpush.msrb.mxu2 %v1173_v58 }
 0xb5c   :  { %v2477_v59 = vpop.eup %2476 }
 0xb5d   :  { %v1110_v60 = vadd.f32 1.0, %v2477_v59  ;;  %v1174_v59 = vld [vmem:[#allocation6 + $0x48] sm:$0xff] }
 0xb5e   :  { %1237 = vmatpush.msrb.mxu3 %v1174_v59 }
 0xb5f   :  { %2478 = vrcp.f32 %v1110_v60  ;;  %v1123_v8 = vand.u32 2147483648, %v1110_v60  ;;  %v1121_v10 = vand.u32 2147483647, %v1110_v60  ;;  %vm1117_vm0 = vweird.f32 %v1110_v60 }
 0xb60   :  { %2480 = vtanh.f32 %v1103_v63  ;;  %v3063_v63 = vld [vmem:[#allocation8 + $0x60] sm:$0xff] }
 0xb61   :  { %v1124_v24 = vor.u32 1.1754944e-38, %v1123_v8  ;;  %vm1122_vm4 = vcmp.eq.f32.partialorder %v1121_v10, 8.507059e+37  ;;  %2482 = vpow2.f32 %v2350_v34  ;;  %1274 = vmatpush.msrb.mxu0 %v3063_v63  ;;  %v3069_v8 = vld [vmem:[#allocation8 + $0x50] sm:$0xff]  ;;  %v3073_v10 = vld [vmem:[#allocation8 + $0x40] sm:$0xff]  ;;  %v3093_v34 = vld [vmem:[#allocation8 + $0x18] sm:$0xff] }
 0xb63   :  { %1275 = vmatpush.msrb.mxu0 %v3069_v8 }
 0xb65   :  { %v2479_v62 = vpop.eup %2478  ;;  %1276 = vmatpush.msrb.mxu0 %v3073_v10 }
 0xb66   :  { %v1113_v6 = vmul.f32 %v2479_v62, %v1110_v60  ;;  %vm1118_vm15 = vweird.f32 %v2479_v62  ;;  %v2481_v2 = vpop.eup %2480  ;;  %v1171_v60 = vld [vmem:[#allocation6 + $0x30] sm:$0xff] }
 0xb67   :  { %vm1119_vm3 = vmor %vm1117_vm0, %vm1118_vm15  ;;  %v2483_v17 = vpop.eup %2482  ;;  %vm652_vm15 = vcmask 261126   ;;  %vm654_vm0 = vcmask 523526   ;;  %1215 = vmatpush.msrb.mxu2 %v1171_v60 }
 0xb68   :  { %v1114_v37 = vsub.f32 1.0, %v1113_v6  ;;  %v3032_v19 = vadd.f32 1.0, %v2483_v17  ;;  %v1167_v6 = vld [vmem:[#allocation6 + $0x10] sm:$0xff]  ;;  %v3099_v17 = vld [vmem:[#allocation8] sm:$0xff] }
 0xb6a   :  { %v1115_v9 = vmul.f32 %v2479_v62, %v1114_v37  ;;  %2484 = vrcp.f32 %v3032_v19  ;;  %v1138_v51 = vand.u32 2147483648, %v3032_v19  ;;  %vm1132_vm8 = vweird.f32 %v3032_v19  ;;  %v1168_v37 = vld [vmem:[#allocation6 + $0x18] sm:$0xff] }
 0xb6b   :  { %v1136_v52 = vand.u32 2147483647, %v3032_v19 }
 0xb6c   :  { %v1116_v11 = vadd.f32 %v2479_v62, %v1115_v9  ;;  %v1139_v55 = vor.u32 1.1754944e-38, %v1138_v51  ;;  %v3071_v9 = vld [vmem:[#allocation8 + $0x58] sm:$0xff] }
 0xb6e   :  { %v1120_v1 = vsel %vm1119_vm3, %v2479_v62, %v1116_v11  ;;  %vm656_vm3 = vcmask 785926   ;;  %v1170_v62 = vld [vmem:[#allocation6 + $0x28] sm:$0xff] }
 0xb6f   :  { %v1125_v5 = vsel %vm1122_vm4, %v1124_v24, %v1120_v1  ;;  %vm1137_vm4 = vcmp.eq.f32.partialorder %v1136_v52, 8.507059e+37  ;;  %v3075_v11 = vld [vmem:[#allocation8 + $0x48] sm:$0xff]  ;;  %v1165_v24 = vld [vmem:[#allocation6] sm:$0xff]  ;;  %v3079_v1 = vld [vmem:[#allocation8 + $0x30] sm:$0xff] }
 0xb70   :  { %v1147_v15 = vmul.f32 %v2481_v2, %v1125_v5  ;;  %v1146_v12 = vmul.f32 %v1144_v13, %v1125_v5  ;;  %v2485_v31 = vpop.eup %2484  ;;  %v1166_v13 = vld [vmem:[#allocation6 + $0x8] sm:$0xff]  ;;  %v3081_v2 = vld [vmem:[#allocation8 + $0x38] sm:$0xff]  ;;  %v3085_v5 = vld [vmem:[#allocation8 + $0x20] sm:$0xff]  ;;  %1277 = vmatpush.msrb.mxu0 %v3079_v1 }
 0xb71   :  { %v1128_v36 = vmul.f32 %v2485_v31, %v3032_v19  ;;  %vm1133_vm5 = vweird.f32 %v2485_v31  ;;  %v3101_v19 = vld [vmem:[#allocation8 + $0x8] sm:$0xff] }
 0xb72   :  { %1149 = vrot.lane.b32.xlu2 %v1147_v15, %s2674_s3  ;;  %vm1134_vm14 = vmor %vm1132_vm8, %vm1133_vm5  ;;  %v3087_v15 = vld [vmem:[#allocation8 + $0x28] sm:$0xff]  ;;  %1278 = vmatpush.msrb.mxu0 %v3085_v5 }
 0xb73   :  { %v1129_v40 = vsub.f32 1.0, %v1128_v36 }
 0xb75   :  { %v1130_v46 = vmul.f32 %v2485_v31, %v1129_v40 }
 0xb77   :  { %v1131_v50 = vadd.f32 %v2485_v31, %v1130_v46 }
 0xb79   :  { %v1135_v53 = vsel %vm1134_vm14, %v2485_v31, %v1131_v50 }
 0xb7a   :  { %649 = vrot.lane.b32.xlu2 %v2947_v21, %s2674_s3  ;;  %v1140_v57 = vsel %vm1137_vm4, %v1139_v55, %v1135_v53 }
 0xbcc   :  { %v1150_v7 = vpop.permute.xlu2 %1149 }
 0xbcd   :  { %v1152_v49 = vadd.f32 %v1150_v7, %v1146_v12  ;;  %v3091_v12 = vld [vmem:[#allocation8 + $0x10] sm:$0xff] }
 0xbce   :  { %1279 = vmatpush.msrb.mxu0 %v3091_v12 }
 0xbcf   :  { %2486 = vtanh.f32 %v1152_v49 }
 0xbd0   :  { %1280 = vmatpush.msrb.mxu0 %v3099_v17 }
 0xbd1   :  { %1281 = vmatmul.f32.vlgmr.msrb.gmra.mxu0 %v2673_v18 }
 0xbd2   :  { %1387 = vmatpush.msra.mxu0 %v3057_v29 }
 0xbd4   :  { %v650_v54 = vpop.permute.xlu2 %649  ;;  %1388 = vmatpush.msra.mxu0 %v3063_v63 }
 0xbd5   :  { %v2487_v56 = vpop.eup %2486  ;;  %653 = vst.msk [vmem:[#allocation2] sm:$0xc0] %vm652_vm15, %v650_v54 }
 0xbd6   :  { %655 = vst.msk [vmem:[#allocation2 + $0x2] sm:$0xc0] %vm654_vm0, %v650_v54  ;;  %v3041_v41 = vmul.f32 %v2487_v56, %v1140_v57  ;;  %1389 = vmatpush.msra.mxu0 %v3069_v8 }
 0xbd7   :  { %657 = vst.msk [vmem:[#allocation2 + $0x2] sm:$0xc0] %vm656_vm3, %v2947_v21 }
 0xbd8   :  { %659 = vst.msk [vmem:[#allocation2] sm:$0xc0] %vm658_vm7, %v2947_v21  ;;  %1156 = vrot.lane.b32.xlu2 %v3041_v41, %s2674_s3  ;;  %v1172_v21 = vld [vmem:[#allocation6 + $0x38] sm:$0xff]  ;;  %1390 = vmatpush.msra.mxu0 %v3073_v10 }
 0xbd9   :  { %778 = vst.msk [vmem:[#allocation2 + $0x8] sm:$0x3] %vm259_vm9, %v2970_v4  ;;  %1238 = vmatpush.msrb.mxu3 %v1172_v21 }
 0xbda   :  { %779 = vst.msk [vmem:[#allocation2 + $0x6] sm:$0x3] %vm261_vm11, %v2970_v4  ;;  %v1169_v4 = vld [vmem:[#allocation6 + $0x20] sm:$0xff]  ;;  %1391 = vmatpush.msra.mxu0 %v3079_v1 }
 0xbdb   :  { %780 = vst.msk [vmem:[#allocation2 + $0x6] sm:$0x3] %vm263_vm12, %v2966_v3  ;;  %1216 = vmatpush.msrb.mxu2 %v1169_v4  ;;  %1239 = vmatpush.msrb.mxu3 %v1170_v62 }
 0xbdc   :  { %781 = vst.msk [vmem:[#allocation2 + $0x8] sm:$0x3] %vm265_vm13, %v2966_v3  ;;  %v3065_v3 = vld [vmem:[#allocation8 + $0x68] sm:$0xff]  ;;  %1392 = vmatpush.msra.mxu0 %v3085_v5 }
 0xbdd   :  { %1294 = vmatpush.msrb.mxu1 %v3065_v3  ;;  %1217 = vmatpush.msrb.mxu2 %v1167_v6 }
 0xbde   :  { %1240 = vmatpush.msrb.mxu3 %v1168_v37  ;;  %1393 = vmatpush.msra.mxu0 %v3091_v12 }
 0xbdf   :  { %1295 = vmatpush.msrb.mxu1 %v3071_v9  ;;  %1218 = vmatpush.msrb.mxu2 %v1165_v24 }
 0xbe0   :  { %1241 = vmatpush.msrb.mxu3 %v1166_v13  ;;  %1394 = vmatpush.msra.mxu0 %v3099_v17 }
 0xbe1   :  { %1296 = vmatpush.msrb.mxu1 %v3075_v11  ;;  %1513 = vmatpush.msra.mxu2 %v3057_v29 }
 0xbe2   :  { %1533 = vmatpush.msra.mxu3 %v3059_v61  ;;  %1639 = vmatpush.msrb.mxu0 %v3057_v29 }
 0xbe3   :  { %1297 = vmatpush.msrb.mxu1 %v3081_v2  ;;  %1514 = vmatpush.msra.mxu2 %v3063_v63 }
 0xbe4   :  { %1534 = vmatpush.msra.mxu3 %v3065_v3  ;;  %1640 = vmatpush.msrb.mxu0 %v3063_v63 }
 0xbe5   :  { %1298 = vmatpush.msrb.mxu1 %v3087_v15  ;;  %1515 = vmatpush.msra.mxu2 %v3069_v8 }
 0xbe6   :  { %1535 = vmatpush.msra.mxu3 %v3071_v9  ;;  %1641 = vmatpush.msrb.mxu0 %v3069_v8 }
 0xbe7   :  { %1299 = vmatpush.msrb.mxu1 %v3093_v34  ;;  %1516 = vmatpush.msra.mxu2 %v3073_v10 }
 0xbe8   :  { %1536 = vmatpush.msra.mxu3 %v3075_v11  ;;  %1642 = vmatpush.msrb.mxu0 %v3073_v10 }
 0xbe9   :  { %1300 = vmatpush.msrb.mxu1 %v3101_v19  ;;  %1517 = vmatpush.msra.mxu2 %v3079_v1 }
 0xbea   :  { %1301 = vmatmul.f32.vlgmr.msrb.gmra.mxu1 %v2673_v18  ;;  %1537 = vmatpush.msra.mxu3 %v3081_v2 }
 0xbeb   :  { %1407 = vmatpush.msra.mxu1 %v3059_v61  ;;  %1518 = vmatpush.msra.mxu2 %v3085_v5 }
 0xbec   :  { %1538 = vmatpush.msra.mxu3 %v3087_v15  ;;  %1643 = vmatpush.msrb.mxu0 %v3079_v1 }
 0xbed   :  { %1408 = vmatpush.msra.mxu1 %v3065_v3  ;;  %1519 = vmatpush.msra.mxu2 %v3091_v12 }
 0xbee   :  { %1539 = vmatpush.msra.mxu3 %v3093_v34  ;;  %1644 = vmatpush.msrb.mxu0 %v3085_v5 }
 0xbef   :  { %1409 = vmatpush.msra.mxu1 %v3071_v9  ;;  %1520 = vmatpush.msra.mxu2 %v3099_v17 }
 0xbf0   :  { %1540 = vmatpush.msra.mxu3 %v3101_v19  ;;  %1645 = vmatpush.msrb.mxu0 %v3091_v12 }
 0xbf1   :  { %1410 = vmatpush.msra.mxu1 %v3075_v11 }
 0xbf2   :  { %1646 = vmatpush.msrb.mxu0 %v3099_v17 }
 0xbf3   :  { %1411 = vmatpush.msra.mxu1 %v3081_v2 }
 0xbf5   :  { %1412 = vmatpush.msra.mxu1 %v3087_v15 }
 0xbf7   :  { %1413 = vmatpush.msra.mxu1 %v3093_v34 }
 0xbf9   :  { %1414 = vmatpush.msra.mxu1 %v3101_v19 }
 0xbfb   :  { %1659 = vmatpush.msrb.mxu1 %v3059_v61 }
 0xbfd   :  { %1660 = vmatpush.msrb.mxu1 %v3065_v3 }
 0xbff   :  { %1661 = vmatpush.msrb.mxu1 %v3071_v9 }
 0xc01   :  { %1662 = vmatpush.msrb.mxu1 %v3075_v11 }
 0xc03   :  { %1663 = vmatpush.msrb.mxu1 %v3081_v2 }
 0xc05   :  { %1664 = vmatpush.msrb.mxu1 %v3087_v15 }
 0xc07   :  { %1665 = vmatpush.msrb.mxu1 %v3093_v34 }
 0xc09   :  { %1666 = vmatpush.msrb.mxu1 %v3101_v19 }
 0xc32   :  { %v1157_v18 = vpop.permute.xlu2 %1156 }
 0xc33   :  { %1159 = vst.msk [vmem:[#allocation2 + $0x8] sm:$0xc0] %vm652_vm15, %v1157_v18 }
 0xc34   :  { %1160 = vst.msk [vmem:[#allocation2 - $0x6] sm:$0xc0] %vm654_vm0, %v1157_v18 }
 0xc35   :  { %1161 = vst.msk [vmem:[#allocation2 - $0x6] sm:$0xc0] %vm656_vm3, %v3041_v41 }
 0xc36   :  { %1162 = vst.msk [vmem:[#allocation2 + $0x8] sm:$0xc0] %vm658_vm7, %v3041_v41 }
 0xc3c   :  { %v1163_v14 = vld [vmem:[#allocation2] sm:$0xff] }
 0xc3d   :  { %1219 = vmatmul.f32.vlgmr.msrb.gmra.mxu2 %v1163_v14  ;;  %1242 = vmatmul.f32.vlgmr.msrb.gmra.mxu3 %v1163_v14  ;;  %v1164_v20 = vld [vmem:[#allocation2 + $0x8] sm:$0xff] }
 0xc3e   :  { %1765 = vmatpush.msrb.mxu2 %v3057_v29  ;;  %1785 = vmatpush.msrb.mxu3 %v3059_v61 }
 0xc40   :  { %1766 = vmatpush.msrb.mxu2 %v3063_v63  ;;  %1786 = vmatpush.msrb.mxu3 %v3065_v3 }
 0xc42   :  { %1767 = vmatpush.msrb.mxu2 %v3069_v8  ;;  %1787 = vmatpush.msrb.mxu3 %v3071_v9 }
 0xc44   :  { %1768 = vmatpush.msrb.mxu2 %v3073_v10  ;;  %1788 = vmatpush.msrb.mxu3 %v3075_v11 }
 0xc45   :  { %1222 = vmatmul.f32.gmra.mxu2 %v1164_v20  ;;  %1245 = vmatmul.f32.gmra.mxu3 %v1164_v20 }
 0xc46   :  { %1769 = vmatpush.msrb.mxu2 %v3079_v1  ;;  %1789 = vmatpush.msrb.mxu3 %v3081_v2 }
 0xc48   :  { %1770 = vmatpush.msrb.mxu2 %v3085_v5  ;;  %1790 = vmatpush.msrb.mxu3 %v3087_v15 }
 0xc4a   :  { %1771 = vmatpush.msrb.mxu2 %v3091_v12  ;;  %1791 = vmatpush.msrb.mxu3 %v3093_v34 }
 0xc4c   :  { %1772 = vmatpush.msrb.mxu2 %v3099_v17  ;;  %1792 = vmatpush.msrb.mxu3 %v3101_v19 }
 0xc4e   :  { %v1282_v25 = vpop.f32.mrf.mxu0 }
 0xc67   :  { %v1302_v27 = vpop.f32.mrf.mxu1 }
 0xcc0   :  { %v1220_v23 = vpop.f32.mrf.mxu2  ;;  %v1243_v38 = vpop.f32.mrf.mxu3 }
 0xcc1   :  { %v3185_v28 = vadd.f32 %v1220_v23, %v1199_v22  ;;  %v3191_v39 = vadd.f32 %v1243_v38, %v1200_v33 }
 0xcc3   :  { %v1305_v30 = vadd.f32 %v1282_v25, %v3185_v28  ;;  %v1306_v40 = vadd.f32 %v1302_v27, %v3191_v39 }
 0xcc5   :  { %v2351_v31 = vmul.f32 -1.442695, %v1305_v30  ;;  %v2352_v50 = vmul.f32 -1.442695, %v1306_v40 }
 0xcc7   :  { %2488 = vpow2.f32 %v2351_v31 }
 0xccd   :  { %v2489_v32 = vpop.eup %2488 }
 0xcce   :  { %v1313_v36 = vadd.f32 1.0, %v2489_v32 }
 0xcd0   :  { %2490 = vrcp.f32 %v1313_v36  ;;  %v1326_v44 = vand.u32 2147483648, %v1313_v36  ;;  %v1324_v46 = vand.u32 2147483647, %v1313_v36  ;;  %vm1320_vm13 = vweird.f32 %v1313_v36 }
 0xcd1   :  { %2492 = vtanh.f32 %v1306_v40 }
 0xcd2   :  { %v1327_v35 = vor.u32 1.1754944e-38, %v1326_v44  ;;  %vm1325_vm5 = vcmp.eq.f32.partialorder %v1324_v46, 8.507059e+37  ;;  %2494 = vpow2.f32 %v2352_v50 }
 0xcd6   :  { %v2491_v0 = vpop.eup %2490 }
 0xcd7   :  { %v1316_v42 = vmul.f32 %v2491_v0, %v1313_v36  ;;  %vm1321_vm12 = vweird.f32 %v2491_v0  ;;  %v2493_v47 = vpop.eup %2492 }
 0xcd8   :  { %vm1322_vm7 = vmor %vm1320_vm13, %vm1321_vm12  ;;  %v2495_v51 = vpop.eup %2494 }
 0xcd9   :  { %v1317_v43 = vsub.f32 1.0, %v1316_v42  ;;  %v1314_v52 = vadd.f32 1.0, %v2495_v51 }
 0xcdb   :  { %v1318_v45 = vmul.f32 %v2491_v0, %v1317_v43  ;;  %2496 = vrcp.f32 %v1314_v52  ;;  %v1341_v60 = vand.u32 2147483648, %v1314_v52  ;;  %vm1335_vm14 = vweird.f32 %v1314_v52 }
 0xcdc   :  { %v1339_v21 = vand.u32 2147483647, %v1314_v52 }
 0xcdd   :  { %v1319_v26 = vadd.f32 %v2491_v0, %v1318_v45  ;;  %v1342_v62 = vor.u32 1.1754944e-38, %v1341_v60 }
 0xcde   :  { %vm1340_vm4 = vcmp.eq.f32.partialorder %v1339_v21, 8.507059e+37 }
 0xcdf   :  { %v1323_v7 = vsel %vm1322_vm7, %v2491_v0, %v1319_v26 }
 0xce0   :  { %v1328_v48 = vsel %vm1325_vm5, %v1327_v35, %v1323_v7 }
 0xce1   :  { %v1347_v49 = vmul.f32 %v2493_v47, %v1328_v48  ;;  %v2497_v53 = vpop.eup %2496  ;;  %v1346_v57 = vmul.f32 0.0, %v1328_v48 }
 0xce2   :  { %v1331_v55 = vmul.f32 %v2497_v53, %v1314_v52  ;;  %vm1336_vm8 = vweird.f32 %v2497_v53  ;;  %v3229_v52 = vpop.f32.mrf.mxu2 }
 0xce3   :  { %1349 = vrot.lane.b32.xlu0 %v1347_v49, %s2674_s3  ;;  %vm1337_vm3 = vmor %vm1335_vm14, %vm1336_vm8 }
 0xce4   :  { %v1332_v54 = vsub.f32 1.0, %v1331_v55 }
 0xce6   :  { %v1333_v56 = vmul.f32 %v2497_v53, %v1332_v54 }
 0xce8   :  { %v1334_v59 = vadd.f32 %v2497_v53, %v1333_v56 }
 0xcea   :  { %v1338_v4 = vsel %vm1337_vm3, %v2497_v53, %v1334_v59 }
 0xceb   :  { %v1343_v37 = vsel %vm1340_vm4, %v1342_v62, %v1338_v4 }
 0xd55   :  { %v1350_v41 = vpop.permute.xlu0 %1349 }
 0xd56   :  { %v3195_v58 = vadd.f32 %v1350_v41, %v1346_v57  ;;  %v3232_v57 = vpop.f32.mrf.mxu3 }
 0xd58   :  { %2498 = vtanh.f32 %v3195_v58  ;;  %v1467_v14 = vrot.slane %v3195_v58, 6 }
 0xd5e   :  { %v2499_v6 = vpop.eup %2498 }
 0xd5f   :  { %v1354_v24 = vmul.f32 %v2499_v6, %v1343_v37 }
 0xd61   :  { %1356 = vrot.lane.b32.xlu1 %v1354_v24, %s2674_s3 }
 0xdd3   :  { %v1357_v13 = vpop.permute.xlu1 %1356 }
 0xdd4   :  { %1359 = vst.msk [vmem:[#allocation3] sm:$0x3] %vm259_vm9, %v1357_v13  ;;  %2353 = vmatmul.msk.f32.vlgmr.msra.gmra.mxu0 %vm161_vm10, %v1357_v13  ;;  %2354 = vmatmul.msk.f32.vlgmr.msra.gmra.mxu1 %vm161_vm10, %v1357_v13 }
 0xdd5   :  { %1360 = vst.msk [vmem:[#allocation3 + $0xe] sm:$0x3] %vm261_vm11, %v1357_v13  ;;  %1882 = vmatpush.msra.mxu0 %v3057_v29  ;;  %1902 = vmatpush.msra.mxu1 %v3059_v61 }
 0xdd7   :  { %1883 = vmatpush.msra.mxu0 %v3063_v63  ;;  %1903 = vmatpush.msra.mxu1 %v3065_v3 }
 0xdd9   :  { %1884 = vmatpush.msra.mxu0 %v3069_v8  ;;  %1904 = vmatpush.msra.mxu1 %v3071_v9 }
 0xddb   :  { %1885 = vmatpush.msra.mxu0 %v3073_v10  ;;  %1905 = vmatpush.msra.mxu1 %v3075_v11 }
 0xddd   :  { %1886 = vmatpush.msra.mxu0 %v3079_v1  ;;  %1906 = vmatpush.msra.mxu1 %v3081_v2 }
 0xddf   :  { %1887 = vmatpush.msra.mxu0 %v3085_v5  ;;  %1907 = vmatpush.msra.mxu1 %v3087_v15 }
 0xde1   :  { %1888 = vmatpush.msra.mxu0 %v3091_v12  ;;  %1908 = vmatpush.msra.mxu1 %v3093_v34 }
 0xde3   :  { %1889 = vmatpush.msra.mxu0 %v3099_v17  ;;  %1909 = vmatpush.msra.mxu1 %v3101_v19 }
 0xe51   :  { %v1396_v29 = vpop.f32.mrf.mxu0  ;;  %v1416_v10 = vpop.f32.mrf.mxu1 }
 0xe52   :  { %v1421_v61 = vrot.slane %v1396_v29, 6  ;;  %v1422_v11 = vrot.slane %v1416_v10, 6 }
 0xe54   :  { %v1425_v63 = vadd.f32 %v1421_v61, %v3185_v28  ;;  %v1426_v2 = vadd.f32 %v1422_v11, %v3191_v39 }
 0xe56   :  { %v2355_v3 = vmul.f32 -1.442695, %v1425_v63  ;;  %v2356_v32 = vmul.f32 -1.442695, %v1426_v2 }
 0xe58   :  { %2500 = vpow2.f32 %v2355_v3 }
 0xe5e   :  { %v2501_v8 = vpop.eup %2500 }
 0xe5f   :  { %v1433_v9 = vadd.f32 1.0, %v2501_v8 }
 0xe61   :  { %2502 = vrcp.f32 %v1433_v9  ;;  %v1446_v12 = vand.u32 2147483648, %v1433_v9  ;;  %v1444_v17 = vand.u32 2147483647, %v1433_v9  ;;  %vm1440_vm13 = vweird.f32 %v1433_v9 }
 0xe62   :  { %2504 = vtanh.f32 %v1426_v2 }
 0xe63   :  { %v1447_v18 = vor.u32 1.1754944e-38, %v1446_v12  ;;  %vm1445_vm5 = vcmp.eq.f32.partialorder %v1444_v17, 8.507059e+37  ;;  %2506 = vpow2.f32 %v2356_v32 }
 0xe67   :  { %v2503_v1 = vpop.eup %2502 }
 0xe68   :  { %v1436_v5 = vmul.f32 %v2503_v1, %v1433_v9  ;;  %vm1441_vm12 = vweird.f32 %v2503_v1  ;;  %v2505_v23 = vpop.eup %2504 }
 0xe69   :  { %vm1442_vm7 = vmor %vm1440_vm13, %vm1441_vm12  ;;  %v2507_v36 = vpop.eup %2506 }
 0xe6a   :  { %v1437_v15 = vsub.f32 1.0, %v1436_v5  ;;  %v1434_v38 = vadd.f32 1.0, %v2507_v36 }
 0xe6c   :  { %v1438_v34 = vmul.f32 %v2503_v1, %v1437_v15  ;;  %2508 = vrcp.f32 %v1434_v38  ;;  %v1461_v46 = vand.u32 2147483648, %v1434_v38  ;;  %vm1455_vm14 = vweird.f32 %v1434_v38 }
 0xe6d   :  { %v1459_v26 = vand.u32 2147483647, %v1434_v38 }
 0xe6e   :  { %v1439_v19 = vadd.f32 %v2503_v1, %v1438_v34  ;;  %v1462_v7 = vor.u32 1.1754944e-38, %v1461_v46 }
 0xe6f   :  { %vm1460_vm4 = vcmp.eq.f32.partialorder %v1459_v26, 8.507059e+37 }
 0xe70   :  { %v1443_v20 = vsel %vm1442_vm7, %v2503_v1, %v1439_v19 }
 0xe71   :  { %v1448_v25 = vsel %vm1445_vm5, %v1447_v18, %v1443_v20 }
 0xe72   :  { %v1470_v30 = vmul.f32 %v2505_v23, %v1448_v25  ;;  %v1469_v31 = vmul.f32 %v1467_v14, %v1448_v25  ;;  %v2509_v27 = vpop.eup %2508 }
 0xe73   :  { %v1451_v0 = vmul.f32 %v2509_v27, %v1434_v38  ;;  %vm1456_vm8 = vweird.f32 %v2509_v27 }
 0xe74   :  { %1472 = vrot.lane.b32.xlu2 %v1470_v30, %s2674_s3  ;;  %vm1457_vm3 = vmor %vm1455_vm14, %vm1456_vm8 }
 0xe75   :  { %v1452_v40 = vsub.f32 1.0, %v1451_v0 }
 0xe77   :  { %v1453_v42 = vmul.f32 %v2509_v27, %v1452_v40 }
 0xe79   :  { %v1454_v45 = vadd.f32 %v2509_v27, %v1453_v42 }
 0xe7b   :  { %v1458_v35 = vsel %vm1457_vm3, %v2509_v27, %v1454_v45 }
 0xe7c   :  { %v1463_v48 = vsel %vm1460_vm4, %v1462_v7, %v1458_v35 }
 0xece   :  { %v1473_v43 = vpop.permute.xlu2 %1472 }
 0xecf   :  { %v1475_v44 = vadd.f32 %v1473_v43, %v1469_v31 }
 0xed1   :  { %2510 = vtanh.f32 %v1475_v44  ;;  %v1593_v63 = vrot.slane %v1475_v44, 6 }
 0xed7   :  { %v2511_v47 = vpop.eup %2510 }
 0xed8   :  { %v3223_v49 = vmul.f32 %v2511_v47, %v1463_v48 }
 0xeda   :  { %v1500_v50 = vrot.slane %v3223_v49, 2 }
 0xedc   :  { %1501 = vrot.lane.b32.xlu0 %v1500_v50, %s2674_s3 }
 0xf4e   :  { %v1502_v51 = vpop.permute.xlu0 %1501 }
 0xf4f   :  { %2357 = vmatmul.msk.f32.vlgmr.msra.gmra.mxu2 %vm161_vm10, %v1502_v51  ;;  %2358 = vmatmul.msk.f32.vlgmr.msra.gmra.mxu3 %vm161_vm10, %v1502_v51 }
 0xfd2   :  { %v1522_v53 = vpop.f32.mrf.mxu2  ;;  %v1542_v59 = vpop.f32.mrf.mxu3 }
 0xfd3   :  { %v1547_v55 = vrot.slane %v1522_v53, 4  ;;  %v1548_v60 = vrot.slane %v1542_v59, 4 }
 0xfd5   :  { %v1551_v54 = vadd.f32 %v1547_v55, %v3185_v28  ;;  %v1552_v4 = vadd.f32 %v1548_v60, %v3191_v39 }
 0xfd7   :  { %v2359_v56 = vmul.f32 -1.442695, %v1551_v54  ;;  %v2360_v1 = vmul.f32 -1.442695, %v1552_v4 }
 0xfd9   :  { %2512 = vpow2.f32 %v2359_v56 }
 0xfdf   :  { %v2513_v41 = vpop.eup %2512 }
 0xfe0   :  { %v1559_v58 = vadd.f32 1.0, %v2513_v41 }
 0xfe2   :  { %2514 = vrcp.f32 %v1559_v58  ;;  %v1572_v37 = vand.u32 2147483648, %v1559_v58  ;;  %v1570_v13 = vand.u32 2147483647, %v1559_v58  ;;  %vm1566_vm13 = vweird.f32 %v1559_v58 }
 0xfe3   :  { %2516 = vtanh.f32 %v1552_v4 }
 0xfe4   :  { %v1573_v61 = vor.u32 1.1754944e-38, %v1572_v37  ;;  %vm1571_vm5 = vcmp.eq.f32.partialorder %v1570_v13, 8.507059e+37  ;;  %2518 = vpow2.f32 %v2360_v1 }
 0xfe8   :  { %v2515_v21 = vpop.eup %2514 }
 0xfe9   :  { %v1562_v62 = vmul.f32 %v2515_v21, %v1559_v58  ;;  %vm1567_vm12 = vweird.f32 %v2515_v21  ;;  %v2517_v8 = vpop.eup %2516 }
 0xfea   :  { %vm1568_vm7 = vmor %vm1566_vm13, %vm1567_vm12  ;;  %v2519_v2 = vpop.eup %2518 }
 0xfeb   :  { %v1563_v6 = vsub.f32 1.0, %v1562_v62  ;;  %v1560_v5 = vadd.f32 1.0, %v2519_v2 }
 0xfed   :  { %v1564_v24 = vmul.f32 %v2515_v21, %v1563_v6  ;;  %2520 = vrcp.f32 %v1560_v5  ;;  %v1587_v20 = vand.u32 2147483648, %v1560_v5  ;;  %vm1581_vm14 = vweird.f32 %v1560_v5 }
 0xfee   :  { %v1585_v23 = vand.u32 2147483647, %v1560_v5 }
 0xfef   :  { %v1565_v29 = vadd.f32 %v2515_v21, %v1564_v24  ;;  %v1588_v30 = vor.u32 1.1754944e-38, %v1587_v20  ;;  %v3260_v20 = vadd.f32 %v3232_v57, %v1200_v33 }
 0xff0   :  { %vm1586_vm4 = vcmp.eq.f32.partialorder %v1585_v23, 8.507059e+37 }
 0xff1   :  { %v1569_v3 = vsel %vm1568_vm7, %v2515_v21, %v1565_v29 }
 0xff2   :  { %v1574_v9 = vsel %vm1571_vm5, %v1573_v61, %v1569_v3 }
 0xff3   :  { %v1596_v10 = vmul.f32 %v2517_v8, %v1574_v9  ;;  %v1595_v11 = vmul.f32 %v1593_v63, %v1574_v9  ;;  %v2521_v15 = vpop.eup %2520 }
 0xff4   :  { %v1577_v12 = vmul.f32 %v2521_v15, %v1560_v5  ;;  %vm1582_vm8 = vweird.f32 %v2521_v15 }
 0xff5   :  { %1598 = vrot.lane.b32.xlu1 %v1596_v10, %s2674_s3  ;;  %vm1583_vm3 = vmor %vm1581_vm14, %vm1582_vm8 }
 0xff6   :  { %v1578_v34 = vsub.f32 1.0, %v1577_v12 }
 0xff8   :  { %v1579_v17 = vmul.f32 %v2521_v15, %v1578_v34 }
 0xffa   :  { %v1580_v14 = vadd.f32 %v2521_v15, %v1579_v17 }
 0xffc   :  { %v1584_v25 = vsel %vm1583_vm3, %v2521_v15, %v1580_v14  ;;  %v3254_v15 = vadd.f32 %v3229_v52, %v1199_v22 }
 0xffd   :  { %v1589_v32 = vsel %vm1586_vm4, %v1588_v30, %v1584_v25 }
0x1067   :  { %v1599_v19 = vpop.permute.xlu1 %1598 }
0x1068   :  { %v1601_v18 = vadd.f32 %v1599_v19, %v1595_v11 }
0x106a   :  { %2522 = vtanh.f32 %v1601_v18  ;;  %v1719_v54 = vrot.slane %v1601_v18, 6 }
0x1070   :  { %v2523_v31 = vpop.eup %2522 }
0x1071   :  { %v3236_v36 = vmul.f32 %v2523_v31, %v1589_v32 }
0x1073   :  { %v1626_v38 = vrot.slane %v3236_v36, 4 }
0x1075   :  { %1627 = vrot.lane.b32.xlu2 %v1626_v38, %s2674_s3 }
0x10cf   :  { %v1628_v27 = vpop.permute.xlu2 %1627 }
0x10d0   :  { %2361 = vmatmul.msk.f32.vlgmr.msrb.gmra.mxu0 %vm161_vm10, %v1628_v27  ;;  %2362 = vmatmul.msk.f32.vlgmr.msrb.gmra.mxu1 %vm161_vm10, %v1628_v27 }
0x114d   :  { %v1648_v0 = vpop.f32.mrf.mxu0  ;;  %v1668_v46 = vpop.f32.mrf.mxu1 }
0x114e   :  { %v1673_v40 = vrot.slane %v1648_v0, 2  ;;  %v1674_v26 = vrot.slane %v1668_v46, 2 }
0x1150   :  { %v1677_v42 = vadd.f32 %v1673_v40, %v3185_v28  ;;  %v1678_v7 = vadd.f32 %v1674_v26, %v3191_v39 }
0x1152   :  { %v2363_v43 = vmul.f32 -1.442695, %v1677_v42  ;;  %v2364_v39 = vmul.f32 -1.442695, %v1678_v7 }
0x1154   :  { %2524 = vpow2.f32 %v2363_v43 }
0x115a   :  { %v2525_v44 = vpop.eup %2524 }
0x115b   :  { %v1685_v45 = vadd.f32 1.0, %v2525_v44 }
0x115d   :  { %2526 = vrcp.f32 %v1685_v45  ;;  %v1698_v50 = vand.u32 2147483648, %v1685_v45  ;;  %v1696_v53 = vand.u32 2147483647, %v1685_v45  ;;  %vm1692_vm13 = vweird.f32 %v1685_v45 }
0x115e   :  { %2528 = vtanh.f32 %v1678_v7 }
0x115f   :  { %v1699_v28 = vor.u32 1.1754944e-38, %v1698_v50  ;;  %vm1697_vm5 = vcmp.eq.f32.partialorder %v1696_v53, 8.507059e+37  ;;  %2530 = vpow2.f32 %v2364_v39 }
0x1163   :  { %v2527_v35 = vpop.eup %2526 }
0x1164   :  { %v1688_v47 = vmul.f32 %v2527_v35, %v1685_v45  ;;  %vm1693_vm12 = vweird.f32 %v2527_v35  ;;  %v2529_v41 = vpop.eup %2528 }
0x1165   :  { %vm1694_vm7 = vmor %vm1692_vm13, %vm1693_vm12  ;;  %v2531_v21 = vpop.eup %2530 }
0x1166   :  { %v1689_v48 = vsub.f32 1.0, %v1688_v47  ;;  %v1686_v4 = vadd.f32 1.0, %v2531_v21 }
0x1168   :  { %v1690_v51 = vmul.f32 %v2527_v35, %v1689_v48  ;;  %2532 = vrcp.f32 %v1686_v4  ;;  %v1713_v63 = vand.u32 2147483648, %v1686_v4  ;;  %vm1707_vm14 = vweird.f32 %v1686_v4 }
0x1169   :  { %v1711_v3 = vand.u32 2147483647, %v1686_v4 }
0x116a   :  { %v1691_v55 = vadd.f32 %v2527_v35, %v1690_v51  ;;  %v1714_v9 = vor.u32 1.1754944e-38, %v1713_v63 }
0x116b   :  { %vm1712_vm4 = vcmp.eq.f32.partialorder %v1711_v3, 8.507059e+37 }
0x116c   :  { %v1695_v56 = vsel %vm1694_vm7, %v2527_v35, %v1691_v55 }
0x116d   :  { %v1700_v58 = vsel %vm1697_vm5, %v1699_v28, %v1695_v56 }
0x116e   :  { %v1722_v59 = vmul.f32 %v2529_v41, %v1700_v58  ;;  %v1721_v60 = vmul.f32 %v1719_v54, %v1700_v58  ;;  %v2533_v62 = vpop.eup %2532 }
0x116f   :  { %v1703_v6 = vmul.f32 %v2533_v62, %v1686_v4  ;;  %vm1708_vm8 = vweird.f32 %v2533_v62 }
0x1170   :  { %1724 = vrot.lane.b32.xlu0 %v1722_v59, %s2674_s3  ;;  %vm1709_vm3 = vmor %vm1707_vm14, %vm1708_vm8 }
0x1171   :  { %v1704_v37 = vsub.f32 1.0, %v1703_v6 }
0x1173   :  { %v1705_v24 = vmul.f32 %v2533_v62, %v1704_v37 }
0x1175   :  { %v1706_v61 = vadd.f32 %v2533_v62, %v1705_v24 }
0x1177   :  { %v1710_v8 = vsel %vm1709_vm3, %v2533_v62, %v1706_v61 }
0x1178   :  { %v1715_v11 = vsel %vm1712_vm4, %v1714_v9, %v1710_v8 }
0x11e2   :  { %v1725_v13 = vpop.permute.xlu0 %1724 }
0x11e3   :  { %v1727_v29 = vadd.f32 %v1725_v13, %v1721_v60 }
0x11e5   :  { %2534 = vtanh.f32 %v1727_v29  ;;  %v1839_v0 = vrot.slane %v1727_v29, 6 }
0x11eb   :  { %v2535_v10 = vpop.eup %2534 }
0x11ec   :  { %v3245_v1 = vmul.f32 %v2535_v10, %v1715_v11 }
0x11ee   :  { %v1752_v2 = vrot.slane %v3245_v1, 6 }
0x11f0   :  { %1753 = vrot.lane.b32.xlu1 %v1752_v2, %s2674_s3 }
0x1262   :  { %v1754_v5 = vpop.permute.xlu1 %1753 }
0x1263   :  { %2365 = vmatmul.msk.f32.vlgmr.msrb.gmra.mxu2 %vm161_vm10, %v1754_v5  ;;  %2366 = vmatmul.msk.f32.vlgmr.msrb.gmra.mxu3 %vm161_vm10, %v1754_v5 }
0x12e6   :  { %v1774_v12 = vpop.f32.mrf.mxu2  ;;  %v1794_v14 = vpop.f32.mrf.mxu3 }
0x12e7   :  { %v1797_v34 = vadd.f32 %v1774_v12, %v3254_v15  ;;  %v1798_v25 = vadd.f32 %v1794_v14, %v3260_v20 }
0x12e9   :  { %v2367_v17 = vmul.f32 -1.442695, %v1797_v34  ;;  %v2368_v43 = vmul.f32 -1.442695, %v1798_v25 }
0x12eb   :  { %2536 = vpow2.f32 %v2367_v17 }
0x12f1   :  { %v2537_v19 = vpop.eup %2536 }
0x12f2   :  { %v1805_v18 = vadd.f32 1.0, %v2537_v19 }
0x12f4   :  { %2538 = vrcp.f32 %v1805_v18  ;;  %v1818_v52 = vand.u32 2147483648, %v1805_v18  ;;  %v1816_v32 = vand.u32 2147483647, %v1805_v18  ;;  %vm1812_vm13 = vweird.f32 %v1805_v18 }
0x12f5   :  { %2540 = vtanh.f32 %v1798_v25  ;;  %v1994_v25 = vld [vmem:[#allocation8 + $0x78] sm:$0xff] }
0x12f6   :  { %v1819_v27 = vor.u32 1.1754944e-38, %v1818_v52  ;;  %vm1817_vm5 = vcmp.eq.f32.partialorder %v1816_v32, 8.507059e+37  ;;  %2542 = vpow2.f32 %v2368_v43  ;;  %2028 = vmatpush.msra.mxu3 %v1994_v25  ;;  %v1989_v52 = vld [vmem:[#allocation8 + $0x50] sm:$0xff]  ;;  %2154 = vmatpush.msrb.mxu1 %v1994_v25  ;;  %v1987_v32 = vld [vmem:[#allocation8 + $0x40] sm:$0xff]  ;;  %v1982_v43 = vld [vmem:[#allocation8 + $0x18] sm:$0xff] }
0x12fa   :  { %v2539_v23 = vpop.eup %2538 }
0x12fb   :  { %v1808_v30 = vmul.f32 %v2539_v23, %v1805_v18  ;;  %vm1813_vm12 = vweird.f32 %v2539_v23  ;;  %v2541_v16 = vpop.eup %2540 }
0x12fc   :  { %vm1814_vm7 = vmor %vm1812_vm13, %vm1813_vm12  ;;  %v2543_v44 = vpop.eup %2542 }
0x12fd   :  { %v1809_v22 = vsub.f32 1.0, %v1808_v30  ;;  %v1806_v45 = vadd.f32 1.0, %v2543_v44  ;;  %v1991_v30 = vld [vmem:[#allocation8 + $0x60] sm:$0xff] }
0x12ff   :  { %v1810_v31 = vmul.f32 %v2539_v23, %v1809_v22  ;;  %2544 = vrcp.f32 %v1806_v45  ;;  %v1833_v51 = vand.u32 2147483648, %v1806_v45  ;;  %vm1827_vm14 = vweird.f32 %v1806_v45  ;;  %v1992_v22 = vld [vmem:[#allocation8 + $0x68] sm:$0xff] }
0x1300   :  { %v1831_v53 = vand.u32 2147483647, %v1806_v45  ;;  %2029 = vmatpush.msra.mxu3 %v1992_v22  ;;  %2155 = vmatpush.msrb.mxu1 %v1992_v22 }
0x1301   :  { %v1811_v38 = vadd.f32 %v2539_v23, %v1810_v31  ;;  %v1834_v28 = vor.u32 1.1754944e-38, %v1833_v51  ;;  %v1990_v31 = vld [vmem:[#allocation8 + $0x58] sm:$0xff] }
0x1302   :  { %vm1832_vm4 = vcmp.eq.f32.partialorder %v1831_v53, 8.507059e+37  ;;  %2030 = vmatpush.msra.mxu3 %v1990_v31  ;;  %2156 = vmatpush.msrb.mxu1 %v1990_v31 }
0x1303   :  { %v1815_v40 = vsel %vm1814_vm7, %v2539_v23, %v1811_v38  ;;  %v1993_v23 = vld [vmem:[#allocation8 + $0x70] sm:$0xff]  ;;  %v1988_v38 = vld [vmem:[#allocation8 + $0x48] sm:$0xff] }
0x1304   :  { %v1820_v33 = vsel %vm1817_vm5, %v1819_v27, %v1815_v40  ;;  %2008 = vmatpush.msra.mxu2 %v1993_v23  ;;  %2134 = vmatpush.msrb.mxu0 %v1993_v23  ;;  %v1986_v40 = vld [vmem:[#allocation8 + $0x38] sm:$0xff] }
0x1305   :  { %v1842_v57 = vmul.f32 %v2541_v16, %v1820_v33  ;;  %v1841_v42 = vmul.f32 %v1839_v0, %v1820_v33  ;;  %v2545_v46 = vpop.eup %2544  ;;  %v1985_v0 = vld [vmem:[#allocation8 + $0x30] sm:$0xff]  ;;  %2031 = vmatpush.msra.mxu3 %v1988_v38  ;;  %v1983_v33 = vld [vmem:[#allocation8 + $0x20] sm:$0xff]  ;;  %2157 = vmatpush.msrb.mxu1 %v1988_v38 }
0x1306   :  { %v1823_v26 = vmul.f32 %v2545_v46, %v1806_v45  ;;  %vm1828_vm8 = vweird.f32 %v2545_v46  ;;  %2009 = vmatpush.msra.mxu2 %v1991_v30  ;;  %2135 = vmatpush.msrb.mxu0 %v1991_v30  ;;  %v1979_v45 = vld [vmem:[#allocation8] sm:$0xff] }
0x1307   :  { %1844 = vrot.lane.b32.xlu2 %v1842_v57, %s2674_s3  ;;  %vm1829_vm3 = vmor %vm1827_vm14, %vm1828_vm8  ;;  %v1984_v57 = vld [vmem:[#allocation8 + $0x28] sm:$0xff]  ;;  %2032 = vmatpush.msra.mxu3 %v1986_v40 }
0x1308   :  { %v1824_v35 = vsub.f32 1.0, %v1823_v26  ;;  %2010 = vmatpush.msra.mxu2 %v1989_v52  ;;  %2136 = vmatpush.msrb.mxu0 %v1989_v52 }
0x1309   :  { %2158 = vmatpush.msrb.mxu1 %v1986_v40  ;;  %2033 = vmatpush.msra.mxu3 %v1984_v57 }
0x130a   :  { %v1825_v7 = vmul.f32 %v2545_v46, %v1824_v35  ;;  %2011 = vmatpush.msra.mxu2 %v1987_v32  ;;  %2137 = vmatpush.msrb.mxu0 %v1987_v32 }
0x130b   :  { %2159 = vmatpush.msrb.mxu1 %v1984_v57  ;;  %2034 = vmatpush.msra.mxu3 %v1982_v43 }
0x130c   :  { %v1826_v50 = vadd.f32 %v2545_v46, %v1825_v7  ;;  %2012 = vmatpush.msra.mxu2 %v1985_v0  ;;  %2138 = vmatpush.msrb.mxu0 %v1985_v0 }
0x130d   :  { %2160 = vmatpush.msrb.mxu1 %v1982_v43 }
0x130e   :  { %v1830_v55 = vsel %vm1829_vm3, %v2545_v46, %v1826_v50  ;;  %2013 = vmatpush.msra.mxu2 %v1983_v33  ;;  %v1980_v46 = vld [vmem:[#allocation8 + $0x8] sm:$0xff]  ;;  %2139 = vmatpush.msrb.mxu0 %v1983_v33 }
0x130f   :  { %v1835_v56 = vsel %vm1832_vm4, %v1834_v28, %v1830_v55  ;;  %2035 = vmatpush.msra.mxu3 %v1980_v46  ;;  %2161 = vmatpush.msrb.mxu1 %v1980_v46 }
0x1361   :  { %v1845_v47 = vpop.permute.xlu2 %1844 }
0x1362   :  { %v1847_v48 = vadd.f32 %v1845_v47, %v1841_v42  ;;  %v1981_v42 = vld [vmem:[#allocation8 + $0x10] sm:$0xff] }
0x1363   :  { %2014 = vmatpush.msra.mxu2 %v1981_v42  ;;  %2140 = vmatpush.msrb.mxu0 %v1981_v42 }
0x1364   :  { %2546 = vtanh.f32 %v1847_v48  ;;  %v1962_v11 = vrot.slane %v1847_v48, 6 }
0x1365   :  { %2015 = vmatpush.msra.mxu2 %v1979_v45  ;;  %2141 = vmatpush.msrb.mxu0 %v1979_v45 }
0x136a   :  { %v2547_v54 = vpop.eup %2546 }
0x136b   :  { %v1849_v41 = vmul.f32 %v2547_v54, %v1835_v56 }
0x136d   :  { %1851 = vrot.lane.b32.xlu0 %v1849_v41, %s2674_s3 }
0x13df   :  { %v3265_v58 = vpop.permute.xlu0 %1851 }
0x13e0   :  { %2369 = vmatmul.msk.f32.vlgmr.msra.gmra.mxu0 %vm161_vm10, %v3265_v58  ;;  %2370 = vmatmul.msk.f32.vlgmr.msra.gmra.mxu1 %vm161_vm10, %v3265_v58 }
0x145d   :  { %v1891_v59 = vpop.f32.mrf.mxu0  ;;  %v1911_v6 = vpop.f32.mrf.mxu1 }
0x145e   :  { %v1916_v60 = vrot.slane %v1891_v59, 6  ;;  %v1917_v37 = vrot.slane %v1911_v6, 6 }
0x1460   :  { %v1920_v39 = vadd.f32 %v1916_v60, %v3254_v15  ;;  %v1921_v13 = vadd.f32 %v1917_v37, %v3260_v20 }
0x1462   :  { %v2371_v21 = vmul.f32 -1.442695, %v1920_v39  ;;  %v2372_v19 = vmul.f32 -1.442695, %v1921_v13 }
0x1464   :  { %2548 = vpow2.f32 %v2371_v21 }
0x146a   :  { %v2549_v4 = vpop.eup %2548 }
0x146b   :  { %v1928_v62 = vadd.f32 1.0, %v2549_v4 }
0x146d   :  { %2550 = vrcp.f32 %v1928_v62  ;;  %v1941_v63 = vand.u32 2147483648, %v1928_v62  ;;  %v1939_v8 = vand.u32 2147483647, %v1928_v62  ;;  %vm1935_vm13 = vweird.f32 %v1928_v62 }
0x146e   :  { %2552 = vtanh.f32 %v1921_v13 }
0x146f   :  { %v1942_v10 = vor.u32 1.1754944e-38, %v1941_v63  ;;  %vm1940_vm5 = vcmp.eq.f32.partialorder %v1939_v8, 8.507059e+37  ;;  %2554 = vpow2.f32 %v2372_v19 }
0x1473   :  { %v2551_v24 = vpop.eup %2550 }
0x1474   :  { %v1931_v29 = vmul.f32 %v2551_v24, %v1928_v62  ;;  %vm1936_vm12 = vweird.f32 %v2551_v24  ;;  %v2553_v5 = vpop.eup %2552 }
0x1475   :  { %vm1937_vm7 = vmor %vm1935_vm13, %vm1936_vm12  ;;  %v2555_v18 = vpop.eup %2554 }
0x1476   :  { %v1932_v61 = vsub.f32 1.0, %v1931_v29  ;;  %v3274_v14 = vadd.f32 1.0, %v2555_v18 }
0x1478   :  { %v1933_v3 = vmul.f32 %v2551_v24, %v1932_v61  ;;  %2556 = vrcp.f32 %v3274_v14  ;;  %v1956_v48 = vand.u32 2147483648, %v3274_v14  ;;  %vm1950_vm14 = vweird.f32 %v3274_v14 }
0x1479   :  { %v1954_v50 = vand.u32 2147483647, %v3274_v14 }
0x147a   :  { %v1934_v9 = vadd.f32 %v2551_v24, %v1933_v3  ;;  %v1957_v53 = vor.u32 1.1754944e-38, %v1956_v48 }
0x147b   :  { %vm1955_vm4 = vcmp.eq.f32.partialorder %v1954_v50, 8.507059e+37 }
0x147c   :  { %v1938_v2 = vsel %vm1937_vm7, %v2551_v24, %v1934_v9 }
0x147d   :  { %v1943_v12 = vsel %vm1940_vm5, %v1942_v10, %v1938_v2 }
0x147e   :  { %v1965_v34 = vmul.f32 %v2553_v5, %v1943_v12  ;;  %v1964_v17 = vmul.f32 %v1962_v11, %v1943_v12  ;;  %v2557_v27 = vpop.eup %2556 }
0x147f   :  { %v1946_v16 = vmul.f32 %v2557_v27, %v3274_v14  ;;  %vm1951_vm8 = vweird.f32 %v2557_v27 }
0x1480   :  { %1967 = vrot.lane.b32.xlu1 %v1965_v34, %s2674_s3  ;;  %vm1952_vm3 = vmor %vm1950_vm14, %vm1951_vm8 }
0x1481   :  { %v1947_v44 = vsub.f32 1.0, %v1946_v16 }
0x1483   :  { %v1948_v26 = vmul.f32 %v2557_v27, %v1947_v44 }
0x1485   :  { %v1949_v47 = vadd.f32 %v2557_v27, %v1948_v26 }
0x1487   :  { %v1953_v51 = vsel %vm1952_vm3, %v2557_v27, %v1949_v47 }
0x1488   :  { %v1958_v28 = vsel %vm1955_vm4, %v1957_v53, %v1953_v51 }
0x14f2   :  { %v1968_v35 = vpop.permute.xlu1 %1967 }
0x14f3   :  { %v1970_v7 = vadd.f32 %v1968_v35, %v1964_v17 }
0x14f5   :  { %2558 = vtanh.f32 %v1970_v7  ;;  %v2088_v11 = vrot.slane %v1970_v7, 6 }
0x14fb   :  { %v2559_v55 = vpop.eup %2558 }
0x14fc   :  { %v1972_v54 = vmul.f32 %v2559_v55, %v1958_v28 }
0x14fe   :  { %v1995_v56 = vrot.slane %v1972_v54, 2 }
0x1500   :  { %1996 = vrot.lane.b32.xlu2 %v1995_v56, %s2674_s3 }
0x155a   :  { %v1997_v41 = vpop.permute.xlu2 %1996 }
0x155b   :  { %2373 = vmatmul.msk.f32.vlgmr.msra.gmra.mxu2 %vm161_vm10, %v1997_v41  ;;  %2374 = vmatmul.msk.f32.vlgmr.msra.gmra.mxu3 %vm161_vm10, %v1997_v41 }
0x15de   :  { %v2017_v59 = vpop.f32.mrf.mxu2  ;;  %v2037_v6 = vpop.f32.mrf.mxu3 }
0x15df   :  { %v2042_v60 = vrot.slane %v2017_v59, 4  ;;  %v2043_v37 = vrot.slane %v2037_v6, 4 }
0x15e1   :  { %v2046_v39 = vadd.f32 %v2042_v60, %v3254_v15  ;;  %v2047_v13 = vadd.f32 %v2043_v37, %v3260_v20 }
0x15e3   :  { %v2375_v21 = vmul.f32 -1.442695, %v2046_v39  ;;  %v2376_v19 = vmul.f32 -1.442695, %v2047_v13 }
0x15e5   :  { %2560 = vpow2.f32 %v2375_v21 }
0x15eb   :  { %v2561_v4 = vpop.eup %2560 }
0x15ec   :  { %v2054_v62 = vadd.f32 1.0, %v2561_v4 }
0x15ee   :  { %2562 = vrcp.f32 %v2054_v62  ;;  %v2067_v63 = vand.u32 2147483648, %v2054_v62  ;;  %v2065_v8 = vand.u32 2147483647, %v2054_v62  ;;  %vm2061_vm13 = vweird.f32 %v2054_v62 }
0x15ef   :  { %2564 = vtanh.f32 %v2047_v13 }
0x15f0   :  { %v2068_v10 = vor.u32 1.1754944e-38, %v2067_v63  ;;  %vm2066_vm5 = vcmp.eq.f32.partialorder %v2065_v8, 8.507059e+37  ;;  %2566 = vpow2.f32 %v2376_v19  ;;  %v2238_v63 = vld [vmem:[%s3363_s7 + $0x28] sm:$0xff] }
0x15f4   :  { %v2563_v24 = vpop.eup %2562 }
0x15f5   :  { %v2057_v29 = vmul.f32 %v2563_v24, %v2054_v62  ;;  %vm2062_vm12 = vweird.f32 %v2563_v24  ;;  %v2565_v5 = vpop.eup %2564 }
0x15f6   :  { %vm2063_vm7 = vmor %vm2061_vm13, %vm2062_vm12  ;;  %v2567_v18 = vpop.eup %2566  ;;  %vm3366_vm12 = vcmask 521476  }
0x15f7   :  { %v2058_v61 = vsub.f32 1.0, %v2057_v29  ;;  %v2055_v14 = vadd.f32 1.0, %v2567_v18  ;;  %vm3367_vm13 = vmmov %vm3366_vm12  ;;  %v2240_v29 = vld [vmem:[%s3363_s7 + $0x38] sm:$0xff] }
0x15f8   :  { %2255 = vmatpush.msrb.mxu2 %v2240_v29 }
0x15f9   :  { %v2059_v3 = vmul.f32 %v2563_v24, %v2058_v61  ;;  %2568 = vrcp.f32 %v2055_v14  ;;  %v2082_v38 = vand.u32 2147483648, %v2055_v14  ;;  %vm2076_vm14 = vweird.f32 %v2055_v14  ;;  %v2239_v61 = vld [vmem:[%s3363_s7 + $0x30] sm:$0xff] }
0x15fa   :  { %2256 = vmatpush.msrb.mxu2 %v2239_v61 }
0x15fb   :  { %v2060_v9 = vadd.f32 %v2563_v24, %v2059_v3  ;;  %v2083_v0 = vor.u32 1.1754944e-38, %v2082_v38 }
0x15fc   :  { %2257 = vmatpush.msrb.mxu2 %v2238_v63 }
0x15fd   :  { %v2064_v2 = vsel %vm2063_vm7, %v2563_v24, %v2060_v9 }
0x15fe   :  { %v2069_v12 = vsel %vm2066_vm5, %v2068_v10, %v2064_v2 }
0x15ff   :  { %v2091_v34 = vmul.f32 %v2565_v5, %v2069_v12  ;;  %v2090_v17 = vmul.f32 %v2088_v11, %v2069_v12  ;;  %v2569_v23 = vpop.eup %2568 }
0x1600   :  { %v2072_v25 = vmul.f32 %v2569_v23, %v2055_v14  ;;  %vm2077_vm8 = vweird.f32 %v2569_v23 }
0x1601   :  { %2093 = vrot.lane.b32.xlu0 %v2091_v34, %s2674_s3  ;;  %vm2078_vm3 = vmor %vm2076_vm14, %vm2077_vm8 }
0x1602   :  { %v2073_v30 = vsub.f32 1.0, %v2072_v25 }
0x1604   :  { %v2074_v22 = vmul.f32 %v2569_v23, %v2073_v30  ;;  %v2236_v30 = vld [vmem:[%s3363_s7 + $0x18] sm:$0xff] }
0x1606   :  { %v2075_v32 = vadd.f32 %v2569_v23, %v2074_v22  ;;  %v2235_v22 = vld [vmem:[%s3363_s7 + $0x10] sm:$0xff] }
0x1608   :  { %v2079_v27 = vsel %vm2078_vm3, %v2569_v23, %v2075_v32 }
0x1609   :  { %1479 = vrot.lane.b32.xlu0 %v3223_v49, %s2674_s3  ;;  %v2080_v49 = vand.u32 2147483647, %v2055_v14 }
0x160b   :  { %vm2081_vm4 = vcmp.eq.f32.partialorder %v2080_v49, 8.507059e+37 }
0x160c   :  { %v2084_v33 = vsel %vm2081_vm4, %v2083_v0, %v2079_v27 }
0x1611   :  { %1974 = vrot.lane.b32.xlu0 %v1972_v54, %s2674_s3 }
0x1673   :  { %v2094_v52 = vpop.permute.xlu0 %2093 }
0x1674   :  { %v3290_v31 = vadd.f32 %v2094_v52, %v2090_v17  ;;  %v2234_v52 = vld [vmem:[%s3363_s7 + $0x8] sm:$0xff] }
0x1676   :  { %2570 = vtanh.f32 %v3290_v31  ;;  %v2214_v39 = vrot.slane %v3290_v31, 6 }
0x167b   :  { %v1480_v40 = vpop.permute.xlu0 %1479 }
0x167c   :  { %v2571_v16 = vpop.eup %2570  ;;  %1482 = vst.msk [vmem:[#allocation3] sm:$0xc] %vm388_vm1, %v1480_v40 }
0x167d   :  { %1483 = vst.msk [vmem:[#allocation3 + $0xa] sm:$0xc] %vm390_vm2, %v1480_v40  ;;  %v2098_v57 = vmul.f32 %v2571_v16, %v2084_v33 }
0x167f   :  { %v2121_v42 = vrot.slane %v2098_v57, 4 }
0x1681   :  { %2122 = vrot.lane.b32.xlu1 %v2121_v42, %s2674_s3 }
0x1683   :  { %v1975_v45 = vpop.permute.xlu0 %1974 }
0x1689   :  { %1605 = vrot.lane.b32.xlu1 %v3236_v36, %s2674_s3 }
0x1691   :  { %2100 = vrot.lane.b32.xlu1 %v2098_v57, %s2674_s3 }
0x16f3   :  { %v2123_v43 = vpop.permute.xlu1 %2122 }
0x16f4   :  { %2377 = vmatmul.msk.f32.vlgmr.msrb.gmra.mxu0 %vm161_vm10, %v2123_v43  ;;  %2378 = vmatmul.msk.f32.vlgmr.msrb.gmra.mxu1 %vm161_vm10, %v2123_v43 }
0x16fb   :  { %v1606_v44 = vpop.permute.xlu1 %1605 }
0x16fc   :  { %1608 = vst.msk [vmem:[#allocation3] sm:$0x30] %vm520_vm6, %v1606_v44 }
0x16fd   :  { %1609 = vst.msk [vmem:[#allocation3 + $0x6] sm:$0x30] %vm3366_vm12, %v1606_v44 }
0x16fe   :  { %1977 = vst.msk [vmem:[#allocation3 + $0x8] sm:$0xc] %vm388_vm1, %v1975_v45 }
0x16ff   :  { %1978 = vst.msk [vmem:[#allocation3 + $0x2] sm:$0xc] %vm390_vm2, %v1975_v45 }
0x1703   :  { %v2101_v46 = vpop.permute.xlu1 %2100 }
0x1704   :  { %2103 = vst.msk [vmem:[#allocation3 + $0x8] sm:$0x30] %vm520_vm6, %v2101_v46 }
0x1705   :  { %2104 = vst.msk [vmem:[#allocation3 - $0x2] sm:$0x30] %vm3367_vm13, %v2101_v46 }
0x1771   :  { %v2143_v36 = vpop.f32.mrf.mxu0  ;;  %v2163_v50 = vpop.f32.mrf.mxu1 }
0x1772   :  { %v2168_v26 = vrot.slane %v2143_v36, 2  ;;  %v2169_v51 = vrot.slane %v2163_v50, 2 }
0x1774   :  { %v2172_v35 = vadd.f32 %v2168_v26, %v3254_v15  ;;  %v2173_v55 = vadd.f32 %v2169_v51, %v3260_v20 }
0x1776   :  { %v2379_v7 = vmul.f32 -1.442695, %v2172_v35  ;;  %v2380_v20 = vmul.f32 -1.442695, %v2173_v55 }
0x1778   :  { %2572 = vpow2.f32 %v2379_v7 }
0x177e   :  { %v2573_v47 = vpop.eup %2572 }
0x177f   :  { %v2180_v48 = vadd.f32 1.0, %v2573_v47 }
0x1781   :  { %2574 = vrcp.f32 %v2180_v48  ;;  %v2193_v56 = vand.u32 2147483648, %v2180_v48  ;;  %v2191_v59 = vand.u32 2147483647, %v2180_v48  ;;  %vm2187_vm2 = vweird.f32 %v2180_v48 }
0x1782   :  { %2576 = vtanh.f32 %v2173_v55 }
0x1783   :  { %v2194_v15 = vor.u32 1.1754944e-38, %v2193_v56  ;;  %vm2192_vm7 = vcmp.eq.f32.partialorder %v2191_v59, 8.507059e+37  ;;  %2578 = vpow2.f32 %v2380_v20 }
0x1787   :  { %v2575_v53 = vpop.eup %2574 }
0x1788   :  { %v2183_v28 = vmul.f32 %v2575_v53, %v2180_v48  ;;  %vm2188_vm1 = vweird.f32 %v2575_v53  ;;  %v2577_v4 = vpop.eup %2576 }
0x1789   :  { %vm2189_vm6 = vmor %vm2187_vm2, %vm2188_vm1  ;;  %v2579_v24 = vpop.eup %2578 }
0x178a   :  { %v2184_v54 = vsub.f32 1.0, %v2183_v28  ;;  %v2181_v13 = vadd.f32 1.0, %v2579_v24 }
0x178c   :  { %v2185_v41 = vmul.f32 %v2575_v53, %v2184_v54  ;;  %2580 = vrcp.f32 %v2181_v13  ;;  %v2208_v12 = vand.u32 2147483648, %v2181_v13  ;;  %vm2202_vm8 = vweird.f32 %v2181_v13 }
0x178d   :  { %v2206_v34 = vand.u32 2147483647, %v2181_v13 }
0x178e   :  { %v2186_v60 = vadd.f32 %v2575_v53, %v2185_v41  ;;  %v2209_v19 = vor.u32 1.1754944e-38, %v2208_v12 }
0x178f   :  { %vm2207_vm3 = vcmp.eq.f32.partialorder %v2206_v34, 8.507059e+37 }
0x1790   :  { %v2190_v21 = vsel %vm2189_vm6, %v2575_v53, %v2186_v60 }
0x1791   :  { %v2195_v62 = vsel %vm2192_vm7, %v2194_v15, %v2190_v21 }
0x1792   :  { %v2217_v6 = vmul.f32 %v2577_v4, %v2195_v62  ;;  %v2216_v37 = vmul.f32 %v2214_v39, %v2195_v62  ;;  %v2581_v3 = vpop.eup %2580 }
0x1793   :  { %v2198_v8 = vmul.f32 %v2581_v3, %v2181_v13  ;;  %vm2203_vm5 = vweird.f32 %v2581_v3 }
0x1794   :  { %2219 = vrot.lane.b32.xlu2 %v2217_v6, %s2674_s3  ;;  %vm2204_vm14 = vmor %vm2202_vm8, %vm2203_vm5 }
0x1795   :  { %v2199_v9 = vsub.f32 1.0, %v2198_v8 }
0x1797   :  { %v2200_v10 = vmul.f32 %v2581_v3, %v2199_v9 }
0x1799   :  { %v2201_v5 = vadd.f32 %v2581_v3, %v2200_v10 }
0x179b   :  { %v2205_v17 = vsel %vm2204_vm14, %v2581_v3, %v2201_v5 }
0x179c   :  { %1731 = vrot.lane.b32.xlu2 %v3245_v1, %s2674_s3  ;;  %v2237_v1 = vld [vmem:[%s3363_s7 + $0x20] sm:$0xff]  ;;  %v2210_v23 = vsel %vm2207_vm3, %v2209_v19, %v2205_v17 }
0x179d   :  { %2258 = vmatpush.msrb.mxu2 %v2237_v1 }
0x179f   :  { %2259 = vmatpush.msrb.mxu2 %v2236_v30 }
0x17a1   :  { %2260 = vmatpush.msrb.mxu2 %v2235_v22 }
0x17a3   :  { %2261 = vmatpush.msrb.mxu2 %v2234_v52 }
0x17ee   :  { %v2220_v11 = vpop.permute.xlu2 %2219 }
0x17ef   :  { %v2222_v2 = vadd.f32 %v2220_v11, %v2216_v37 }
0x17f1   :  { %2582 = vtanh.f32 %v2222_v2 }
0x17f6   :  { %v1732_v18 = vpop.permute.xlu2 %1731 }
0x17f7   :  { %v2583_v14 = vpop.eup %2582  ;;  %1734 = vst.msk [vmem:[#allocation3] sm:$0xc0] %vm652_vm15, %v1732_v18 }
0x17f8   :  { %1735 = vst.msk [vmem:[#allocation3 + $0x2] sm:$0xc0] %vm654_vm0, %v1732_v18  ;;  %v2224_v25 = vmul.f32 %v2583_v14, %v2210_v23 }
0x17f9   :  { %1854 = vst.msk [vmem:[#allocation3 + $0x8] sm:$0x3] %vm259_vm9, %v3265_v58 }
0x17fa   :  { %1855 = vst.msk [vmem:[#allocation3 + $0x6] sm:$0x3] %vm261_vm11, %v3265_v58  ;;  %2226 = vrot.lane.b32.xlu2 %v2224_v25, %s2674_s3  ;;  %v2233_v58 = vld [vmem:[%s3363_s7] sm:$0xff] }
0x17fb   :  { %2262 = vmatpush.msrb.mxu2 %v2233_v58 }
0x1854   :  { %v2227_v31 = vpop.permute.xlu2 %2226 }
0x1855   :  { %2229 = vst.msk [vmem:[#allocation3 + $0x8] sm:$0xc0] %vm652_vm15, %v2227_v31  ;;  %vm2308_vm15 = vcmask 23552  }
0x1856   :  { %2230 = vst.msk [vmem:[#allocation3 - $0x6] sm:$0xc0] %vm654_vm0, %v2227_v31 }
0x185c   :  { %v2232_v38 = vld [vmem:[#allocation3 + $0x8] sm:$0xff] }
0x185d   :  { %v2231_v32 = vld [vmem:[#allocation3] sm:$0xff] }
0x185e   :  { %2381 = vmatmul.msk.f32.vlgmr.msrb.gmra.mxu2 %vm161_vm10, %v2231_v32 }
0x1866   :  { %2382 = vmatmul.msk.f32.gmra.mxu2 %vm161_vm10, %v2232_v38 }
0x18e1   :  { %v2264_v49 = vpop.f32.mrf.mxu2 }
0x18e2   :  { %v2383_v27 = vmul.f32 -1.442695, %v2264_v49 }
0x18e4   :  { %2584 = vpow2.f32 %v2383_v27 }
0x18e9   :  { %v2267_v0 = vpop.f32.mrf.mxu2 }
0x18ea   :  { %v2585_v40 = vpop.eup %2584  ;;  %v2384_v16 = vmul.f32 -1.442695, %v2267_v0 }
0x18eb   :  { %v2276_v33 = vadd.f32 1.0, %v2585_v40 }
0x18ec   :  { %2586 = vpow2.f32 %v2384_v16 }
0x18ed   :  { %2588 = vrcp.f32 %v2276_v33  ;;  %v2289_v46 = vand.u32 2147483648, %v2276_v33  ;;  %v2287_v26 = vand.u32 2147483647, %v2276_v33  ;;  %vm2283_vm10 = vweird.f32 %v2276_v33 }
0x18ef   :  { %v2290_v47 = vor.u32 1.1754944e-38, %v2289_v46  ;;  %vm2288_vm0 = vcmp.eq.f32.partialorder %v2287_v26, 8.507059e+37 }
0x18f2   :  { %v2587_v57 = vpop.eup %2586 }
0x18f3   :  { %v2589_v42 = vpop.eup %2588  ;;  %v2277_v43 = vadd.f32 1.0, %v2587_v57 }
0x18f4   :  { %v2279_v44 = vmul.f32 %v2589_v42, %v2276_v33  ;;  %vm2284_vm9 = vweird.f32 %v2589_v42 }
0x18f5   :  { %2590 = vrcp.f32 %v2277_v43  ;;  %vm2285_vm11 = vmor %vm2283_vm10, %vm2284_vm9  ;;  %v2304_v55 = vand.u32 2147483648, %v2277_v43  ;;  %v2302_v54 = vand.u32 2147483647, %v2277_v43  ;;  %vm2298_vm12 = vweird.f32 %v2277_v43 }
0x18f6   :  { %v2280_v45 = vsub.f32 1.0, %v2279_v44 }
0x18f7   :  { %v2305_v41 = vor.u32 1.1754944e-38, %v2304_v55  ;;  %vm2303_vm1 = vcmp.eq.f32.partialorder %v2302_v54, 8.507059e+37 }
0x18f8   :  { %v2281_v36 = vmul.f32 %v2589_v42, %v2280_v45 }
0x18fa   :  { %v2282_v35 = vadd.f32 %v2589_v42, %v2281_v36 }
0x18fb   :  { %v2591_v7 = vpop.eup %2590 }
0x18fc   :  { %v2286_v48 = vsel %vm2285_vm11, %v2589_v42, %v2282_v35  ;;  %v2294_v50 = vmul.f32 %v2591_v7, %v2277_v43  ;;  %vm2299_vm4 = vweird.f32 %v2591_v7 }
0x18fd   :  { %v2291_v51 = vsel %vm2288_vm0, %v2290_v47, %v2286_v48  ;;  %vm2300_vm13 = vmor %vm2298_vm12, %vm2299_vm4 }
0x18fe   :  { %2309 = vst.msk [vmem:[%s3364_s8] sm:$0xff] %vm2308_vm15, %v2291_v51  ;;  %v2295_v53 = vsub.f32 1.0, %v2294_v50 }
0x1900   :  { %v2296_v28 = vmul.f32 %v2591_v7, %v2295_v53 }
0x1902   :  { %v2297_v56 = vadd.f32 %v2591_v7, %v2296_v28 }
0x1904   :  { %v2301_v59 = vsel %vm2300_vm13, %v2591_v7, %v2297_v56 }
0x1905   :  { %v2306_v60 = vsel %vm2303_vm1, %v2305_v41, %v2301_v59 }
0x1906   :  { %2310 = vst.msk [vmem:[%s3364_s8 + $0x8] sm:$0xff] %vm2308_vm15, %v2306_v60 }
0x1907   :  { %2315 = vsyncpa [#allocation5], 1 }
0x1908   :  { %2316 = vsyncpa [#allocation7], 1 }

</bundles_post_ra>
